<compile_context>
chip_gen: v7x
topology: tpu7x:2x2x1
jax: 0.10.0
libtpu: 0.0.40
codegen_flags: <defaults>
</compile_context>

<pallas_src>
import functools

import jax
import jax.numpy as jnp
from jax.experimental import pallas as pl
from jax.experimental.pallas import tpu as pltpu


LANES = 128


def _round_up(x, m):
    return (x + m - 1) // m * m


# ---------------------------------------------------------------------------
# Pallas kernel: fused  X @ W + b  [+ ReLU]   (bf16 in, f32 accumulate)
# ---------------------------------------------------------------------------
def _mm_bias_act_kernel(x_ref, w_ref, b_ref, o_ref, *, relu):
    acc = jnp.dot(x_ref[...], w_ref[...], preferred_element_type=jnp.float32)
    acc = acc + b_ref[...]
    if relu:
        acc = jnp.maximum(acc, 0.0)
    o_ref[...] = acc.astype(o_ref.dtype)


def pallas_matmul(x, w, b, *, relu, out_dtype, tile_m=256):
    """x: (M, K) bf16, w: (K, N) bf16, b: (1, N) f32, N % 128 == 0."""
    M, K = x.shape
    Kw, N = w.shape
    assert K == Kw and b.shape == (1, N) and N % LANES == 0

    Mp = _round_up(M, 16)
    if Mp <= tile_m:
        tm = Mp
    else:
        tm = tile_m
        Mp = _round_up(M, tm)
    if Mp != M:
        x = jnp.pad(x, ((0, Mp - M), (0, 0)))

    out = pl.pallas_call(
        functools.partial(_mm_bias_act_kernel, relu=relu),
        out_shape=jax.ShapeDtypeStruct((Mp, N), out_dtype),
        grid=(Mp // tm,),
        in_specs=[
            pl.BlockSpec((tm, K), lambda i: (i, 0)),   # M-tiled activations
            pl.BlockSpec((K, N), lambda i: (0, 0)),    # weights resident
            pl.BlockSpec((1, N), lambda i: (0, 0)),    # bias resident
        ],
        out_specs=pl.BlockSpec((tm, N), lambda i: (i, 0)),
        compiler_params=pltpu.CompilerParams(
            dimension_semantics=("parallel",)),
    )(x, w, b)
    return out[:M] if Mp != M else out


# ---------------------------------------------------------------------------
# Pallas kernel: fused classifier tail  relu(X @ W1 + b1) @ W2 + b2
# ---------------------------------------------------------------------------
def _classifier_kernel(x_ref, w1_ref, b1_ref, w2_ref, b2_ref, o_ref):
    h = jnp.dot(x_ref[...], w1_ref[...], preferred_element_type=jnp.float32)
    h = jnp.maximum(h + b1_ref[...], 0.0)
    q = jnp.dot(h.astype(jnp.bfloat16), w2_ref[...],
                preferred_element_type=jnp.float32)
    o_ref[...] = q + b2_ref[...]


def pallas_classifier(x, w1, b1, w2, b2, *, tile_m=256):
    """x: (M, K) bf16, w1: (K, H) bf16, w2: (H, N) bf16, biases f32 (1, .)."""
    M, K = x.shape
    _, H = w1.shape
    _, N = w2.shape
    assert N % LANES == 0

    Mp = _round_up(M, 16)
    if Mp <= tile_m:
        tm = Mp
    else:
        tm = tile_m
        Mp = _round_up(M, tm)
    if Mp != M:
        x = jnp.pad(x, ((0, Mp - M), (0, 0)))

    out = pl.pallas_call(
        _classifier_kernel,
        out_shape=jax.ShapeDtypeStruct((Mp, N), jnp.float32),
        grid=(Mp // tm,),
        in_specs=[
            pl.BlockSpec((tm, K), lambda i: (i, 0)),
            pl.BlockSpec((K, H), lambda i: (0, 0)),
            pl.BlockSpec((1, H), lambda i: (0, 0)),
            pl.BlockSpec((H, N), lambda i: (0, 0)),
            pl.BlockSpec((1, N), lambda i: (0, 0)),
        ],
        out_specs=pl.BlockSpec((tm, N), lambda i: (i, 0)),
        compiler_params=pltpu.CompilerParams(
            dimension_semantics=("parallel",)),
    )(x, w1, b1, w2, b2)
    return out[:M] if Mp != M else out


# ---------------------------------------------------------------------------
# im2col glue (plain JAX, NHWC): rows (n, oh, ow), cols (kh, kw, c)
# ---------------------------------------------------------------------------
def _im2col_nhwc(x_nhwc, kh, kw, stride):
    N, H, W, C = x_nhwc.shape
    oh = (H - kh) // stride + 1
    ow = (W - kw) // stride + 1
    h_idx = jnp.arange(oh) * stride
    w_idx = jnp.arange(ow) * stride
    p = x_nhwc[:, h_idx[:, None] + jnp.arange(kh)[None, :], :, :]      # (N,oh,kh,W,C)
    p = p[:, :, :, w_idx[:, None] + jnp.arange(kw)[None, :], :]        # (N,oh,kh,ow,kw,C)
    p = p.transpose(0, 1, 3, 2, 4, 5)                                  # (N,oh,ow,kh,kw,C)
    return p.reshape(N * oh * ow, kh * kw * C), oh, ow


def _conv2d_nhwc(x_nhwc, w_mat, *, stride, kh, kw, out_c_valid):
    """Conv2d (no bias, VALID) via im2col + Pallas matmul+ReLU. NHWC in/out."""
    N = x_nhwc.shape[0]
    patches, oh, ow = _im2col_nhwc(x_nhwc, kh, kw, stride)
    zero_b = jnp.zeros((1, w_mat.shape[1]), jnp.float32)
    y = pallas_matmul(patches.astype(jnp.bfloat16), w_mat, zero_b,
                      relu=True, out_dtype=jnp.bfloat16)
    y = y.reshape(N, oh, ow, w_mat.shape[1])
    return y[..., :out_c_valid]           # drop lane padding before next layer


# ---------------------------------------------------------------------------
# DQN parameters (deterministic synthetic init, shapes match the nn.Module)
# ---------------------------------------------------------------------------
def init_params(key):
    ks = jax.random.split(key, 7)
    s = 0.05
    return {
        "conv1_w": jax.random.normal(ks[0], (32, 4, 8, 8), jnp.float32) * s,
        "conv2_w": jax.random.normal(ks[1], (64, 32, 4, 4), jnp.float32) * s,
        "conv3_w": jax.random.normal(ks[2], (64, 64, 3, 3), jnp.float32) * s,
        "fc1_w": jax.random.normal(ks[3], (512, 64 * 7 * 7), jnp.float32) * s,
        "fc1_b": jax.random.normal(ks[4], (512,), jnp.float32) * s,
        "fc2_w": jax.random.normal(ks[5], (4, 512), jnp.float32) * s,
        "fc2_b": jax.random.normal(ks[6], (4,), jnp.float32) * s,
    }


def prepare_params(params):
    """One-time packing: NHWC-ordered, lane-padded, bf16 weight matrices."""
    def conv_w_mat(w, scale=1.0):
        out_c, in_c, kh, kw = w.shape
        m = (w * scale).transpose(2, 3, 1, 0).reshape(kh * kw * in_c, out_c)
        m = jnp.pad(m, ((0, 0), (0, LANES - out_c)))       # pad N to 128 lanes
        return m.astype(jnp.bfloat16)

    # fc1: permute K from PyTorch's NCHW flatten (c,h,w) to our NHWC (h,w,c).
    fc1_w = params["fc1_w"].reshape(512, 64, 7, 7).transpose(0, 2, 3, 1)
    w1 = fc1_w.reshape(512, 64 * 7 * 7).T.astype(jnp.bfloat16)          # (3136, 512)
    b1 = params["fc1_b"][None, :].astype(jnp.float32)                   # (1, 512)
    w2 = jnp.pad(params["fc2_w"].T, ((0, 0), (0, LANES - 4))).astype(jnp.bfloat16)
    b2 = jnp.pad(params["fc2_b"], (0, LANES - 4))[None, :].astype(jnp.float32)
    return {
        "c1": conv_w_mat(params["conv1_w"], scale=1.0 / 255.0),  # fold /255 here
        "c2": conv_w_mat(params["conv2_w"]),
        "c3": conv_w_mat(params["conv3_w"]),
        "w1": w1, "b1": b1, "w2": w2, "b2": b2,
    }


# ---------------------------------------------------------------------------
# Forward pass (mirrors DQN.forward)
# ---------------------------------------------------------------------------
@jax.jit
def dqn_forward(pp, x_nchw):
    x = x_nchw.transpose(0, 2, 3, 1)                                   # NHWC once
    h = _conv2d_nhwc(x, pp["c1"], stride=4, kh=8, kw=8, out_c_valid=32)  # (N,20,20,32)
    h = _conv2d_nhwc(h, pp["c2"], stride=2, kh=4, kw=4, out_c_valid=64)  # (N,9,9,64)
    h = _conv2d_nhwc(h, pp["c3"], stride=1, kh=3, kw=3, out_c_valid=64)  # (N,7,7,64)
    N = h.shape[0]
    flat = h.reshape(N, 7 * 7 * 64).astype(jnp.bfloat16)   # == x.view(-1, 64*7*7)
    q = pallas_classifier(flat, pp["w1"], pp["b1"], pp["w2"], pp["b2"])
    return q[:, :4]                                        # drop lane pad; f32


if __name__ == "__main__":
    key = jax.random.PRNGKey(0)
    k_param, k_x = jax.random.split(key)
    params = init_params(k_param)
    prepped = prepare_params(params)

    # Spatial must be 84x84 so the flatten to 64*7*7 is exact (same constraint
    # as the PyTorch module); batch kept small.
    batch = 2
    x = jax.random.uniform(k_x, (batch, 4, 84, 84), jnp.float32,
                           minval=0.0, maxval=255.0)

    out = dqn_forward(prepped, x)
    jax.block_until_ready(out)
    assert out.shape == (batch, 4) and out.dtype == jnp.float32
    print("KERNEL_OK")
</pallas_src>

<mosaic_0001>
module attributes {stable_mosaic.version = 11 : i64} {
  func.func @_mm_bias_act_kernel(%arg0: i32, %arg1: memref<256x256xbf16, #tpu.memory_space<vmem>>, %arg2: memref<256x128xbf16, #tpu.memory_space<vmem>>, %arg3: memref<1x128xf32, #tpu.memory_space<vmem>>, %arg4: memref<256x128xbf16, #tpu.memory_space<vmem>>) attributes {dimension_semantics = [#tpu.dimension_semantics<parallel>], iteration_bounds = array<i64: 4>, scalar_prefetch = 0 : i64, scratch_operands = 0 : i64, tpu.core_type = #tpu.core_type<tc>, window_params = [{transform_indices = @transform_0, window_bounds = array<i64: 256, 256>}, {pipeline_mode = #tpu.pipeline_mode<synchronous>, transform_indices = @transform_1, window_bounds = array<i64: 256, 128>}, {pipeline_mode = #tpu.pipeline_mode<synchronous>, transform_indices = @transform_2, window_bounds = array<i64: 1, 128>}, {transform_indices = @transform_3, window_bounds = array<i64: 256, 128>}]} {
    %c0 = arith.constant 0 : index
    %c0_0 = arith.constant 0 : index
    %0 = vector.load %arg1[%c0, %c0_0] : memref<256x256xbf16, #tpu.memory_space<vmem>>, vector<256x256xbf16>
    %c0_1 = arith.constant 0 : index
    %c0_2 = arith.constant 0 : index
    %1 = vector.load %arg2[%c0_1, %c0_2] : memref<256x128xbf16, #tpu.memory_space<vmem>>, vector<256x128xbf16>
    %cst = arith.constant dense<0.000000e+00> : vector<256x128xf32>
    %2 = tpu.matmul %0, %1, %cst {dimension_numbers = #tpu.dot_dimension_numbers<[1], [0], [0], [1], [0, 0, 1, 1], [], []>} : vector<256x256xbf16>, vector<256x128xbf16>, vector<256x128xf32> -> vector<256x128xf32>
    %c0_3 = arith.constant 0 : index
    %c0_4 = arith.constant 0 : index
    %3 = vector.load %arg3[%c0_3, %c0_4] : memref<1x128xf32, #tpu.memory_space<vmem>>, vector<1x128xf32>
    %4 = vector.broadcast %3 : vector<1x128xf32> to vector<256x128xf32>
    %5 = arith.addf %2, %4 : vector<256x128xf32>
    %cst_5 = arith.constant 0.000000e+00 : f32
    %6 = vector.broadcast %cst_5 : f32 to vector<256x128xf32>
    %7 = arith.maximumf %5, %6 : vector<256x128xf32>
    %8 = arith.truncf %7 : vector<256x128xf32> to vector<256x128xbf16>
    %c0_6 = arith.constant 0 : index
    %c0_7 = arith.constant 0 : index
    %9 = vector.load %arg4[%c0_6, %c0_7] : memref<256x128xbf16, #tpu.memory_space<vmem>>, vector<256x128xbf16>
    tpu.vector_store %arg4[%c0_6, %c0_7], %8 {strides = array<i32>} : memref<256x128xbf16, #tpu.memory_space<vmem>>, vector<256x128xbf16>,
    return
  }
  func.func @transform_0(%arg0: i32) -> (i32, i32) {
    %c0_i32 = arith.constant 0 : i32
    %c0_i32_0 = arith.constant 0 : i32
    return %arg0, %c0_i32 : i32, i32
  }
  func.func @transform_1(%arg0: i32) -> (i32, i32) {
    %c0_i32 = arith.constant 0 : i32
    %c0_i32_0 = arith.constant 0 : i32
    %c0_i32_1 = arith.constant 0 : i32
    return %c0_i32, %c0_i32_0 : i32, i32
  }
  func.func @transform_2(%arg0: i32) -> (i32, i32) {
    %c0_i32 = arith.constant 0 : i32
    %c0_i32_0 = arith.constant 0 : i32
    %c0_i32_1 = arith.constant 0 : i32
    return %c0_i32, %c0_i32_0 : i32, i32
  }
  func.func @transform_3(%arg0: i32) -> (i32, i32) {
    %c0_i32 = arith.constant 0 : i32
    %c0_i32_0 = arith.constant 0 : i32
    return %arg0, %c0_i32 : i32, i32
  }
}

module attributes {stable_mosaic.version = 11 : i64} {
  func.func @_mm_bias_act_kernel(%arg0: i32, %arg1: memref<176x512xbf16, #tpu.memory_space<vmem>>, %arg2: memref<512x128xbf16, #tpu.memory_space<vmem>>, %arg3: memref<1x128xf32, #tpu.memory_space<vmem>>, %arg4: memref<176x128xbf16, #tpu.memory_space<vmem>>) attributes {dimension_semantics = [#tpu.dimension_semantics<parallel>], iteration_bounds = array<i64: 1>, scalar_prefetch = 0 : i64, scratch_operands = 0 : i64, tpu.core_type = #tpu.core_type<tc>, window_params = [{transform_indices = @transform_0, window_bounds = array<i64: 176, 512>}, {pipeline_mode = #tpu.pipeline_mode<synchronous>, transform_indices = @transform_1, window_bounds = array<i64: 512, 128>}, {pipeline_mode = #tpu.pipeline_mode<synchronous>, transform_indices = @transform_2, window_bounds = array<i64: 1, 128>}, {transform_indices = @transform_3, window_bounds = array<i64: 176, 128>}]} {
    %c0 = arith.constant 0 : index
    %c0_0 = arith.constant 0 : index
    %0 = vector.load %arg1[%c0, %c0_0] : memref<176x512xbf16, #tpu.memory_space<vmem>>, vector<176x512xbf16>
    %c0_1 = arith.constant 0 : index
    %c0_2 = arith.constant 0 : index
    %1 = vector.load %arg2[%c0_1, %c0_2] : memref<512x128xbf16, #tpu.memory_space<vmem>>, vector<512x128xbf16>
    %cst = arith.constant dense<0.000000e+00> : vector<176x128xf32>
    %2 = tpu.matmul %0, %1, %cst {dimension_numbers = #tpu.dot_dimension_numbers<[1], [0], [0], [1], [0, 0, 1, 1], [], []>} : vector<176x512xbf16>, vector<512x128xbf16>, vector<176x128xf32> -> vector<176x128xf32>
    %c0_3 = arith.constant 0 : index
    %c0_4 = arith.constant 0 : index
    %3 = vector.load %arg3[%c0_3, %c0_4] : memref<1x128xf32, #tpu.memory_space<vmem>>, vector<1x128xf32>
    %4 = vector.broadcast %3 : vector<1x128xf32> to vector<176x128xf32>
    %5 = arith.addf %2, %4 : vector<176x128xf32>
    %cst_5 = arith.constant 0.000000e+00 : f32
    %6 = vector.broadcast %cst_5 : f32 to vector<176x128xf32>
    %7 = arith.maximumf %5, %6 : vector<176x128xf32>
    %8 = arith.truncf %7 : vector<176x128xf32> to vector<176x128xbf16>
    %c0_6 = arith.constant 0 : index
    %c0_7 = arith.constant 0 : index
    %9 = vector.load %arg4[%c0_6, %c0_7] : memref<176x128xbf16, #tpu.memory_space<vmem>>, vector<176x128xbf16>
    tpu.vector_store %arg4[%c0_6, %c0_7], %8 {strides = array<i32>} : memref<176x128xbf16, #tpu.memory_space<vmem>>, vector<176x128xbf16>,
    return
  }
  func.func @transform_0(%arg0: i32) -> (i32, i32) {
    %c0_i32 = arith.constant 0 : i32
    %c0_i32_0 = arith.constant 0 : i32
    return %arg0, %c0_i32 : i32, i32
  }
  func.func @transform_1(%arg0: i32) -> (i32, i32) {
    %c0_i32 = arith.constant 0 : i32
    %c0_i32_0 = arith.constant 0 : i32
    %c0_i32_1 = arith.constant 0 : i32
    return %c0_i32, %c0_i32_0 : i32, i32
  }
  func.func @transform_2(%arg0: i32) -> (i32, i32) {
    %c0_i32 = arith.constant 0 : i32
    %c0_i32_0 = arith.constant 0 : i32
    %c0_i32_1 = arith.constant 0 : i32
    return %c0_i32, %c0_i32_0 : i32, i32
  }
  func.func @transform_3(%arg0: i32) -> (i32, i32) {
    %c0_i32 = arith.constant 0 : i32
    %c0_i32_0 = arith.constant 0 : i32
    return %arg0, %c0_i32 : i32, i32
  }
}

module attributes {stable_mosaic.version = 11 : i64} {
  func.func @_mm_bias_act_kernel(%arg0: i32, %arg1: memref<112x576xbf16, #tpu.memory_space<vmem>>, %arg2: memref<576x128xbf16, #tpu.memory_space<vmem>>, %arg3: memref<1x128xf32, #tpu.memory_space<vmem>>, %arg4: memref<112x128xbf16, #tpu.memory_space<vmem>>) attributes {dimension_semantics = [#tpu.dimension_semantics<parallel>], iteration_bounds = array<i64: 1>, scalar_prefetch = 0 : i64, scratch_operands = 0 : i64, tpu.core_type = #tpu.core_type<tc>, window_params = [{transform_indices = @transform_0, window_bounds = array<i64: 112, 576>}, {pipeline_mode = #tpu.pipeline_mode<synchronous>, transform_indices = @transform_1, window_bounds = array<i64: 576, 128>}, {pipeline_mode = #tpu.pipeline_mode<synchronous>, transform_indices = @transform_2, window_bounds = array<i64: 1, 128>}, {transform_indices = @transform_3, window_bounds = array<i64: 112, 128>}]} {
    %c0 = arith.constant 0 : index
    %c0_0 = arith.constant 0 : index
    %0 = vector.load %arg1[%c0, %c0_0] : memref<112x576xbf16, #tpu.memory_space<vmem>>, vector<112x576xbf16>
    %c0_1 = arith.constant 0 : index
    %c0_2 = arith.constant 0 : index
    %1 = vector.load %arg2[%c0_1, %c0_2] : memref<576x128xbf16, #tpu.memory_space<vmem>>, vector<576x128xbf16>
    %cst = arith.constant dense<0.000000e+00> : vector<112x128xf32>
    %2 = tpu.matmul %0, %1, %cst {dimension_numbers = #tpu.dot_dimension_numbers<[1], [0], [0], [1], [0, 0, 1, 1], [], []>} : vector<112x576xbf16>, vector<576x128xbf16>, vector<112x128xf32> -> vector<112x128xf32>
    %c0_3 = arith.constant 0 : index
    %c0_4 = arith.constant 0 : index
    %3 = vector.load %arg3[%c0_3, %c0_4] : memref<1x128xf32, #tpu.memory_space<vmem>>, vector<1x128xf32>
    %4 = vector.broadcast %3 : vector<1x128xf32> to vector<112x128xf32>
    %5 = arith.addf %2, %4 : vector<112x128xf32>
    %cst_5 = arith.constant 0.000000e+00 : f32
    %6 = vector.broadcast %cst_5 : f32 to vector<112x128xf32>
    %7 = arith.maximumf %5, %6 : vector<112x128xf32>
    %8 = arith.truncf %7 : vector<112x128xf32> to vector<112x128xbf16>
    %c0_6 = arith.constant 0 : index
    %c0_7 = arith.constant 0 : index
    %9 = vector.load %arg4[%c0_6, %c0_7] : memref<112x128xbf16, #tpu.memory_space<vmem>>, vector<112x128xbf16>
    tpu.vector_store %arg4[%c0_6, %c0_7], %8 {strides = array<i32>} : memref<112x128xbf16, #tpu.memory_space<vmem>>, vector<112x128xbf16>,
    return
  }
  func.func @transform_0(%arg0: i32) -> (i32, i32) {
    %c0_i32 = arith.constant 0 : i32
    %c0_i32_0 = arith.constant 0 : i32
    return %arg0, %c0_i32 : i32, i32
  }
  func.func @transform_1(%arg0: i32) -> (i32, i32) {
    %c0_i32 = arith.constant 0 : i32
    %c0_i32_0 = arith.constant 0 : i32
    %c0_i32_1 = arith.constant 0 : i32
    return %c0_i32, %c0_i32_0 : i32, i32
  }
  func.func @transform_2(%arg0: i32) -> (i32, i32) {
    %c0_i32 = arith.constant 0 : i32
    %c0_i32_0 = arith.constant 0 : i32
    %c0_i32_1 = arith.constant 0 : i32
    return %c0_i32, %c0_i32_0 : i32, i32
  }
  func.func @transform_3(%arg0: i32) -> (i32, i32) {
    %c0_i32 = arith.constant 0 : i32
    %c0_i32_0 = arith.constant 0 : i32
    return %arg0, %c0_i32 : i32, i32
  }
}

module attributes {stable_mosaic.version = 11 : i64} {
  func.func @_classifier_kernel(%arg0: i32, %arg1: memref<16x3136xbf16, #tpu.memory_space<vmem>>, %arg2: memref<3136x512xbf16, #tpu.memory_space<vmem>>, %arg3: memref<1x512xf32, #tpu.memory_space<vmem>>, %arg4: memref<512x128xbf16, #tpu.memory_space<vmem>>, %arg5: memref<1x128xf32, #tpu.memory_space<vmem>>, %arg6: memref<16x128xf32, #tpu.memory_space<vmem>>) attributes {dimension_semantics = [#tpu.dimension_semantics<parallel>], iteration_bounds = array<i64: 1>, scalar_prefetch = 0 : i64, scratch_operands = 0 : i64, tpu.core_type = #tpu.core_type<tc>, window_params = [{transform_indices = @transform_0, window_bounds = array<i64: 16, 3136>}, {pipeline_mode = #tpu.pipeline_mode<synchronous>, transform_indices = @transform_1, window_bounds = array<i64: 3136, 512>}, {pipeline_mode = #tpu.pipeline_mode<synchronous>, transform_indices = @transform_2, window_bounds = array<i64: 1, 512>}, {pipeline_mode = #tpu.pipeline_mode<synchronous>, transform_indices = @transform_3, window_bounds = array<i64: 512, 128>}, {pipeline_mode = #tpu.pipeline_mode<synchronous>, transform_indices = @transform_4, window_bounds = array<i64: 1, 128>}, {transform_indices = @transform_5, window_bounds = array<i64: 16, 128>}]} {
    %c0 = arith.constant 0 : index
    %c0_0 = arith.constant 0 : index
    %0 = vector.load %arg1[%c0, %c0_0] : memref<16x3136xbf16, #tpu.memory_space<vmem>>, vector<16x3136xbf16>
    %c0_1 = arith.constant 0 : index
    %c0_2 = arith.constant 0 : index
    %1 = vector.load %arg2[%c0_1, %c0_2] : memref<3136x512xbf16, #tpu.memory_space<vmem>>, vector<3136x512xbf16>
    %cst = arith.constant dense<0.000000e+00> : vector<16x512xf32>
    %2 = tpu.matmul %0, %1, %cst {dimension_numbers = #tpu.dot_dimension_numbers<[1], [0], [0], [1], [0, 0, 1, 1], [], []>} : vector<16x3136xbf16>, vector<3136x512xbf16>, vector<16x512xf32> -> vector<16x512xf32>
    %c0_3 = arith.constant 0 : index
    %c0_4 = arith.constant 0 : index
    %3 = vector.load %arg3[%c0_3, %c0_4] : memref<1x512xf32, #tpu.memory_space<vmem>>, vector<1x512xf32>
    %4 = vector.broadcast %3 : vector<1x512xf32> to vector<16x512xf32>
    %5 = arith.addf %2, %4 : vector<16x512xf32>
    %cst_5 = arith.constant 0.000000e+00 : f32
    %6 = vector.broadcast %cst_5 : f32 to vector<16x512xf32>
    %7 = arith.maximumf %5, %6 : vector<16x512xf32>
    %8 = arith.truncf %7 : vector<16x512xf32> to vector<16x512xbf16>
    %c0_6 = arith.constant 0 : index
    %c0_7 = arith.constant 0 : index
    %9 = vector.load %arg4[%c0_6, %c0_7] : memref<512x128xbf16, #tpu.memory_space<vmem>>, vector<512x128xbf16>
    %cst_8 = arith.constant dense<0.000000e+00> : vector<16x128xf32>
    %10 = tpu.matmul %8, %9, %cst_8 {dimension_numbers = #tpu.dot_dimension_numbers<[1], [0], [0], [1], [0, 0, 1, 1], [], []>} : vector<16x512xbf16>, vector<512x128xbf16>, vector<16x128xf32> -> vector<16x128xf32>
    %c0_9 = arith.constant 0 : index
    %c0_10 = arith.constant 0 : index
    %11 = vector.load %arg5[%c0_9, %c0_10] : memref<1x128xf32, #tpu.memory_space<vmem>>, vector<1x128xf32>
    %12 = vector.broadcast %11 : vector<1x128xf32> to vector<16x128xf32>
    %13 = arith.addf %10, %12 : vector<16x128xf32>
    %c0_11 = arith.constant 0 : index
    %c0_12 = arith.constant 0 : index
    %14 = vector.load %arg6[%c0_11, %c0_12] : memref<16x128xf32, #tpu.memory_space<vmem>>, vector<16x128xf32>
    tpu.vector_store %arg6[%c0_11, %c0_12], %13 {strides = array<i32>} : memref<16x128xf32, #tpu.memory_space<vmem>>, vector<16x128xf32>,
    return
  }
  func.func @transform_0(%arg0: i32) -> (i32, i32) {
    %c0_i32 = arith.constant 0 : i32
    %c0_i32_0 = arith.constant 0 : i32
    return %arg0, %c0_i32 : i32, i32
  }
  func.func @transform_1(%arg0: i32) -> (i32, i32) {
    %c0_i32 = arith.constant 0 : i32
    %c0_i32_0 = arith.constant 0 : i32
    %c0_i32_1 = arith.constant 0 : i32
    return %c0_i32, %c0_i32_0 : i32, i32
  }
  func.func @transform_2(%arg0: i32) -> (i32, i32) {
    %c0_i32 = arith.constant 0 : i32
    %c0_i32_0 = arith.constant 0 : i32
    %c0_i32_1 = arith.constant 0 : i32
    return %c0_i32, %c0_i32_0 : i32, i32
  }
  func.func @transform_3(%arg0: i32) -> (i32, i32) {
    %c0_i32 = arith.constant 0 : i32
    %c0_i32_0 = arith.constant 0 : i32
    %c0_i32_1 = arith.constant 0 : i32
    return %c0_i32, %c0_i32_0 : i32, i32
  }
  func.func @transform_4(%arg0: i32) -> (i32, i32) {
    %c0_i32 = arith.constant 0 : i32
    %c0_i32_0 = arith.constant 0 : i32
    %c0_i32_1 = arith.constant 0 : i32
    return %c0_i32, %c0_i32_0 : i32, i32
  }
  func.func @transform_5(%arg0: i32) -> (i32, i32) {
    %c0_i32 = arith.constant 0 : i32
    %c0_i32_0 = arith.constant 0 : i32
    return %arg0, %c0_i32 : i32, i32
  }
}

</mosaic_0001>

<bundles_post_ra>
// kernel: dqn_forward.4
= control target key start
LH: loop header
LB: loop body
LE: loop exit
PB: predicated region body
PF: predicated region fallthrough
CT: control target
= control target key end

     0   :  { %s1363_s12 = smov 0   ;;  %s1521_s0 = inlined_call_operand.vmem [shape: bf16[1024,256], index: 0, kind: input, shape index: {}]   ;;  %s1522_s1 = inlined_call_operand.vmem [shape: bf16[256,128], index: 1, kind: input, shape index: {}]   ;;  %s1523_s2 = inlined_call_operand.vmem [shape: f32[1,128], index: 2, kind: input, shape index: {}]   ;;  %s1524_s3 = inlined_call_operand.vmem [shape: bf16[1024,128], index: 3, kind: output, shape index: {}]  }
   0x1 LB: > { %s914_s13 = sadd.s32 4294967295, %s1341_s12   ;;  %p918_p0 = scmp.ge.s32.totalorder %s1341_s12, 1  ;;  %s1341_s12 = sphi %s1363_s12, %s13_s12  }
   0x2   : > { %p139_p1 = scmp.lt.s32.totalorder %s1341_s12, 5 }
   0x4   : > { %p140_p2 = pnand %p918_p0, %p139_p1 }
   0x5   : > { %v1271_v0 = vld [vmem:[%s1522_s1 + $0x40] sm:$0xff] (!%p140_p2)   ;;  %s919_s16 = sshll.u32 (!%p140_p2), %s914_s13, 5  ;;  %v1273_v2 = vld [vmem:[%s1522_s1 + $0x48] sm:$0xff] (!%p140_p2)   ;;  %v1275_v4 = vld [vmem:[%s1522_s1 + $0x50] sm:$0xff] (!%p140_p2)  }
   0x6   : > { %143 = sbr.rel (%p140_p2) target bundleno = 319 (0x13f), region = 32  ;;  %v1272_v1 = vld [vmem:[%s1522_s1] sm:$0xff] (!%p140_p2)   ;;  %1135 = vmatprep.subr.bf16.mxu0 (!%p140_p2), %v1271_v0  ;;  %1247 = vmatprep.subr.bf16.mxu1 (!%p140_p2), %v1271_v0  ;;  %v1274_v3 = vld [vmem:[%s1522_s1 + $0x8] sm:$0xff] (!%p140_p2)   ;;  %p165_p3 = scmp.lt.s32.totalorder (!%p140_p2), %s919_s16, 127  ;;  %v1276_v5 = vld [vmem:[%s1522_s1 + $0x10] sm:$0xff] (!%p140_p2)  }
   0x7   : > { %1136 = vmatpush3.bf16.msra.mxu0 (!%p140_p2), %v1272_v1  ;;  %1255 = vmatpush3.bf16.msra.mxu1 (!%p140_p2), %v1272_v1  ;;  %v1277_v6 = vld [vmem:[%s1522_s1 + $0x58] sm:$0xff] (!%p140_p2)   ;;  %v1279_v8 = vld [vmem:[%s1522_s1 + $0x60] sm:$0xff] (!%p140_p2)   ;;  %v1281_v10 = vld [vmem:[%s1522_s1 + $0x68] sm:$0xff] (!%p140_p2)  }
   0x8   : > { %1137 = vmatprep.subr.bf16.mxu0 (!%p140_p2), %v1273_v2  ;;  %1248 = vmatprep.subr.bf16.mxu1 (!%p140_p2), %v1273_v2  ;;  %v1278_v7 = vld [vmem:[%s1522_s1 + $0x18] sm:$0xff] (!%p140_p2)   ;;  %v1280_v9 = vld [vmem:[%s1522_s1 + $0x20] sm:$0xff] (!%p140_p2)   ;;  %v1282_v13 = vld [vmem:[%s1522_s1 + $0x28] sm:$0xff] (!%p140_p2)  }
   0x9   : > { %v1283_v14 = vld [vmem:[%s1522_s1 + $0x70] sm:$0xff] (!%p140_p2)   ;;  %v1285_v16 = vld [vmem:[%s1522_s1 + $0x78] sm:$0xff] (!%p140_p2)   ;;  %v1462_v50 = vld [vmem:[%s1523_s2] ss:$0 sm:$0xff] (!%p140_p2) }
   0xa   : > { %v1284_v15 = vld [vmem:[%s1522_s1 + $0x30] sm:$0xff] (!%p140_p2)   ;;  %v1286_v17 = vld [vmem:[%s1522_s1 + $0x38] sm:$0xff] (!%p140_p2)  }
   0xb   : > { %1138 = vmatpush3.bf16.msra.mxu0 (!%p140_p2), %v1274_v3  ;;  %1256 = vmatpush3.bf16.msra.mxu1 (!%p140_p2), %v1274_v3 }
   0xc   : > { %1139 = vmatprep.subr.bf16.mxu0 (!%p140_p2), %v1275_v4  ;;  %1249 = vmatprep.subr.bf16.mxu1 (!%p140_p2), %v1275_v4 }
   0xd   : > { %s1526_s16 = smov (!%p165_p3, %s919_s16), 127 }
   0xe   : > { %s1007_s4 = sshll.u32 %s1526_s16, 3  ;;  %s923_s28 = sshll.u32 %s1526_s16, 2 }
   0xf   : > { %1140 = vmatpush3.bf16.msra.mxu0 %v1276_v5  ;;  %1257 = vmatpush3.bf16.msra.mxu1 %v1276_v5  ;;  %s1404_s9 = scalar_lea.vmem %s1521_s0, %s1007_s4  ;;  %s1472_s4 = scalar_lea.vmem %s1524_s3, %s923_s28 }
  0x10   : > { %1141 = vmatprep.subr.bf16.mxu0 %v1277_v6  ;;  %1250 = vmatprep.subr.bf16.mxu1 %v1277_v6  ;;  %v1289_v11 = vld [vmem:[%s1404_s9 + $0x4] ss:$8 sps:$4 sm:$0xff]   ;;  %v1287_v18 = vld [vmem:[%s1404_s9] ss:$8 sps:$4 sm:$0xff]   ;;  %v1293_v20 = vld [vmem:[%s1404_s9 + $0x14] ss:$8 sps:$4 sm:$0xff]  }
  0x11   : > { %v1292_v12 = vld [vmem:[%s1404_s9 + $0x84] ss:$8 sps:$4 sm:$0xff]   ;;  %537 = vmatprep.mubr.bf16.mxu0 %v1289_v11  ;;  %v1290_v19 = vld [vmem:[%s1404_s9 + $0x80] ss:$8 sps:$4 sm:$0xff]   ;;  %v1295_v21 = vld [vmem:[%s1404_s9 + $0x94] ss:$8 sps:$4 sm:$0xff]  }
  0x12   : > { %601 = vmatprep.mubr.bf16.mxu1 %v1292_v12  ;;  %v1297_v22 = vld [vmem:[%s1404_s9 + $0x10] ss:$8 sps:$4 sm:$0xff]   ;;  %v1299_v24 = vld [vmem:[%s1404_s9 + $0x24] ss:$8 sps:$4 sm:$0xff]   ;;  %v1303_v26 = vld [vmem:[%s1404_s9 + $0x20] ss:$8 sps:$4 sm:$0xff]  }
  0x13   : > { %1142 = vmatpush3.bf16.msra.mxu0 %v1278_v7  ;;  %1258 = vmatpush3.bf16.msra.mxu1 %v1278_v7  ;;  %v1298_v23 = vld [vmem:[%s1404_s9 + $0x90] ss:$8 sps:$4 sm:$0xff]   ;;  %v1301_v25 = vld [vmem:[%s1404_s9 + $0xa4] ss:$8 sps:$4 sm:$0xff]   ;;  %v1304_v27 = vld [vmem:[%s1404_s9 + $0xa0] ss:$8 sps:$4 sm:$0xff]  }
  0x14   : > { %1143 = vmatprep.subr.bf16.mxu0 %v1279_v8  ;;  %1251 = vmatprep.subr.bf16.mxu1 %v1279_v8  ;;  %v1305_v28 = vld [vmem:[%s1404_s9 + $0x34] ss:$8 sps:$4 sm:$0xff]   ;;  %v1309_v30 = vld [vmem:[%s1404_s9 + $0x30] ss:$8 sps:$4 sm:$0xff]   ;;  %v1311_v32 = vld [vmem:[%s1404_s9 + $0x44] ss:$8 sps:$4 sm:$0xff]  }
  0x15   : > { %v1307_v29 = vld [vmem:[%s1404_s9 + $0xb4] ss:$8 sps:$4 sm:$0xff]   ;;  %v1310_v31 = vld [vmem:[%s1404_s9 + $0xb0] ss:$8 sps:$4 sm:$0xff]   ;;  %v1313_v33 = vld [vmem:[%s1404_s9 + $0xc4] ss:$8 sps:$4 sm:$0xff]  }
  0x16   : > { %v1315_v34 = vld [vmem:[%s1404_s9 + $0x40] ss:$8 sps:$4 sm:$0xff]   ;;  %v1317_v36 = vld [vmem:[%s1404_s9 + $0x54] ss:$8 sps:$4 sm:$0xff]   ;;  %v1321_v38 = vld [vmem:[%s1404_s9 + $0x50] ss:$8 sps:$4 sm:$0xff]  }
  0x17   : > { %1144 = vmatpush3.bf16.msra.mxu0 %v1280_v9  ;;  %1259 = vmatpush3.bf16.msra.mxu1 %v1280_v9  ;;  %v1316_v35 = vld [vmem:[%s1404_s9 + $0xc0] ss:$8 sps:$4 sm:$0xff]   ;;  %v1319_v37 = vld [vmem:[%s1404_s9 + $0xd4] ss:$8 sps:$4 sm:$0xff]   ;;  %v1322_v39 = vld [vmem:[%s1404_s9 + $0xd0] ss:$8 sps:$4 sm:$0xff]  }
  0x18   : > { %1145 = vmatprep.subr.bf16.mxu0 %v1281_v10  ;;  %1252 = vmatprep.subr.bf16.mxu1 %v1281_v10  ;;  %v1323_v40 = vld [vmem:[%s1404_s9 + $0x64] ss:$8 sps:$4 sm:$0xff]   ;;  %v1327_v42 = vld [vmem:[%s1404_s9 + $0x60] ss:$8 sps:$4 sm:$0xff]   ;;  %v1329_v44 = vld [vmem:[%s1404_s9 + $0x74] ss:$8 sps:$4 sm:$0xff]  }
  0x19   : > { %v1325_v41 = vld [vmem:[%s1404_s9 + $0xe4] ss:$8 sps:$4 sm:$0xff]   ;;  %v1328_v43 = vld [vmem:[%s1404_s9 + $0xe0] ss:$8 sps:$4 sm:$0xff]   ;;  %v1331_v45 = vld [vmem:[%s1404_s9 + $0xf4] ss:$8 sps:$4 sm:$0xff]  }
  0x1a   : > { %v1333_v46 = vld [vmem:[%s1404_s9 + $0x70] ss:$8 sps:$4 sm:$0xff]  }
  0x1b   : > { %1146 = vmatpush3.bf16.msra.mxu0 %v1282_v13  ;;  %1260 = vmatpush3.bf16.msra.mxu1 %v1282_v13  ;;  %v1334_v47 = vld [vmem:[%s1404_s9 + $0xf0] ss:$8 sps:$4 sm:$0xff]  }
  0x1c   : > { %1147 = vmatprep.subr.bf16.mxu0 %v1283_v14  ;;  %1253 = vmatprep.subr.bf16.mxu1 %v1283_v14 }
  0x1f   : > { %1148 = vmatpush3.bf16.msra.mxu0 %v1284_v15  ;;  %1261 = vmatpush3.bf16.msra.mxu1 %v1284_v15 }
  0x20   : > { %1149 = vmatprep.subr.bf16.mxu0 %v1285_v16  ;;  %1254 = vmatprep.subr.bf16.mxu1 %v1285_v16 }
  0x23   : > { %1150 = vmatpush3.bf16.msra.mxu0 %v1286_v17  ;;  %1262 = vmatpush3.bf16.msra.mxu1 %v1286_v17 }
  0x26   : > { %538 = vmatmul.mubr.bf16.vlgmr.msra.gmra.mrb[0].mxu0 %v1287_v18  ;;  %602 = vmatmul.mubr.bf16.vlgmr.msra.gmra.mrb[0].mxu1 %v1290_v19 }
  0x27   : > { %545 = vmatprep.mubr.bf16.mxu0 %v1293_v20  ;;  %609 = vmatprep.mubr.bf16.mxu1 %v1295_v21 }
  0x2e   : > { %546 = vmatmul.mubr.bf16.gmra.mrb[4].mxu0 %v1297_v22  ;;  %610 = vmatmul.mubr.bf16.gmra.mrb[4].mxu1 %v1298_v23 }
  0x2f   : > { %553 = vmatprep.mubr.bf16.mxu0 %v1299_v24  ;;  %617 = vmatprep.mubr.bf16.mxu1 %v1301_v25 }
  0x36   : > { %554 = vmatmul.mubr.bf16.gmra.mrb[8].mxu0 %v1303_v26  ;;  %618 = vmatmul.mubr.bf16.gmra.mrb[8].mxu1 %v1304_v27 }
  0x37   : > { %561 = vmatprep.mubr.bf16.mxu0 %v1305_v28  ;;  %625 = vmatprep.mubr.bf16.mxu1 %v1307_v29 }
  0x3e   : > { %562 = vmatmul.mubr.bf16.gmra.mrb[12].mxu0 %v1309_v30  ;;  %626 = vmatmul.mubr.bf16.gmra.mrb[12].mxu1 %v1310_v31 }
  0x3f   : > { %569 = vmatprep.mubr.bf16.mxu0 %v1311_v32  ;;  %633 = vmatprep.mubr.bf16.mxu1 %v1313_v33 }
  0x46   : > { %570 = vmatmul.mubr.bf16.gmra.mrb[16].mxu0 %v1315_v34  ;;  %634 = vmatmul.mubr.bf16.gmra.mrb[16].mxu1 %v1316_v35 }
  0x47   : > { %577 = vmatprep.mubr.bf16.mxu0 %v1317_v36  ;;  %641 = vmatprep.mubr.bf16.mxu1 %v1319_v37 }
  0x4e   : > { %578 = vmatmul.mubr.bf16.gmra.mrb[20].mxu0 %v1321_v38  ;;  %642 = vmatmul.mubr.bf16.gmra.mrb[20].mxu1 %v1322_v39 }
  0x4f   : > { %585 = vmatprep.mubr.bf16.mxu0 %v1323_v40  ;;  %649 = vmatprep.mubr.bf16.mxu1 %v1325_v41 }
  0x56   : > { %586 = vmatmul.mubr.bf16.gmra.mrb[24].mxu0 %v1327_v42  ;;  %650 = vmatmul.mubr.bf16.gmra.mrb[24].mxu1 %v1328_v43 }
  0x57   : > { %593 = vmatprep.mubr.bf16.mxu0 %v1329_v44  ;;  %657 = vmatprep.mubr.bf16.mxu1 %v1331_v45 }
  0x5e   : > { %594 = vmatmul.mubr.bf16.gmra.mrb[28].mxu0 %v1333_v46  ;;  %658 = vmatmul.mubr.bf16.gmra.mrb[28].mxu1 %v1334_v47 }
  0xf9   : > { %v1151_v48 = vpop.f32.mrb[0].mxu0  ;;  %v1199_v49 = vpop.f32.mrb[0].mxu1 }
  0xfa   : > { %v1152_v51 = vpop.f32.mrb[1].mxu0  ;;  %v1200_v52 = vpop.f32.mrb[1].mxu1 }
  0xfb   : > { %v1153_v53 = vadd.f32 %v1152_v51, %v1151_v48  ;;  %v1201_v54 = vadd.f32 %v1200_v52, %v1199_v49  ;;  %v1154_v55 = vpop.f32.mrb[2].mxu0  ;;  %v1202_v56 = vpop.f32.mrb[2].mxu1 }
  0xfc   : > { %v1155_v57 = vpop.f32.mrb[3].mxu0  ;;  %v1203_v58 = vpop.f32.mrb[3].mxu1 }
  0xfd   : > { %v540_v59 = vadd.f32 %v1153_v53, %v1462_v50  ;;  %v604_v60 = vadd.f32 %v1201_v54, %v1462_v50  ;;  %v1156_v61 = vadd.f32 %v1155_v57, %v1154_v55  ;;  %v1204_v62 = vadd.f32 %v1203_v58, %v1202_v56 }
  0xff   : > { %v543_v63 = vadd.f32 %v1156_v61, %v1462_v50  ;;  %v607_v0 = vadd.f32 %v1204_v62, %v1462_v50  ;;  %v666_v1 = vmax.f32 %v540_v59, 0.0  ;;  %v682_v2 = vmax.f32 %v604_v60, 0.0 }
 0x101   : > { %v667_v3 = vmax.f32 %v543_v63, 0.0  ;;  %v683_v4 = vmax.f32 %v607_v0, 0.0  ;;  %v1157_v5 = vpop.f32.mrb[4].mxu0  ;;  %v1205_v6 = vpop.f32.mrb[4].mxu1 }
 0x102   : > { %v1158_v7 = vpop.f32.mrb[5].mxu0  ;;  %v1206_v8 = vpop.f32.mrb[5].mxu1 }
 0x103   : > { %v1043_v9 = vpack.c.bf16 %v667_v3, %v666_v1  ;;  %v1083_v10 = vpack.c.bf16 %v683_v4, %v682_v2  ;;  %v1159_v11 = vadd.f32 %v1158_v7, %v1157_v5  ;;  %v1207_v12 = vadd.f32 %v1206_v8, %v1205_v6  ;;  %v1160_v13 = vpop.f32.mrb[6].mxu0  ;;  %v1208_v14 = vpop.f32.mrb[6].mxu1 }
 0x104   : > { %v1161_v15 = vpop.f32.mrb[7].mxu0  ;;  %v1209_v16 = vpop.f32.mrb[7].mxu1 }
 0x105   : > { %1044 = vst [vmem:[%s1472_s4] sm:$0xff] %v1043_v9   ;;  %1127 = vst [vmem:[%s1472_s4 + $0x40] sm:$0xff] %v1083_v10   ;;  %v548_v17 = vadd.f32 %v1159_v11, %v1462_v50  ;;  %v612_v18 = vadd.f32 %v1207_v12, %v1462_v50  ;;  %v1162_v19 = vadd.f32 %v1161_v15, %v1160_v13 }
 0x106   : > { %v1210_v20 = vadd.f32 %v1209_v16, %v1208_v14 }
 0x107   : > { %v551_v21 = vadd.f32 %v1162_v19, %v1462_v50  ;;  %v668_v23 = vmax.f32 %v548_v17, 0.0  ;;  %v684_v24 = vmax.f32 %v612_v18, 0.0 }
 0x108   : > { %v615_v22 = vadd.f32 %v1210_v20, %v1462_v50 }
 0x109   : > { %v669_v25 = vmax.f32 %v551_v21, 0.0  ;;  %v1163_v27 = vpop.f32.mrb[8].mxu0  ;;  %v1211_v28 = vpop.f32.mrb[8].mxu1 }
 0x10a   : > { %v685_v26 = vmax.f32 %v615_v22, 0.0  ;;  %v1164_v29 = vpop.f32.mrb[9].mxu0  ;;  %v1212_v30 = vpop.f32.mrb[9].mxu1 }
 0x10b   : > { %v1048_v31 = vpack.c.bf16 %v669_v25, %v668_v23  ;;  %v1165_v33 = vadd.f32 %v1164_v29, %v1163_v27  ;;  %v1213_v34 = vadd.f32 %v1212_v30, %v1211_v28  ;;  %v1166_v35 = vpop.f32.mrb[10].mxu0  ;;  %v1214_v36 = vpop.f32.mrb[10].mxu1 }
 0x10c   : > { %v1088_v32 = vpack.c.bf16 %v685_v26, %v684_v24  ;;  %v1167_v37 = vpop.f32.mrb[11].mxu0  ;;  %v1215_v38 = vpop.f32.mrb[11].mxu1 }
 0x10d   : > { %1120 = vst [vmem:[%s1472_s4 + $0x8] sm:$0xff] %v1048_v31   ;;  %v556_v39 = vadd.f32 %v1165_v33, %v1462_v50  ;;  %v620_v40 = vadd.f32 %v1213_v34, %v1462_v50  ;;  %v1168_v41 = vadd.f32 %v1167_v37, %v1166_v35  ;;  %v1216_v42 = vadd.f32 %v1215_v38, %v1214_v36 }
 0x10e   : > { %1128 = vst [vmem:[%s1472_s4 + $0x48] sm:$0xff] %v1088_v32  }
 0x10f   : > { %v559_v43 = vadd.f32 %v1168_v41, %v1462_v50  ;;  %v623_v44 = vadd.f32 %v1216_v42, %v1462_v50  ;;  %v670_v45 = vmax.f32 %v556_v39, 0.0  ;;  %v686_v46 = vmax.f32 %v620_v40, 0.0 }
 0x111   : > { %v671_v47 = vmax.f32 %v559_v43, 0.0  ;;  %v687_v48 = vmax.f32 %v623_v44, 0.0  ;;  %v1169_v49 = vpop.f32.mrb[12].mxu0  ;;  %v1217_v51 = vpop.f32.mrb[12].mxu1 }
 0x112   : > { %v1170_v52 = vpop.f32.mrb[13].mxu0  ;;  %v1218_v53 = vpop.f32.mrb[13].mxu1 }
 0x113   : > { %v1053_v54 = vpack.c.bf16 %v671_v47, %v670_v45  ;;  %v1093_v55 = vpack.c.bf16 %v687_v48, %v686_v46  ;;  %v1171_v56 = vadd.f32 %v1170_v52, %v1169_v49  ;;  %v1219_v57 = vadd.f32 %v1218_v53, %v1217_v51  ;;  %v1172_v58 = vpop.f32.mrb[14].mxu0  ;;  %v1220_v59 = vpop.f32.mrb[14].mxu1 }
 0x114   : > { %v1173_v60 = vpop.f32.mrb[15].mxu0  ;;  %v1221_v61 = vpop.f32.mrb[15].mxu1 }
 0x115   : > { %1121 = vst [vmem:[%s1472_s4 + $0x10] sm:$0xff] %v1053_v54   ;;  %1129 = vst [vmem:[%s1472_s4 + $0x50] sm:$0xff] %v1093_v55   ;;  %v564_v62 = vadd.f32 %v1171_v56, %v1462_v50  ;;  %v628_v63 = vadd.f32 %v1219_v57, %v1462_v50  ;;  %v1174_v0 = vadd.f32 %v1173_v60, %v1172_v58 }
 0x116   : > { %v1222_v1 = vadd.f32 %v1221_v61, %v1220_v59 }
 0x117   : > { %v567_v2 = vadd.f32 %v1174_v0, %v1462_v50  ;;  %v672_v4 = vmax.f32 %v564_v62, 0.0  ;;  %v688_v5 = vmax.f32 %v628_v63, 0.0 }
 0x118   : > { %v631_v3 = vadd.f32 %v1222_v1, %v1462_v50 }
 0x119   : > { %v673_v6 = vmax.f32 %v567_v2, 0.0  ;;  %v1175_v8 = vpop.f32.mrb[16].mxu0  ;;  %v1223_v9 = vpop.f32.mrb[16].mxu1 }
 0x11a   : > { %v689_v7 = vmax.f32 %v631_v3, 0.0  ;;  %v1176_v10 = vpop.f32.mrb[17].mxu0  ;;  %v1224_v11 = vpop.f32.mrb[17].mxu1 }
 0x11b   : > { %v1058_v12 = vpack.c.bf16 %v673_v6, %v672_v4  ;;  %v1177_v14 = vadd.f32 %v1176_v10, %v1175_v8  ;;  %v1225_v15 = vadd.f32 %v1224_v11, %v1223_v9  ;;  %v1178_v16 = vpop.f32.mrb[18].mxu0  ;;  %v1226_v17 = vpop.f32.mrb[18].mxu1 }
 0x11c   : > { %v1098_v13 = vpack.c.bf16 %v689_v7, %v688_v5  ;;  %v1179_v18 = vpop.f32.mrb[19].mxu0  ;;  %v1227_v19 = vpop.f32.mrb[19].mxu1 }
 0x11d   : > { %1122 = vst [vmem:[%s1472_s4 + $0x18] sm:$0xff] %v1058_v12   ;;  %v572_v20 = vadd.f32 %v1177_v14, %v1462_v50  ;;  %v636_v21 = vadd.f32 %v1225_v15, %v1462_v50  ;;  %v1180_v22 = vadd.f32 %v1179_v18, %v1178_v16  ;;  %v1228_v23 = vadd.f32 %v1227_v19, %v1226_v17 }
 0x11e   : > { %1130 = vst [vmem:[%s1472_s4 + $0x58] sm:$0xff] %v1098_v13  }
 0x11f   : > { %v575_v24 = vadd.f32 %v1180_v22, %v1462_v50  ;;  %v639_v25 = vadd.f32 %v1228_v23, %v1462_v50  ;;  %v674_v26 = vmax.f32 %v572_v20, 0.0  ;;  %v690_v27 = vmax.f32 %v636_v21, 0.0 }
 0x121   : > { %v675_v28 = vmax.f32 %v575_v24, 0.0  ;;  %v691_v29 = vmax.f32 %v639_v25, 0.0  ;;  %v1181_v30 = vpop.f32.mrb[20].mxu0  ;;  %v1229_v31 = vpop.f32.mrb[20].mxu1 }
 0x122   : > { %v1182_v32 = vpop.f32.mrb[21].mxu0  ;;  %v1230_v33 = vpop.f32.mrb[21].mxu1 }
 0x123   : > { %v1063_v34 = vpack.c.bf16 %v675_v28, %v674_v26  ;;  %v1103_v35 = vpack.c.bf16 %v691_v29, %v690_v27  ;;  %v1183_v36 = vadd.f32 %v1182_v32, %v1181_v30  ;;  %v1231_v37 = vadd.f32 %v1230_v33, %v1229_v31  ;;  %v1184_v38 = vpop.f32.mrb[22].mxu0  ;;  %v1232_v39 = vpop.f32.mrb[22].mxu1 }
 0x124   : > { %v1185_v40 = vpop.f32.mrb[23].mxu0  ;;  %v1233_v41 = vpop.f32.mrb[23].mxu1 }
 0x125   : > { %1123 = vst [vmem:[%s1472_s4 + $0x20] sm:$0xff] %v1063_v34   ;;  %1131 = vst [vmem:[%s1472_s4 + $0x60] sm:$0xff] %v1103_v35   ;;  %v580_v42 = vadd.f32 %v1183_v36, %v1462_v50  ;;  %v644_v43 = vadd.f32 %v1231_v37, %v1462_v50  ;;  %v1186_v44 = vadd.f32 %v1185_v40, %v1184_v38 }
 0x126   : > { %v1234_v45 = vadd.f32 %v1233_v41, %v1232_v39 }
 0x127   : > { %v583_v46 = vadd.f32 %v1186_v44, %v1462_v50  ;;  %v676_v48 = vmax.f32 %v580_v42, 0.0  ;;  %v692_v49 = vmax.f32 %v644_v43, 0.0 }
 0x128   : > { %v647_v47 = vadd.f32 %v1234_v45, %v1462_v50 }
 0x129   : > { %v677_v51 = vmax.f32 %v583_v46, 0.0  ;;  %v1187_v53 = vpop.f32.mrb[24].mxu0  ;;  %v1235_v54 = vpop.f32.mrb[24].mxu1 }
 0x12a   : > { %v693_v52 = vmax.f32 %v647_v47, 0.0  ;;  %v1188_v55 = vpop.f32.mrb[25].mxu0  ;;  %v1236_v56 = vpop.f32.mrb[25].mxu1 }
 0x12b   : > { %v1068_v57 = vpack.c.bf16 %v677_v51, %v676_v48  ;;  %v1189_v59 = vadd.f32 %v1188_v55, %v1187_v53  ;;  %v1237_v60 = vadd.f32 %v1236_v56, %v1235_v54  ;;  %v1190_v61 = vpop.f32.mrb[26].mxu0  ;;  %v1238_v62 = vpop.f32.mrb[26].mxu1 }
 0x12c   : > { %v1108_v58 = vpack.c.bf16 %v693_v52, %v692_v49  ;;  %v1191_v63 = vpop.f32.mrb[27].mxu0  ;;  %v1239_v0 = vpop.f32.mrb[27].mxu1 }
 0x12d   : > { %1124 = vst [vmem:[%s1472_s4 + $0x28] sm:$0xff] %v1068_v57   ;;  %v588_v1 = vadd.f32 %v1189_v59, %v1462_v50  ;;  %v652_v2 = vadd.f32 %v1237_v60, %v1462_v50  ;;  %v1192_v3 = vadd.f32 %v1191_v63, %v1190_v61  ;;  %v1240_v4 = vadd.f32 %v1239_v0, %v1238_v62 }
 0x12e   : > { %1132 = vst [vmem:[%s1472_s4 + $0x68] sm:$0xff] %v1108_v58  }
 0x12f   : > { %v591_v5 = vadd.f32 %v1192_v3, %v1462_v50  ;;  %v655_v6 = vadd.f32 %v1240_v4, %v1462_v50  ;;  %v678_v7 = vmax.f32 %v588_v1, 0.0  ;;  %v694_v8 = vmax.f32 %v652_v2, 0.0 }
 0x131   : > { %v679_v9 = vmax.f32 %v591_v5, 0.0  ;;  %v695_v10 = vmax.f32 %v655_v6, 0.0  ;;  %v1193_v11 = vpop.f32.mrb[28].mxu0  ;;  %v1241_v12 = vpop.f32.mrb[28].mxu1 }
 0x132   : > { %v1194_v13 = vpop.f32.mrb[29].mxu0  ;;  %v1242_v14 = vpop.f32.mrb[29].mxu1 }
 0x133   : > { %v1073_v15 = vpack.c.bf16 %v679_v9, %v678_v7  ;;  %v1113_v16 = vpack.c.bf16 %v695_v10, %v694_v8  ;;  %v1195_v17 = vadd.f32 %v1194_v13, %v1193_v11  ;;  %v1243_v18 = vadd.f32 %v1242_v14, %v1241_v12  ;;  %v1196_v19 = vpop.f32.mrb[30].mxu0  ;;  %v1244_v20 = vpop.f32.mrb[30].mxu1 }
 0x134   : > { %v1197_v21 = vpop.f32.mrb[31].mxu0  ;;  %v1245_v22 = vpop.f32.mrb[31].mxu1 }
 0x135   : > { %1125 = vst [vmem:[%s1472_s4 + $0x30] sm:$0xff] %v1073_v15   ;;  %1133 = vst [vmem:[%s1472_s4 + $0x70] sm:$0xff] %v1113_v16   ;;  %v596_v23 = vadd.f32 %v1195_v17, %v1462_v50  ;;  %v660_v24 = vadd.f32 %v1243_v18, %v1462_v50  ;;  %v1198_v25 = vadd.f32 %v1197_v21, %v1196_v19 }
 0x136   : > { %v1246_v26 = vadd.f32 %v1245_v22, %v1244_v20 }
 0x137   : > { %v599_v27 = vadd.f32 %v1198_v25, %v1462_v50  ;;  %v680_v29 = vmax.f32 %v596_v23, 0.0  ;;  %v696_v30 = vmax.f32 %v660_v24, 0.0 }
 0x138   : > { %v663_v28 = vadd.f32 %v1246_v26, %v1462_v50 }
 0x139   : > { %v681_v31 = vmax.f32 %v599_v27, 0.0 }
 0x13a   : > { %v697_v32 = vmax.f32 %v663_v28, 0.0 }
 0x13b   : > { %v1078_v33 = vpack.c.bf16 %v681_v31, %v680_v29 }
 0x13c   : > { %v1118_v34 = vpack.c.bf16 %v697_v32, %v696_v30 }
 0x13d   : > { %1126 = vst [vmem:[%s1472_s4 + $0x38] sm:$0xff] %v1078_v33  }
 0x13e   : > { %1134 = vst [vmem:[%s1472_s4 + $0x78] sm:$0xff] %v1118_v34  }
 0x13f PF: > { %s13_s12 = sadd.s32 1, %s1341_s12  }
 0x140   : > { %p10_p4 = scmp.ge.s32.totalorder %s13_s12, 6  }
 0x142   :  { %12 = sbr.rel (!%p10_p4) target bundleno = 1 (0x1), region = 62 }

// kernel: dqn_forward.5
= control target key start
LH: loop header
LB: loop body
LE: loop exit
PB: predicated region body
PF: predicated region fallthrough
CT: control target
= control target key end

     0   :  { %s1676_s1 = inlined_call_operand.vmem [shape: bf16[512,128], index: 1, kind: input, shape index: {}]   ;;  %s1677_s0 = inlined_call_operand.vmem [shape: bf16[176,512], index: 0, kind: input, shape index: {}]   ;;  %s1678_s2 = inlined_call_operand.vmem [shape: f32[1,128], index: 2, kind: input, shape index: {}]   ;;  %s1679_s3 = inlined_call_operand.vmem [shape: bf16[176,128], index: 3, kind: output, shape index: {}]  }
   0x1   :  { %v1270_v0 = vld [vmem:[%s1676_s1 + $0x40] sm:$0xff]   ;;  %v1274_v4 = vld [vmem:[%s1676_s1 + $0x48] sm:$0xff]   ;;  %v1278_v8 = vld [vmem:[%s1676_s1 + $0x50] sm:$0xff]  }
   0x2   :  { %v1271_v1 = vld [vmem:[%s1676_s1 + $0xc0] sm:$0xff]   ;;  %1106 = vmatprep.subr.bf16.mxu0 %v1270_v0  ;;  %v1275_v5 = vld [vmem:[%s1676_s1 + $0xc8] sm:$0xff]   ;;  %v1279_v9 = vld [vmem:[%s1676_s1 + $0xd0] sm:$0xff]  }
   0x3   :  { %v1272_v2 = vld [vmem:[%s1676_s1] sm:$0xff]   ;;  %1188 = vmatprep.subr.bf16.mxu1 %v1271_v1  ;;  %v1276_v6 = vld [vmem:[%s1676_s1 + $0x8] sm:$0xff]   ;;  %v1280_v10 = vld [vmem:[%s1676_s1 + $0x10] sm:$0xff]  }
   0x4   :  { %v1273_v3 = vld [vmem:[%s1676_s1 + $0x80] sm:$0xff]   ;;  %1107 = vmatpush3.bf16.msra.mxu0 %v1272_v2  ;;  %v1277_v7 = vld [vmem:[%s1676_s1 + $0x88] sm:$0xff]   ;;  %v1281_v11 = vld [vmem:[%s1676_s1 + $0x90] sm:$0xff]  }
   0x5   :  { %1189 = vmatpush3.bf16.msra.mxu1 %v1273_v3  ;;  %1108 = vmatprep.subr.bf16.mxu0 %v1274_v4  ;;  %v1282_v12 = vld [vmem:[%s1676_s1 + $0x58] sm:$0xff]   ;;  %v1286_v16 = vld [vmem:[%s1676_s1 + $0x60] sm:$0xff]   ;;  %v1290_v20 = vld [vmem:[%s1676_s1 + $0x68] sm:$0xff]  }
   0x6   :  { %1190 = vmatprep.subr.bf16.mxu1 %v1275_v5  ;;  %v1283_v13 = vld [vmem:[%s1676_s1 + $0xd8] sm:$0xff]   ;;  %v1287_v17 = vld [vmem:[%s1676_s1 + $0xe0] sm:$0xff]   ;;  %v1291_v21 = vld [vmem:[%s1676_s1 + $0xe8] sm:$0xff]  }
   0x7   :  { %v1284_v14 = vld [vmem:[%s1676_s1 + $0x18] sm:$0xff]   ;;  %v1288_v18 = vld [vmem:[%s1676_s1 + $0x20] sm:$0xff]   ;;  %v1292_v22 = vld [vmem:[%s1676_s1 + $0x28] sm:$0xff]  }
   0x8   :  { %1109 = vmatpush3.bf16.msra.mxu0 %v1276_v6  ;;  %v1285_v15 = vld [vmem:[%s1676_s1 + $0x98] sm:$0xff]   ;;  %v1289_v19 = vld [vmem:[%s1676_s1 + $0xa0] sm:$0xff]   ;;  %v1293_v23 = vld [vmem:[%s1676_s1 + $0xa8] sm:$0xff]  }
   0x9   :  { %1191 = vmatpush3.bf16.msra.mxu1 %v1277_v7  ;;  %1110 = vmatprep.subr.bf16.mxu0 %v1278_v8  ;;  %v1294_v24 = vld [vmem:[%s1676_s1 + $0x70] sm:$0xff]   ;;  %v1298_v28 = vld [vmem:[%s1676_s1 + $0x78] sm:$0xff]  }
   0xa   :  { %1192 = vmatprep.subr.bf16.mxu1 %v1279_v9  ;;  %v1295_v25 = vld [vmem:[%s1676_s1 + $0xf0] sm:$0xff]   ;;  %v1299_v29 = vld [vmem:[%s1676_s1 + $0xf8] sm:$0xff]  }
   0xb   :  { %v1296_v26 = vld [vmem:[%s1676_s1 + $0x30] sm:$0xff]   ;;  %v1300_v30 = vld [vmem:[%s1676_s1 + $0x38] sm:$0xff]  }
   0xc   :  { %1111 = vmatpush3.bf16.msra.mxu0 %v1280_v10  ;;  %v1297_v27 = vld [vmem:[%s1676_s1 + $0xb0] sm:$0xff]   ;;  %v1301_v31 = vld [vmem:[%s1676_s1 + $0xb8] sm:$0xff]  }
   0xd   :  { %1193 = vmatpush3.bf16.msra.mxu1 %v1281_v11  ;;  %1112 = vmatprep.subr.bf16.mxu0 %v1282_v12  ;;  %v1302_v32 = vld [vmem:[%s1677_s0] ss:$16 sps:$4 sm:$0xff]   ;;  %v1304_v33 = vld [vmem:[%s1677_s0 + $0x4] ss:$16 sps:$4 sm:$0xff]   ;;  %v1305_v34 = vld [vmem:[%s1677_s0 + $0x8] ss:$16 sps:$4 sm:$0xff]  }
   0xe   :  { %1194 = vmatprep.subr.bf16.mxu1 %v1283_v13  ;;  %v1307_v35 = vld [vmem:[%s1677_s0 + $0xc] ss:$16 sps:$4 sm:$0xff]   ;;  %574 = vmatprep.mubr.bf16.mxu0 %v1304_v33  ;;  %v1308_v36 = vld [vmem:[%s1677_s0 + $0x24] ss:$16 sps:$4 sm:$0xff]   ;;  %v1312_v38 = vld [vmem:[%s1677_s0 + $0x20] ss:$16 sps:$4 sm:$0xff]  }
   0xf   :  { %695 = vmatprep.mubr.bf16.mxu1 %v1307_v35  ;;  %v1310_v37 = vld [vmem:[%s1677_s0 + $0x2c] ss:$16 sps:$4 sm:$0xff]   ;;  %v1313_v39 = vld [vmem:[%s1677_s0 + $0x28] ss:$16 sps:$4 sm:$0xff]   ;;  %v1314_v40 = vld [vmem:[%s1677_s0 + $0x44] ss:$16 sps:$4 sm:$0xff]  }
  0x10   :  { %1113 = vmatpush3.bf16.msra.mxu0 %v1284_v14  ;;  %v1316_v41 = vld [vmem:[%s1677_s0 + $0x4c] ss:$16 sps:$4 sm:$0xff]   ;;  %v1318_v42 = vld [vmem:[%s1677_s0 + $0x40] ss:$16 sps:$4 sm:$0xff]   ;;  %v1319_v43 = vld [vmem:[%s1677_s0 + $0x48] ss:$16 sps:$4 sm:$0xff]  }
  0x11   :  { %1195 = vmatpush3.bf16.msra.mxu1 %v1285_v15  ;;  %1114 = vmatprep.subr.bf16.mxu0 %v1286_v16  ;;  %v1320_v44 = vld [vmem:[%s1677_s0 + $0x64] ss:$16 sps:$4 sm:$0xff]   ;;  %v1322_v45 = vld [vmem:[%s1677_s0 + $0x6c] ss:$16 sps:$4 sm:$0xff]   ;;  %v1324_v46 = vld [vmem:[%s1677_s0 + $0x60] ss:$16 sps:$4 sm:$0xff]  }
  0x12   :  { %1196 = vmatprep.subr.bf16.mxu1 %v1287_v17  ;;  %v1325_v47 = vld [vmem:[%s1677_s0 + $0x68] ss:$16 sps:$4 sm:$0xff]   ;;  %v1326_v48 = vld [vmem:[%s1677_s0 + $0x84] ss:$16 sps:$4 sm:$0xff]   ;;  %v1328_v49 = vld [vmem:[%s1677_s0 + $0x8c] ss:$16 sps:$4 sm:$0xff]  }
  0x13   :  { %v1330_v50 = vld [vmem:[%s1677_s0 + $0x80] ss:$16 sps:$4 sm:$0xff]   ;;  %v1331_v51 = vld [vmem:[%s1677_s0 + $0x88] ss:$16 sps:$4 sm:$0xff]   ;;  %v1332_v52 = vld [vmem:[%s1677_s0 + $0xa4] ss:$16 sps:$4 sm:$0xff]  }
  0x14   :  { %1115 = vmatpush3.bf16.msra.mxu0 %v1288_v18  ;;  %v1334_v53 = vld [vmem:[%s1677_s0 + $0xac] ss:$16 sps:$4 sm:$0xff]   ;;  %v1336_v54 = vld [vmem:[%s1677_s0 + $0xa0] ss:$16 sps:$4 sm:$0xff]   ;;  %v1337_v55 = vld [vmem:[%s1677_s0 + $0xa8] ss:$16 sps:$4 sm:$0xff]  }
  0x15   :  { %1197 = vmatpush3.bf16.msra.mxu1 %v1289_v19  ;;  %1116 = vmatprep.subr.bf16.mxu0 %v1290_v20  ;;  %v1338_v56 = vld [vmem:[%s1677_s0 + $0xc4] ss:$16 sps:$4 sm:$0xff]   ;;  %v1340_v57 = vld [vmem:[%s1677_s0 + $0xcc] ss:$16 sps:$4 sm:$0xff]   ;;  %v1342_v58 = vld [vmem:[%s1677_s0 + $0xc0] ss:$16 sps:$4 sm:$0xff]  }
  0x16   :  { %1198 = vmatprep.subr.bf16.mxu1 %v1291_v21  ;;  %v1343_v59 = vld [vmem:[%s1677_s0 + $0xc8] ss:$16 sps:$4 sm:$0xff]   ;;  %v1344_v60 = vld [vmem:[%s1677_s0 + $0xe4] ss:$16 sps:$4 sm:$0xff]   ;;  %v1346_v61 = vld [vmem:[%s1677_s0 + $0xec] ss:$16 sps:$4 sm:$0xff]  }
  0x17   :  { %v1348_v62 = vld [vmem:[%s1677_s0 + $0xe0] ss:$16 sps:$4 sm:$0xff]   ;;  %v1349_v63 = vld [vmem:[%s1677_s0 + $0xe8] ss:$16 sps:$4 sm:$0xff]   ;;  %v1350_v0 = vld [vmem:[%s1677_s0 + $0x104] ss:$16 sps:$4 sm:$0xff]  }
  0x18   :  { %1117 = vmatpush3.bf16.msra.mxu0 %v1292_v22  ;;  %v1352_v1 = vld [vmem:[%s1677_s0 + $0x10c] ss:$16 sps:$4 sm:$0xff]   ;;  %v1354_v2 = vld [vmem:[%s1677_s0 + $0x100] ss:$16 sps:$4 sm:$0xff]   ;;  %v1355_v3 = vld [vmem:[%s1677_s0 + $0x108] ss:$16 sps:$4 sm:$0xff]  }
  0x19   :  { %1199 = vmatpush3.bf16.msra.mxu1 %v1293_v23  ;;  %1118 = vmatprep.subr.bf16.mxu0 %v1294_v24  ;;  %v1356_v4 = vld [vmem:[%s1677_s0 + $0x124] ss:$16 sps:$4 sm:$0xff]   ;;  %v1358_v5 = vld [vmem:[%s1677_s0 + $0x12c] ss:$16 sps:$4 sm:$0xff]   ;;  %v1360_v6 = vld [vmem:[%s1677_s0 + $0x120] ss:$16 sps:$4 sm:$0xff]  }
  0x1a   :  { %1200 = vmatprep.subr.bf16.mxu1 %v1295_v25  ;;  %v1361_v7 = vld [vmem:[%s1677_s0 + $0x128] ss:$16 sps:$4 sm:$0xff]   ;;  %v1362_v8 = vld [vmem:[%s1677_s0 + $0x144] ss:$16 sps:$4 sm:$0xff]   ;;  %v1364_v9 = vld [vmem:[%s1677_s0 + $0x14c] ss:$16 sps:$4 sm:$0xff]  }
  0x1b   :  { %v1366_v10 = vld [vmem:[%s1677_s0 + $0x140] ss:$16 sps:$4 sm:$0xff]   ;;  %v1367_v11 = vld [vmem:[%s1677_s0 + $0x148] ss:$16 sps:$4 sm:$0xff]  }
  0x1c   :  { %1119 = vmatpush3.bf16.msra.mxu0 %v1296_v26  ;;  %v1619_v14 = vld [vmem:[%s1678_s2] ss:$0 sm:$0xff] }
  0x1d   :  { %1201 = vmatpush3.bf16.msra.mxu1 %v1297_v27  ;;  %1120 = vmatprep.subr.bf16.mxu0 %v1298_v28 }
  0x1e   :  { %1202 = vmatprep.subr.bf16.mxu1 %v1299_v29 }
  0x20   :  { %1121 = vmatpush3.bf16.msra.mxu0 %v1300_v30 }
  0x21   :  { %1203 = vmatpush3.bf16.msra.mxu1 %v1301_v31 }
  0x23   :  { %575 = vmatmul.mubr.bf16.vlgmr.msra.gmra.mrb[0].mxu0 %v1302_v32 }
  0x24   :  { %696 = vmatmul.mubr.bf16.vlgmr.msra.gmra.mrb[0].mxu1 %v1305_v34  ;;  %582 = vmatprep.mubr.bf16.mxu0 %v1308_v36 }
  0x25   :  { %703 = vmatprep.mubr.bf16.mxu1 %v1310_v37 }
  0x2b   :  { %583 = vmatmul.mubr.bf16.gmra.mrb[4].mxu0 %v1312_v38 }
  0x2c   :  { %704 = vmatmul.mubr.bf16.gmra.mrb[4].mxu1 %v1313_v39  ;;  %590 = vmatprep.mubr.bf16.mxu0 %v1314_v40 }
  0x2d   :  { %711 = vmatprep.mubr.bf16.mxu1 %v1316_v41 }
  0x33   :  { %591 = vmatmul.mubr.bf16.gmra.mrb[8].mxu0 %v1318_v42 }
  0x34   :  { %712 = vmatmul.mubr.bf16.gmra.mrb[8].mxu1 %v1319_v43  ;;  %598 = vmatprep.mubr.bf16.mxu0 %v1320_v44 }
  0x35   :  { %719 = vmatprep.mubr.bf16.mxu1 %v1322_v45 }
  0x3b   :  { %599 = vmatmul.mubr.bf16.gmra.mrb[12].mxu0 %v1324_v46 }
  0x3c   :  { %720 = vmatmul.mubr.bf16.gmra.mrb[12].mxu1 %v1325_v47  ;;  %606 = vmatprep.mubr.bf16.mxu0 %v1326_v48 }
  0x3d   :  { %727 = vmatprep.mubr.bf16.mxu1 %v1328_v49 }
  0x43   :  { %607 = vmatmul.mubr.bf16.gmra.mrb[16].mxu0 %v1330_v50 }
  0x44   :  { %728 = vmatmul.mubr.bf16.gmra.mrb[16].mxu1 %v1331_v51  ;;  %614 = vmatprep.mubr.bf16.mxu0 %v1332_v52 }
  0x45   :  { %735 = vmatprep.mubr.bf16.mxu1 %v1334_v53 }
  0x4b   :  { %615 = vmatmul.mubr.bf16.gmra.mrb[20].mxu0 %v1336_v54 }
  0x4c   :  { %736 = vmatmul.mubr.bf16.gmra.mrb[20].mxu1 %v1337_v55  ;;  %622 = vmatprep.mubr.bf16.mxu0 %v1338_v56 }
  0x4d   :  { %743 = vmatprep.mubr.bf16.mxu1 %v1340_v57 }
  0x53   :  { %623 = vmatmul.mubr.bf16.gmra.mrb[24].mxu0 %v1342_v58 }
  0x54   :  { %744 = vmatmul.mubr.bf16.gmra.mrb[24].mxu1 %v1343_v59  ;;  %630 = vmatprep.mubr.bf16.mxu0 %v1344_v60 }
  0x55   :  { %751 = vmatprep.mubr.bf16.mxu1 %v1346_v61 }
  0x5b   :  { %631 = vmatmul.mubr.bf16.gmra.mrb[28].mxu0 %v1348_v62 }
  0x5c   :  { %752 = vmatmul.mubr.bf16.gmra.mrb[28].mxu1 %v1349_v63  ;;  %638 = vmatprep.mubr.bf16.mxu0 %v1350_v0 }
  0x5d   :  { %759 = vmatprep.mubr.bf16.mxu1 %v1352_v1 }
  0x63   :  { %639 = vmatmul.mubr.bf16.gmra.mrb[32].mxu0 %v1354_v2 }
  0x64   :  { %760 = vmatmul.mubr.bf16.gmra.mrb[32].mxu1 %v1355_v3  ;;  %646 = vmatprep.mubr.bf16.mxu0 %v1356_v4 }
  0x65   :  { %767 = vmatprep.mubr.bf16.mxu1 %v1358_v5 }
  0x6b   :  { %647 = vmatmul.mubr.bf16.gmra.mrb[36].mxu0 %v1360_v6 }
  0x6c   :  { %768 = vmatmul.mubr.bf16.gmra.mrb[36].mxu1 %v1361_v7  ;;  %654 = vmatprep.mubr.bf16.mxu0 %v1362_v8 }
  0x6d   :  { %775 = vmatprep.mubr.bf16.mxu1 %v1364_v9 }
  0x73   :  { %655 = vmatmul.mubr.bf16.gmra.mrb[40].mxu0 %v1366_v10 }
  0x74   :  { %776 = vmatmul.mubr.bf16.gmra.mrb[40].mxu1 %v1367_v11 }
  0xf6   :  { %v1122_v12 = vpop.f32.mrb[0].mxu0 }
  0xf7   :  { %v1204_v13 = vpop.f32.mrb[0].mxu1  ;;  %v1123_v15 = vpop.f32.mrb[1].mxu0 }
  0xf8   :  { %v1124_v16 = vadd.f32 %v1123_v15, %v1122_v12  ;;  %v1205_v17 = vpop.f32.mrb[1].mxu1  ;;  %v1125_v18 = vpop.f32.mrb[2].mxu0 }
  0xf9   :  { %v1206_v19 = vadd.f32 %v1205_v17, %v1204_v13  ;;  %v1207_v20 = vpop.f32.mrb[2].mxu1  ;;  %v1126_v21 = vpop.f32.mrb[3].mxu0 }
  0xfa   :  { %v577_v22 = vadd.f32 %v1124_v16, %v1619_v14  ;;  %v1127_v23 = vadd.f32 %v1126_v21, %v1125_v18  ;;  %v1208_v24 = vpop.f32.mrb[3].mxu1 }
  0xfb   :  { %v1209_v25 = vadd.f32 %v1208_v24, %v1207_v20 }
  0xfc   :  { %v698_v26 = vadd.f32 %v1206_v19, %v577_v22  ;;  %v580_v27 = vadd.f32 %v1127_v23, %v1619_v14 }
  0xfe   :  { %v701_v28 = vadd.f32 %v1209_v25, %v580_v27  ;;  %v1128_v29 = vpop.f32.mrb[4].mxu0  ;;  %v784_v32 = vmax.f32 %v698_v26, 0.0 }
  0xff   :  { %v1210_v30 = vpop.f32.mrb[4].mxu1  ;;  %v1129_v31 = vpop.f32.mrb[5].mxu0 }
 0x100   :  { %v785_v33 = vmax.f32 %v701_v28, 0.0  ;;  %v1130_v34 = vadd.f32 %v1129_v31, %v1128_v29  ;;  %v1211_v35 = vpop.f32.mrb[5].mxu1  ;;  %v1131_v36 = vpop.f32.mrb[6].mxu0 }
 0x101   :  { %v1212_v37 = vadd.f32 %v1211_v35, %v1210_v30  ;;  %v1213_v38 = vpop.f32.mrb[6].mxu1  ;;  %v1132_v39 = vpop.f32.mrb[7].mxu0 }
 0x102   :  { %v1044_v40 = vpack.c.bf16 %v785_v33, %v784_v32  ;;  %v585_v41 = vadd.f32 %v1130_v34, %v1619_v14  ;;  %v1133_v42 = vadd.f32 %v1132_v39, %v1131_v36  ;;  %v1214_v43 = vpop.f32.mrb[7].mxu1 }
 0x103   :  { %v1215_v44 = vadd.f32 %v1214_v43, %v1213_v38 }
 0x104   :  { %1045 = vst [vmem:[%s1679_s3] sm:$0xff] %v1044_v40   ;;  %v706_v45 = vadd.f32 %v1212_v37, %v585_v41  ;;  %v588_v46 = vadd.f32 %v1133_v42, %v1619_v14 }
 0x106   :  { %v709_v47 = vadd.f32 %v1215_v44, %v588_v46  ;;  %v1134_v48 = vpop.f32.mrb[8].mxu0  ;;  %v786_v51 = vmax.f32 %v706_v45, 0.0 }
 0x107   :  { %v1216_v49 = vpop.f32.mrb[8].mxu1  ;;  %v1135_v50 = vpop.f32.mrb[9].mxu0 }
 0x108   :  { %v787_v52 = vmax.f32 %v709_v47, 0.0  ;;  %v1136_v53 = vadd.f32 %v1135_v50, %v1134_v48  ;;  %v1217_v54 = vpop.f32.mrb[9].mxu1  ;;  %v1137_v55 = vpop.f32.mrb[10].mxu0 }
 0x109   :  { %v1218_v56 = vadd.f32 %v1217_v54, %v1216_v49  ;;  %v1219_v57 = vpop.f32.mrb[10].mxu1  ;;  %v1138_v58 = vpop.f32.mrb[11].mxu0 }
 0x10a   :  { %v1049_v59 = vpack.c.bf16 %v787_v52, %v786_v51  ;;  %v593_v60 = vadd.f32 %v1136_v53, %v1619_v14  ;;  %v1139_v61 = vadd.f32 %v1138_v58, %v1137_v55  ;;  %v1220_v62 = vpop.f32.mrb[11].mxu1 }
 0x10b   :  { %v1221_v63 = vadd.f32 %v1220_v62, %v1219_v57 }
 0x10c   :  { %1096 = vst [vmem:[%s1679_s3 + $0x8] sm:$0xff] %v1049_v59   ;;  %v714_v0 = vadd.f32 %v1218_v56, %v593_v60  ;;  %v596_v1 = vadd.f32 %v1139_v61, %v1619_v14 }
 0x10e   :  { %v717_v2 = vadd.f32 %v1221_v63, %v596_v1  ;;  %v1140_v3 = vpop.f32.mrb[12].mxu0  ;;  %v788_v6 = vmax.f32 %v714_v0, 0.0 }
 0x10f   :  { %v1222_v4 = vpop.f32.mrb[12].mxu1  ;;  %v1141_v5 = vpop.f32.mrb[13].mxu0 }
 0x110   :  { %v789_v7 = vmax.f32 %v717_v2, 0.0  ;;  %v1142_v8 = vadd.f32 %v1141_v5, %v1140_v3  ;;  %v1223_v9 = vpop.f32.mrb[13].mxu1  ;;  %v1143_v10 = vpop.f32.mrb[14].mxu0 }
 0x111   :  { %v1224_v11 = vadd.f32 %v1223_v9, %v1222_v4  ;;  %v1225_v12 = vpop.f32.mrb[14].mxu1  ;;  %v1144_v13 = vpop.f32.mrb[15].mxu0 }
 0x112   :  { %v1054_v15 = vpack.c.bf16 %v789_v7, %v788_v6  ;;  %v601_v16 = vadd.f32 %v1142_v8, %v1619_v14  ;;  %v1145_v17 = vadd.f32 %v1144_v13, %v1143_v10  ;;  %v1226_v18 = vpop.f32.mrb[15].mxu1 }
 0x113   :  { %v1227_v19 = vadd.f32 %v1226_v18, %v1225_v12 }
 0x114   :  { %1097 = vst [vmem:[%s1679_s3 + $0x10] sm:$0xff] %v1054_v15   ;;  %v722_v20 = vadd.f32 %v1224_v11, %v601_v16  ;;  %v604_v21 = vadd.f32 %v1145_v17, %v1619_v14 }
 0x116   :  { %v725_v22 = vadd.f32 %v1227_v19, %v604_v21  ;;  %v1146_v23 = vpop.f32.mrb[16].mxu0  ;;  %v790_v26 = vmax.f32 %v722_v20, 0.0 }
 0x117   :  { %v1228_v24 = vpop.f32.mrb[16].mxu1  ;;  %v1147_v25 = vpop.f32.mrb[17].mxu0 }
 0x118   :  { %v791_v27 = vmax.f32 %v725_v22, 0.0  ;;  %v1148_v28 = vadd.f32 %v1147_v25, %v1146_v23  ;;  %v1229_v29 = vpop.f32.mrb[17].mxu1  ;;  %v1149_v30 = vpop.f32.mrb[18].mxu0 }
 0x119   :  { %v1230_v31 = vadd.f32 %v1229_v29, %v1228_v24  ;;  %v1231_v32 = vpop.f32.mrb[18].mxu1  ;;  %v1150_v33 = vpop.f32.mrb[19].mxu0 }
 0x11a   :  { %v1059_v34 = vpack.c.bf16 %v791_v27, %v790_v26  ;;  %v609_v35 = vadd.f32 %v1148_v28, %v1619_v14  ;;  %v1151_v36 = vadd.f32 %v1150_v33, %v1149_v30  ;;  %v1232_v37 = vpop.f32.mrb[19].mxu1 }
 0x11b   :  { %v1233_v38 = vadd.f32 %v1232_v37, %v1231_v32 }
 0x11c   :  { %1098 = vst [vmem:[%s1679_s3 + $0x18] sm:$0xff] %v1059_v34   ;;  %v730_v39 = vadd.f32 %v1230_v31, %v609_v35  ;;  %v612_v40 = vadd.f32 %v1151_v36, %v1619_v14 }
 0x11e   :  { %v733_v41 = vadd.f32 %v1233_v38, %v612_v40  ;;  %v1152_v42 = vpop.f32.mrb[20].mxu0  ;;  %v792_v45 = vmax.f32 %v730_v39, 0.0 }
 0x11f   :  { %v1234_v43 = vpop.f32.mrb[20].mxu1  ;;  %v1153_v44 = vpop.f32.mrb[21].mxu0 }
 0x120   :  { %v793_v46 = vmax.f32 %v733_v41, 0.0  ;;  %v1154_v47 = vadd.f32 %v1153_v44, %v1152_v42  ;;  %v1235_v48 = vpop.f32.mrb[21].mxu1  ;;  %v1155_v49 = vpop.f32.mrb[22].mxu0 }
 0x121   :  { %v1236_v50 = vadd.f32 %v1235_v48, %v1234_v43  ;;  %v1237_v51 = vpop.f32.mrb[22].mxu1  ;;  %v1156_v52 = vpop.f32.mrb[23].mxu0 }
 0x122   :  { %v1064_v53 = vpack.c.bf16 %v793_v46, %v792_v45  ;;  %v617_v54 = vadd.f32 %v1154_v47, %v1619_v14  ;;  %v1157_v55 = vadd.f32 %v1156_v52, %v1155_v49  ;;  %v1238_v56 = vpop.f32.mrb[23].mxu1 }
 0x123   :  { %v1239_v57 = vadd.f32 %v1238_v56, %v1237_v51 }
 0x124   :  { %1099 = vst [vmem:[%s1679_s3 + $0x20] sm:$0xff] %v1064_v53   ;;  %v738_v58 = vadd.f32 %v1236_v50, %v617_v54  ;;  %v620_v59 = vadd.f32 %v1157_v55, %v1619_v14 }
 0x126   :  { %v741_v60 = vadd.f32 %v1239_v57, %v620_v59  ;;  %v1158_v61 = vpop.f32.mrb[24].mxu0  ;;  %v794_v0 = vmax.f32 %v738_v58, 0.0 }
 0x127   :  { %v1240_v62 = vpop.f32.mrb[24].mxu1  ;;  %v1159_v63 = vpop.f32.mrb[25].mxu0 }
 0x128   :  { %v795_v1 = vmax.f32 %v741_v60, 0.0  ;;  %v1160_v2 = vadd.f32 %v1159_v63, %v1158_v61  ;;  %v1241_v3 = vpop.f32.mrb[25].mxu1  ;;  %v1161_v4 = vpop.f32.mrb[26].mxu0 }
 0x129   :  { %v1242_v5 = vadd.f32 %v1241_v3, %v1240_v62  ;;  %v1243_v6 = vpop.f32.mrb[26].mxu1  ;;  %v1162_v7 = vpop.f32.mrb[27].mxu0 }
 0x12a   :  { %v1069_v8 = vpack.c.bf16 %v795_v1, %v794_v0  ;;  %v625_v9 = vadd.f32 %v1160_v2, %v1619_v14  ;;  %v1163_v10 = vadd.f32 %v1162_v7, %v1161_v4  ;;  %v1244_v11 = vpop.f32.mrb[27].mxu1 }
 0x12b   :  { %v1245_v12 = vadd.f32 %v1244_v11, %v1243_v6 }
 0x12c   :  { %1100 = vst [vmem:[%s1679_s3 + $0x28] sm:$0xff] %v1069_v8   ;;  %v746_v13 = vadd.f32 %v1242_v5, %v625_v9  ;;  %v628_v15 = vadd.f32 %v1163_v10, %v1619_v14 }
 0x12e   :  { %v749_v16 = vadd.f32 %v1245_v12, %v628_v15  ;;  %v1164_v17 = vpop.f32.mrb[28].mxu0  ;;  %v796_v20 = vmax.f32 %v746_v13, 0.0 }
 0x12f   :  { %v1246_v18 = vpop.f32.mrb[28].mxu1  ;;  %v1165_v19 = vpop.f32.mrb[29].mxu0 }
 0x130   :  { %v797_v21 = vmax.f32 %v749_v16, 0.0  ;;  %v1166_v22 = vadd.f32 %v1165_v19, %v1164_v17  ;;  %v1247_v23 = vpop.f32.mrb[29].mxu1  ;;  %v1167_v24 = vpop.f32.mrb[30].mxu0 }
 0x131   :  { %v1248_v25 = vadd.f32 %v1247_v23, %v1246_v18  ;;  %v1249_v26 = vpop.f32.mrb[30].mxu1  ;;  %v1168_v27 = vpop.f32.mrb[31].mxu0 }
 0x132   :  { %v1074_v28 = vpack.c.bf16 %v797_v21, %v796_v20  ;;  %v633_v29 = vadd.f32 %v1166_v22, %v1619_v14  ;;  %v1169_v30 = vadd.f32 %v1168_v27, %v1167_v24  ;;  %v1250_v31 = vpop.f32.mrb[31].mxu1 }
 0x133   :  { %v1251_v32 = vadd.f32 %v1250_v31, %v1249_v26 }
 0x134   :  { %1101 = vst [vmem:[%s1679_s3 + $0x30] sm:$0xff] %v1074_v28   ;;  %v754_v33 = vadd.f32 %v1248_v25, %v633_v29  ;;  %v636_v34 = vadd.f32 %v1169_v30, %v1619_v14 }
 0x136   :  { %v757_v35 = vadd.f32 %v1251_v32, %v636_v34  ;;  %v1170_v36 = vpop.f32.mrb[32].mxu0  ;;  %v798_v39 = vmax.f32 %v754_v33, 0.0 }
 0x137   :  { %v1252_v37 = vpop.f32.mrb[32].mxu1  ;;  %v1171_v38 = vpop.f32.mrb[33].mxu0 }
 0x138   :  { %v799_v40 = vmax.f32 %v757_v35, 0.0  ;;  %v1172_v41 = vadd.f32 %v1171_v38, %v1170_v36  ;;  %v1253_v42 = vpop.f32.mrb[33].mxu1  ;;  %v1173_v43 = vpop.f32.mrb[34].mxu0 }
 0x139   :  { %v1254_v44 = vadd.f32 %v1253_v42, %v1252_v37  ;;  %v1255_v45 = vpop.f32.mrb[34].mxu1  ;;  %v1174_v46 = vpop.f32.mrb[35].mxu0 }
 0x13a   :  { %v1079_v47 = vpack.c.bf16 %v799_v40, %v798_v39  ;;  %v641_v48 = vadd.f32 %v1172_v41, %v1619_v14  ;;  %v1175_v49 = vadd.f32 %v1174_v46, %v1173_v43  ;;  %v1256_v50 = vpop.f32.mrb[35].mxu1 }
 0x13b   :  { %v1257_v51 = vadd.f32 %v1256_v50, %v1255_v45 }
 0x13c   :  { %1102 = vst [vmem:[%s1679_s3 + $0x38] sm:$0xff] %v1079_v47   ;;  %v762_v52 = vadd.f32 %v1254_v44, %v641_v48  ;;  %v644_v53 = vadd.f32 %v1175_v49, %v1619_v14 }
 0x13e   :  { %v765_v54 = vadd.f32 %v1257_v51, %v644_v53  ;;  %v1176_v55 = vpop.f32.mrb[36].mxu0  ;;  %v800_v58 = vmax.f32 %v762_v52, 0.0 }
 0x13f   :  { %v1258_v56 = vpop.f32.mrb[36].mxu1  ;;  %v1177_v57 = vpop.f32.mrb[37].mxu0 }
 0x140   :  { %v801_v59 = vmax.f32 %v765_v54, 0.0  ;;  %v1178_v60 = vadd.f32 %v1177_v57, %v1176_v55  ;;  %v1259_v61 = vpop.f32.mrb[37].mxu1  ;;  %v1179_v62 = vpop.f32.mrb[38].mxu0 }
 0x141   :  { %v1260_v63 = vadd.f32 %v1259_v61, %v1258_v56  ;;  %v1261_v0 = vpop.f32.mrb[38].mxu1  ;;  %v1180_v1 = vpop.f32.mrb[39].mxu0 }
 0x142   :  { %v1084_v2 = vpack.c.bf16 %v801_v59, %v800_v58  ;;  %v649_v3 = vadd.f32 %v1178_v60, %v1619_v14  ;;  %v1181_v4 = vadd.f32 %v1180_v1, %v1179_v62  ;;  %v1262_v5 = vpop.f32.mrb[39].mxu1 }
 0x143   :  { %v1263_v6 = vadd.f32 %v1262_v5, %v1261_v0 }
 0x144   :  { %1103 = vst [vmem:[%s1679_s3 + $0x40] sm:$0xff] %v1084_v2   ;;  %v770_v7 = vadd.f32 %v1260_v63, %v649_v3  ;;  %v652_v8 = vadd.f32 %v1181_v4, %v1619_v14 }
 0x146   :  { %v773_v9 = vadd.f32 %v1263_v6, %v652_v8  ;;  %v1182_v10 = vpop.f32.mrb[40].mxu0  ;;  %v802_v13 = vmax.f32 %v770_v7, 0.0 }
 0x147   :  { %v1264_v11 = vpop.f32.mrb[40].mxu1  ;;  %v1183_v12 = vpop.f32.mrb[41].mxu0 }
 0x148   :  { %v803_v15 = vmax.f32 %v773_v9, 0.0  ;;  %v1184_v16 = vadd.f32 %v1183_v12, %v1182_v10  ;;  %v1265_v17 = vpop.f32.mrb[41].mxu1  ;;  %v1185_v18 = vpop.f32.mrb[42].mxu0 }
 0x149   :  { %v1266_v19 = vadd.f32 %v1265_v17, %v1264_v11  ;;  %v1267_v20 = vpop.f32.mrb[42].mxu1  ;;  %v1186_v21 = vpop.f32.mrb[43].mxu0 }
 0x14a   :  { %v1089_v22 = vpack.c.bf16 %v803_v15, %v802_v13  ;;  %v657_v23 = vadd.f32 %v1184_v16, %v1619_v14  ;;  %v1187_v24 = vadd.f32 %v1186_v21, %v1185_v18  ;;  %v1268_v25 = vpop.f32.mrb[43].mxu1 }
 0x14b   :  { %v1269_v26 = vadd.f32 %v1268_v25, %v1267_v20 }
 0x14c   :  { %1104 = vst [vmem:[%s1679_s3 + $0x48] sm:$0xff] %v1089_v22   ;;  %v778_v27 = vadd.f32 %v1266_v19, %v657_v23  ;;  %v660_v28 = vadd.f32 %v1187_v24, %v1619_v14 }
 0x14e   :  { %v781_v29 = vadd.f32 %v1269_v26, %v660_v28  ;;  %v804_v30 = vmax.f32 %v778_v27, 0.0 }
 0x150   :  { %v805_v31 = vmax.f32 %v781_v29, 0.0 }
 0x152   :  { %v1094_v32 = vpack.c.bf16 %v805_v31, %v804_v30 }
 0x154   :  { %1105 = vst [vmem:[%s1679_s3 + $0x50] sm:$0xff] %v1094_v32  }

// kernel: dqn_forward.6
= control target key start
LH: loop header
LB: loop body
LE: loop exit
PB: predicated region body
PF: predicated region fallthrough
CT: control target
= control target key end

     0   :  { %v1310_v34 = vmov 0.0   ;;  %vm1311_vm0 = vmmov 0   ;;  %vm527_vm1 = vcmask 523264   ;;  %s1638_s1 = inlined_call_operand.vmem [shape: bf16[576,128], index: 1, kind: input, shape index: {}]   ;;  %s1639_s0 = inlined_call_operand.vmem [shape: bf16[112,576], index: 0, kind: input, shape index: {}]   ;;  %s1640_s2 = inlined_call_operand.vmem [shape: f32[1,128], index: 2, kind: input, shape index: {}]   ;;  %s1641_s3 = inlined_call_operand.vmem [shape: bf16[112,128], index: 3, kind: output, shape index: {}]  }
   0x1   :  { %v1225_v0 = vld [vmem:[%s1638_s1 + $0x40] sm:$0xff]   ;;  %v1229_v4 = vld [vmem:[%s1638_s1 + $0x48] sm:$0xff]   ;;  %v1233_v8 = vld [vmem:[%s1638_s1 + $0x50] sm:$0xff]  }
   0x2   :  { %v1226_v1 = vld [vmem:[%s1638_s1 + $0xc0] sm:$0xff]   ;;  %1052 = vmatprep.subr.bf16.mxu0 %v1225_v0  ;;  %v1230_v5 = vld [vmem:[%s1638_s1 + $0xc8] sm:$0xff]   ;;  %v1234_v9 = vld [vmem:[%s1638_s1 + $0xd0] sm:$0xff]  }
   0x3   :  { %v1227_v2 = vld [vmem:[%s1638_s1] sm:$0xff]   ;;  %1110 = vmatprep.subr.bf16.mxu1 %v1226_v1  ;;  %v1231_v6 = vld [vmem:[%s1638_s1 + $0x8] sm:$0xff]   ;;  %v1235_v10 = vld [vmem:[%s1638_s1 + $0x10] sm:$0xff]  }
   0x4   :  { %v1228_v3 = vld [vmem:[%s1638_s1 + $0x80] sm:$0xff]   ;;  %1053 = vmatpush3.bf16.msra.mxu0 %v1227_v2  ;;  %v1232_v7 = vld [vmem:[%s1638_s1 + $0x88] sm:$0xff]   ;;  %v1236_v11 = vld [vmem:[%s1638_s1 + $0x90] sm:$0xff]  }
   0x5   :  { %1111 = vmatpush3.bf16.msra.mxu1 %v1228_v3  ;;  %1054 = vmatprep.subr.bf16.mxu0 %v1229_v4  ;;  %v1237_v12 = vld [vmem:[%s1638_s1 + $0x58] sm:$0xff]   ;;  %v1241_v16 = vld [vmem:[%s1638_s1 + $0x60] sm:$0xff]   ;;  %v1245_v20 = vld [vmem:[%s1638_s1 + $0x68] sm:$0xff]  }
   0x6   :  { %1112 = vmatprep.subr.bf16.mxu1 %v1230_v5  ;;  %v1238_v13 = vld [vmem:[%s1638_s1 + $0xd8] sm:$0xff]   ;;  %v1242_v17 = vld [vmem:[%s1638_s1 + $0xe0] sm:$0xff]   ;;  %v1246_v21 = vld [vmem:[%s1638_s1 + $0xe8] sm:$0xff]  }
   0x7   :  { %v1239_v14 = vld [vmem:[%s1638_s1 + $0x18] sm:$0xff]   ;;  %v1243_v18 = vld [vmem:[%s1638_s1 + $0x20] sm:$0xff]   ;;  %v1247_v22 = vld [vmem:[%s1638_s1 + $0x28] sm:$0xff]  }
   0x8   :  { %1055 = vmatpush3.bf16.msra.mxu0 %v1231_v6  ;;  %v1240_v15 = vld [vmem:[%s1638_s1 + $0x98] sm:$0xff]   ;;  %v1244_v19 = vld [vmem:[%s1638_s1 + $0xa0] sm:$0xff]   ;;  %v1248_v23 = vld [vmem:[%s1638_s1 + $0xa8] sm:$0xff]  }
   0x9   :  { %1113 = vmatpush3.bf16.msra.mxu1 %v1232_v7  ;;  %1056 = vmatprep.subr.bf16.mxu0 %v1233_v8  ;;  %v1249_v24 = vld [vmem:[%s1638_s1 + $0x70] sm:$0xff]   ;;  %v1253_v28 = vld [vmem:[%s1638_s1 + $0x78] sm:$0xff]   ;;  %v1262_v36 = vld [vmem:[%s1639_s0 + $0xc] ss:$20 sps:$4 sm:$0xff]  }
   0xa   :  { %1114 = vmatprep.subr.bf16.mxu1 %v1234_v9  ;;  %v1250_v25 = vld [vmem:[%s1638_s1 + $0xf0] sm:$0xff]   ;;  %v1254_v29 = vld [vmem:[%s1638_s1 + $0xf8] sm:$0xff]   ;;  %v1263_v37 = vld [vmem:[%s1638_s1 + $0x100] sm:$0xff]   ;;  %670 = vmatprep.mubr.bf16.mxu1 %v1262_v36 }
   0xb   :  { %v1251_v26 = vld [vmem:[%s1638_s1 + $0x30] sm:$0xff]   ;;  %v1255_v30 = vld [vmem:[%s1638_s1 + $0x38] sm:$0xff]   ;;  %v1264_v38 = vld [vmem:[%s1639_s0 + $0x2c] ss:$20 sps:$4 sm:$0xff]  }
   0xc   :  { %1057 = vmatpush3.bf16.msra.mxu0 %v1235_v10  ;;  %v1252_v27 = vld [vmem:[%s1638_s1 + $0xb0] sm:$0xff]   ;;  %v1256_v31 = vld [vmem:[%s1638_s1 + $0xb8] sm:$0xff]   ;;  %v1274_v43 = vld [vmem:[%s1638_s1 + $0x108] sm:$0xff]  }
   0xd   :  { %1115 = vmatpush3.bf16.msra.mxu1 %v1236_v11  ;;  %1058 = vmatprep.subr.bf16.mxu0 %v1237_v12  ;;  %v1257_v32 = vld [vmem:[%s1639_s0] ss:$20 sps:$4 sm:$0xff]   ;;  %v1259_v33 = vld [vmem:[%s1639_s0 + $0x4] ss:$20 sps:$4 sm:$0xff]   ;;  %v1260_v35 = vld [vmem:[%s1639_s0 + $0x8] ss:$20 sps:$4 sm:$0xff]  }
   0xe   :  { %1116 = vmatprep.subr.bf16.mxu1 %v1238_v13  ;;  %581 = vmatprep.mubr.bf16.mxu0 %v1259_v33  ;;  %v1266_v39 = vld [vmem:[%s1639_s0 + $0x34] ss:$20 sps:$4 sm:$0xff]   ;;  %v1269_v41 = vld [vmem:[%s1639_s0 + $0x30] ss:$20 sps:$4 sm:$0xff]   ;;  %v1276_v47 = vld [vmem:[%s1639_s0 + $0x58] ss:$20 sps:$4 sm:$0xff]  }
   0xf   :  { %v1268_v40 = vld [vmem:[%s1639_s0 + $0x28] ss:$20 sps:$4 sm:$0xff]   ;;  %v1283_v45 = vld [vmem:[%s1638_s1 + $0x110] sm:$0xff]   ;;  %v1279_v49 = vld [vmem:[%s1639_s0 + $0x84] ss:$20 sps:$4 sm:$0xff]  }
  0x10   :  { %1059 = vmatpush3.bf16.msra.mxu0 %v1239_v14  ;;  %v1270_v42 = vld [vmem:[%s1639_s0 + $0x54] ss:$20 sps:$4 sm:$0xff]   ;;  %v1272_v44 = vld [vmem:[%s1639_s0 + $0x5c] ss:$20 sps:$4 sm:$0xff]   ;;  %v1281_v51 = vld [vmem:[%s1639_s0 + $0x78] ss:$20 sps:$4 sm:$0xff]  }
  0x11   :  { %1117 = vmatpush3.bf16.msra.mxu1 %v1240_v15  ;;  %1060 = vmatprep.subr.bf16.mxu0 %v1241_v16  ;;  %v1275_v46 = vld [vmem:[%s1639_s0 + $0x50] ss:$20 sps:$4 sm:$0xff]   ;;  %v1296_v50 = vld [vmem:[%s1638_s1 + $0x118] sm:$0xff]   ;;  %v1282_v52 = vld [vmem:[%s1639_s0 + $0x80] ss:$20 sps:$4 sm:$0xff]  }
  0x12   :  { %1118 = vmatprep.subr.bf16.mxu1 %v1242_v17  ;;  %v1277_v48 = vld [vmem:[%s1639_s0 + $0x7c] ss:$20 sps:$4 sm:$0xff]   ;;  %v1284_v53 = vld [vmem:[%s1639_s0 + $0xa4] ss:$20 sps:$4 sm:$0xff]   ;;  %v1286_v54 = vld [vmem:[%s1639_s0 + $0xac] ss:$20 sps:$4 sm:$0xff]  }
  0x13   :  { %v1288_v55 = vld [vmem:[%s1639_s0 + $0xa0] ss:$20 sps:$4 sm:$0xff]   ;;  %v1289_v56 = vld [vmem:[%s1639_s0 + $0xa8] ss:$20 sps:$4 sm:$0xff]   ;;  %v1295_v60 = vld [vmem:[%s1639_s0 + $0xd0] ss:$20 sps:$4 sm:$0xff]  }
  0x14   :  { %1061 = vmatpush3.bf16.msra.mxu0 %v1243_v18  ;;  %v1290_v57 = vld [vmem:[%s1639_s0 + $0xcc] ss:$20 sps:$4 sm:$0xff]   ;;  %v1292_v58 = vld [vmem:[%s1639_s0 + $0xd4] ss:$20 sps:$4 sm:$0xff]   ;;  %v1299_v62 = vld [vmem:[%s1639_s0 + $0xfc] ss:$20 sps:$4 sm:$0xff]  }
  0x15   :  { %1119 = vmatpush3.bf16.msra.mxu1 %v1244_v19  ;;  %1062 = vmatprep.subr.bf16.mxu0 %v1245_v20  ;;  %v1294_v59 = vld [vmem:[%s1639_s0 + $0xc8] ss:$20 sps:$4 sm:$0xff]   ;;  %v1301_v63 = vld [vmem:[%s1639_s0 + $0xf0] ss:$20 sps:$4 sm:$0xff]   ;;  %v1302_v0 = vld [vmem:[%s1639_s0 + $0xf8] ss:$20 sps:$4 sm:$0xff]  }
  0x16   :  { %1120 = vmatprep.subr.bf16.mxu1 %v1246_v21  ;;  %v1297_v61 = vld [vmem:[%s1639_s0 + $0xf4] ss:$20 sps:$4 sm:$0xff]   ;;  %v1303_v1 = vld [vmem:[%s1639_s0 + $0x10] ss:$20 sps:$4 sm:$0xff]   ;;  %v1305_v3 = vld [vmem:[%s1639_s0 + $0x38] ss:$20 sps:$4 sm:$0xff]  }
  0x17   :  { %v1304_v2 = vld [vmem:[%s1639_s0 + $0xb0] ss:$20 sps:$4 sm:$0xff]   ;;  %v1306_v4 = vld [vmem:[%s1639_s0 + $0xd8] ss:$20 sps:$4 sm:$0xff]   ;;  %v1307_v5 = vld [vmem:[%s1639_s0 + $0x60] ss:$20 sps:$4 sm:$0xff]  }
  0x18   :  { %1063 = vmatpush3.bf16.msra.mxu0 %v1247_v22  ;;  %v1308_v6 = vld [vmem:[%s1639_s0 + $0x100] ss:$20 sps:$4 sm:$0xff]   ;;  %v1309_v7 = vld [vmem:[%s1639_s0 + $0x88] ss:$20 sps:$4 sm:$0xff]  }
  0x19   :  { %1121 = vmatpush3.bf16.msra.mxu1 %v1248_v23  ;;  %1064 = vmatprep.subr.bf16.mxu0 %v1249_v24  ;;  %v1577_v9 = vld [vmem:[%s1640_s2] ss:$0 sm:$0xff] }
  0x1a   :  { %1122 = vmatprep.subr.bf16.mxu1 %v1250_v25 }
  0x1c   :  { %1065 = vmatpush3.bf16.msra.mxu0 %v1251_v26 }
  0x1d   :  { %1123 = vmatpush3.bf16.msra.mxu1 %v1252_v27  ;;  %1066 = vmatprep.subr.bf16.mxu0 %v1253_v28 }
  0x1e   :  { %1124 = vmatprep.subr.bf16.mxu1 %v1254_v29 }
  0x20   :  { %1067 = vmatpush3.bf16.msra.mxu0 %v1255_v30 }
  0x21   :  { %1125 = vmatpush3.bf16.msra.mxu1 %v1256_v31  ;;  %1179 = vmatprep.subr.bf16.mxu0 %v1310_v34 }
  0x22   :  { %1215 = vmatprep.subr.bf16.mxu1 %v1310_v34 }
  0x23   :  { %582 = vmatmul.mubr.bf16.vlgmr.msra.gmra.mrb[0].mxu0 %v1257_v32 }
  0x24   :  { %671 = vmatmul.mubr.bf16.vlgmr.msra.gmra.mrb[0].mxu1 %v1260_v35  ;;  %1180 = vmatpush3.bf16.msra.mxu0 %v1263_v37 }
  0x25   :  { %589 = vmatprep.mubr.bf16.mxu0 %v1264_v38  ;;  %1219 = vmatpush3.bf16.msra.mxu1 %v1263_v37 }
  0x26   :  { %678 = vmatprep.mubr.bf16.mxu1 %v1266_v39  ;;  %1181 = vmatprep.subr.bf16.mxu0 %v1310_v34 }
  0x27   :  { %1216 = vmatprep.subr.bf16.mxu1 %v1310_v34 }
  0x28   :  { %1182 = vmatpush3.bf16.msra.mxu0 %v1274_v43 }
  0x29   :  { %1220 = vmatpush3.bf16.msra.mxu1 %v1274_v43  ;;  %1183 = vmatprep.subr.bf16.mxu0 %v1310_v34 }
  0x2a   :  { %1217 = vmatprep.subr.bf16.mxu1 %v1310_v34 }
  0x2b   :  { %590 = vmatmul.mubr.bf16.gmra.mrb[4].mxu0 %v1268_v40 }
  0x2c   :  { %679 = vmatmul.mubr.bf16.gmra.mrb[4].mxu1 %v1269_v41  ;;  %597 = vmatprep.mubr.bf16.mxu0 %v1270_v42 }
  0x2d   :  { %686 = vmatprep.mubr.bf16.mxu1 %v1272_v44  ;;  %1184 = vmatpush3.bf16.msra.mxu0 %v1283_v45 }
  0x2e   :  { %1221 = vmatpush3.bf16.msra.mxu1 %v1283_v45  ;;  %1185 = vmatprep.subr.bf16.mxu0 %v1310_v34 }
  0x2f   :  { %1218 = vmatprep.subr.bf16.mxu1 %v1310_v34 }
  0x31   :  { %1186 = vmatpush3.bf16.msra.mxu0 %v1296_v50 }
  0x32   :  { %1222 = vmatpush3.bf16.msra.mxu1 %v1296_v50 }
  0x33   :  { %598 = vmatmul.mubr.bf16.gmra.mrb[8].mxu0 %v1275_v46 }
  0x34   :  { %687 = vmatmul.mubr.bf16.gmra.mrb[8].mxu1 %v1276_v47  ;;  %605 = vmatprep.mubr.bf16.mxu0 %v1277_v48 }
  0x35   :  { %694 = vmatprep.mubr.bf16.mxu1 %v1279_v49 }
  0x3b   :  { %606 = vmatmul.mubr.bf16.gmra.mrb[12].mxu0 %v1281_v51 }
  0x3c   :  { %695 = vmatmul.mubr.bf16.gmra.mrb[12].mxu1 %v1282_v52  ;;  %613 = vmatprep.mubr.bf16.mxu0 %v1284_v53 }
  0x3d   :  { %702 = vmatprep.mubr.bf16.mxu1 %v1286_v54 }
  0x43   :  { %614 = vmatmul.mubr.bf16.gmra.mrb[16].mxu0 %v1288_v55 }
  0x44   :  { %703 = vmatmul.mubr.bf16.gmra.mrb[16].mxu1 %v1289_v56  ;;  %621 = vmatprep.mubr.bf16.mxu0 %v1290_v57 }
  0x45   :  { %710 = vmatprep.mubr.bf16.mxu1 %v1292_v58 }
  0x4b   :  { %622 = vmatmul.mubr.bf16.gmra.mrb[20].mxu0 %v1294_v59 }
  0x4c   :  { %711 = vmatmul.mubr.bf16.gmra.mrb[20].mxu1 %v1295_v60  ;;  %629 = vmatprep.mubr.bf16.mxu0 %v1297_v61 }
  0x4d   :  { %718 = vmatprep.mubr.bf16.mxu1 %v1299_v62 }
  0x53   :  { %630 = vmatmul.mubr.bf16.gmra.mrb[24].mxu0 %v1301_v63 }
  0x54   :  { %719 = vmatmul.mubr.bf16.gmra.mrb[24].mxu1 %v1302_v0  ;;  %1187 = vmatprep.mubr.msk.bf16.mxu0 %vm1311_vm0, %v1310_v34 }
  0x55   :  { %1203 = vmatprep.mubr.msk.bf16.mxu1 %vm1311_vm0, %v1310_v34 }
  0x5b   :  { %1188 = vmatmul.mubr.msk.bf16.vlgmr.msra.gmra.mrb[28].mxu0 %vm527_vm1, %v1303_v1 }
  0x5c   :  { %1204 = vmatmul.mubr.msk.bf16.vlgmr.msra.gmra.mrb[28].mxu1 %vm527_vm1, %v1304_v2  ;;  %1191 = vmatprep.mubr.msk.bf16.mxu0 %vm1311_vm0, %v1310_v34 }
  0x5d   :  { %1207 = vmatprep.mubr.msk.bf16.mxu1 %vm1311_vm0, %v1310_v34 }
  0x63   :  { %1192 = vmatmul.mubr.msk.bf16.gmra.mrb[32].mxu0 %vm527_vm1, %v1305_v3 }
  0x64   :  { %1208 = vmatmul.mubr.msk.bf16.gmra.mrb[32].mxu1 %vm527_vm1, %v1306_v4  ;;  %1195 = vmatprep.mubr.msk.bf16.mxu0 %vm1311_vm0, %v1310_v34 }
  0x65   :  { %1211 = vmatprep.mubr.msk.bf16.mxu1 %vm1311_vm0, %v1310_v34 }
  0x6b   :  { %1196 = vmatmul.mubr.msk.bf16.gmra.mrb[36].mxu0 %vm527_vm1, %v1307_v5 }
  0x6c   :  { %1212 = vmatmul.mubr.msk.bf16.gmra.mrb[36].mxu1 %vm527_vm1, %v1308_v6  ;;  %1199 = vmatprep.mubr.msk.bf16.mxu0 %vm1311_vm0, %v1310_v34 }
  0x73   :  { %1200 = vmatmul.mubr.msk.bf16.gmra.mrb[40].mxu0 %vm527_vm1, %v1309_v7 }
  0xf6   :  { %v1068_v8 = vpop.f32.mrb[0].mxu0 }
  0xf7   :  { %v1069_v10 = vpop.f32.mrb[1].mxu0  ;;  %v1126_v11 = vpop.f32.mrb[0].mxu1 }
  0xf8   :  { %v1070_v12 = vadd.f32 %v1069_v10, %v1068_v8  ;;  %v1071_v13 = vpop.f32.mrb[2].mxu0  ;;  %v1127_v14 = vpop.f32.mrb[1].mxu1 }
  0xf9   :  { %v1072_v15 = vpop.f32.mrb[3].mxu0  ;;  %v1128_v16 = vadd.f32 %v1127_v14, %v1126_v11  ;;  %v1129_v17 = vpop.f32.mrb[2].mxu1 }
  0xfa   :  { %v584_v18 = vadd.f32 %v1070_v12, %v1577_v9  ;;  %v1073_v19 = vadd.f32 %v1072_v15, %v1071_v13  ;;  %v1130_v20 = vpop.f32.mrb[3].mxu1 }
  0xfb   :  { %v1131_v21 = vadd.f32 %v1130_v20, %v1129_v17 }
  0xfc   :  { %v587_v22 = vadd.f32 %v1073_v19, %v1577_v9  ;;  %v1581_v23 = vadd.f32 %v1128_v16, %v584_v18 }
  0xfe   :  { %v1074_v24 = vpop.f32.mrb[4].mxu0  ;;  %v1583_v25 = vadd.f32 %v1131_v21, %v587_v22 }
  0xff   :  { %v1075_v26 = vpop.f32.mrb[5].mxu0  ;;  %v1132_v27 = vpop.f32.mrb[4].mxu1 }
 0x100   :  { %v1076_v28 = vadd.f32 %v1075_v26, %v1074_v24  ;;  %v1077_v29 = vpop.f32.mrb[6].mxu0  ;;  %v1133_v30 = vpop.f32.mrb[5].mxu1 }
 0x101   :  { %v1078_v31 = vpop.f32.mrb[7].mxu0  ;;  %v1134_v32 = vadd.f32 %v1133_v30, %v1132_v27  ;;  %v1135_v33 = vpop.f32.mrb[6].mxu1 }
 0x102   :  { %v592_v34 = vadd.f32 %v1076_v28, %v1577_v9  ;;  %v1079_v35 = vadd.f32 %v1078_v31, %v1077_v29  ;;  %v1136_v36 = vpop.f32.mrb[7].mxu1 }
 0x103   :  { %v1137_v37 = vadd.f32 %v1136_v36, %v1135_v33 }
 0x104   :  { %v595_v38 = vadd.f32 %v1079_v35, %v1577_v9  ;;  %v1587_v39 = vadd.f32 %v1134_v32, %v592_v34 }
 0x106   :  { %v1080_v40 = vpop.f32.mrb[8].mxu0  ;;  %v1589_v41 = vadd.f32 %v1137_v37, %v595_v38 }
 0x107   :  { %v1081_v42 = vpop.f32.mrb[9].mxu0  ;;  %v1138_v43 = vpop.f32.mrb[8].mxu1 }
 0x108   :  { %v1082_v44 = vadd.f32 %v1081_v42, %v1080_v40  ;;  %v1083_v45 = vpop.f32.mrb[10].mxu0  ;;  %v1139_v46 = vpop.f32.mrb[9].mxu1 }
 0x109   :  { %v1084_v47 = vpop.f32.mrb[11].mxu0  ;;  %v1140_v48 = vadd.f32 %v1139_v46, %v1138_v43  ;;  %v1141_v49 = vpop.f32.mrb[10].mxu1 }
 0x10a   :  { %v600_v50 = vadd.f32 %v1082_v44, %v1577_v9  ;;  %v1085_v51 = vadd.f32 %v1084_v47, %v1083_v45  ;;  %v1142_v52 = vpop.f32.mrb[11].mxu1 }
 0x10b   :  { %v1143_v53 = vadd.f32 %v1142_v52, %v1141_v49 }
 0x10c   :  { %v603_v54 = vadd.f32 %v1085_v51, %v1577_v9  ;;  %v1593_v55 = vadd.f32 %v1140_v48, %v600_v50 }
 0x10e   :  { %v1086_v56 = vpop.f32.mrb[12].mxu0  ;;  %v1595_v57 = vadd.f32 %v1143_v53, %v603_v54 }
 0x10f   :  { %v1087_v58 = vpop.f32.mrb[13].mxu0  ;;  %v1144_v59 = vpop.f32.mrb[12].mxu1 }
 0x110   :  { %v1088_v60 = vadd.f32 %v1087_v58, %v1086_v56  ;;  %v1089_v61 = vpop.f32.mrb[14].mxu0  ;;  %v1145_v62 = vpop.f32.mrb[13].mxu1 }
 0x111   :  { %v1090_v63 = vpop.f32.mrb[15].mxu0  ;;  %v1146_v0 = vadd.f32 %v1145_v62, %v1144_v59  ;;  %v1147_v1 = vpop.f32.mrb[14].mxu1 }
 0x112   :  { %v608_v2 = vadd.f32 %v1088_v60, %v1577_v9  ;;  %v1091_v3 = vadd.f32 %v1090_v63, %v1089_v61  ;;  %v1148_v4 = vpop.f32.mrb[15].mxu1 }
 0x113   :  { %v1149_v5 = vadd.f32 %v1148_v4, %v1147_v1 }
 0x114   :  { %v611_v6 = vadd.f32 %v1091_v3, %v1577_v9  ;;  %v1599_v7 = vadd.f32 %v1146_v0, %v608_v2 }
 0x116   :  { %v1092_v8 = vpop.f32.mrb[16].mxu0  ;;  %v1601_v10 = vadd.f32 %v1149_v5, %v611_v6 }
 0x117   :  { %v1093_v11 = vpop.f32.mrb[17].mxu0  ;;  %v1150_v12 = vpop.f32.mrb[16].mxu1 }
 0x118   :  { %v1094_v13 = vadd.f32 %v1093_v11, %v1092_v8  ;;  %v1095_v14 = vpop.f32.mrb[18].mxu0  ;;  %v1151_v15 = vpop.f32.mrb[17].mxu1 }
 0x119   :  { %v1096_v16 = vpop.f32.mrb[19].mxu0  ;;  %v1152_v17 = vadd.f32 %v1151_v15, %v1150_v12  ;;  %v1153_v18 = vpop.f32.mrb[18].mxu1 }
 0x11a   :  { %v616_v19 = vadd.f32 %v1094_v13, %v1577_v9  ;;  %v1097_v20 = vadd.f32 %v1096_v16, %v1095_v14  ;;  %v1154_v21 = vpop.f32.mrb[19].mxu1 }
 0x11b   :  { %v1155_v22 = vadd.f32 %v1154_v21, %v1153_v18 }
 0x11c   :  { %v619_v24 = vadd.f32 %v1097_v20, %v1577_v9  ;;  %v705_v26 = vadd.f32 %v1152_v17, %v616_v19 }
 0x11e   :  { %v1098_v27 = vpop.f32.mrb[20].mxu0  ;;  %v708_v28 = vadd.f32 %v1155_v22, %v619_v24 }
 0x11f   :  { %v1099_v29 = vpop.f32.mrb[21].mxu0  ;;  %v1156_v30 = vpop.f32.mrb[20].mxu1 }
 0x120   :  { %v1100_v31 = vadd.f32 %v1099_v29, %v1098_v27  ;;  %v1101_v32 = vpop.f32.mrb[22].mxu0  ;;  %v1157_v33 = vpop.f32.mrb[21].mxu1 }
 0x121   :  { %v1102_v34 = vpop.f32.mrb[23].mxu0  ;;  %v1158_v35 = vadd.f32 %v1157_v33, %v1156_v30  ;;  %v1159_v36 = vpop.f32.mrb[22].mxu1 }
 0x122   :  { %v624_v37 = vadd.f32 %v1100_v31, %v1577_v9  ;;  %v1103_v38 = vadd.f32 %v1102_v34, %v1101_v32  ;;  %v1160_v40 = vpop.f32.mrb[23].mxu1 }
 0x123   :  { %v1161_v42 = vadd.f32 %v1160_v40, %v1159_v36 }
 0x124   :  { %v627_v43 = vadd.f32 %v1103_v38, %v1577_v9  ;;  %v713_v44 = vadd.f32 %v1158_v35, %v624_v37 }
 0x126   :  { %v1104_v45 = vpop.f32.mrb[24].mxu0  ;;  %v716_v46 = vadd.f32 %v1161_v42, %v627_v43 }
 0x127   :  { %v1105_v47 = vpop.f32.mrb[25].mxu0  ;;  %v1162_v48 = vpop.f32.mrb[24].mxu1 }
 0x128   :  { %v1106_v49 = vadd.f32 %v1105_v47, %v1104_v45  ;;  %v1107_v50 = vpop.f32.mrb[26].mxu0  ;;  %v1163_v51 = vpop.f32.mrb[25].mxu1 }
 0x129   :  { %v1108_v52 = vpop.f32.mrb[27].mxu0  ;;  %v1164_v53 = vadd.f32 %v1163_v51, %v1162_v48  ;;  %v1165_v54 = vpop.f32.mrb[26].mxu1 }
 0x12a   :  { %v632_v56 = vadd.f32 %v1106_v49, %v1577_v9  ;;  %v1109_v58 = vadd.f32 %v1108_v52, %v1107_v50  ;;  %v1166_v59 = vpop.f32.mrb[27].mxu1 }
 0x12b   :  { %v1167_v60 = vadd.f32 %v1166_v59, %v1165_v54 }
 0x12c   :  { %v635_v61 = vadd.f32 %v1109_v58, %v1577_v9  ;;  %v721_v62 = vadd.f32 %v1164_v53, %v632_v56 }
 0x12e   :  { %v761_v63 = vpop.f32.mrb[28].mxu0  ;;  %v724_v0 = vadd.f32 %v1167_v60, %v635_v61 }
 0x12f   :  { %v762_v1 = vadd.f32 %v761_v63, %v1581_v23  ;;  %v793_v2 = vpop.f32.mrb[28].mxu1  ;;  %v1189_v3 = vpop.f32.mrb[29].mxu0 }
 0x130   :  { %v794_v4 = vadd.f32 %v793_v2, %v705_v26  ;;  %v1205_v5 = vpop.f32.mrb[29].mxu1  ;;  %v764_v6 = vpop.f32.mrb[30].mxu0 }
 0x131   :  { %v765_v8 = vadd.f32 %v764_v6, %v1583_v25  ;;  %v796_v11 = vpop.f32.mrb[30].mxu1  ;;  %v1190_v12 = vpop.f32.mrb[31].mxu0  ;;  %v816_v15 = vmax.f32 %v762_v1, 0.0 }
 0x132   :  { %v797_v13 = vadd.f32 %v796_v11, %v708_v28  ;;  %v1206_v14 = vpop.f32.mrb[31].mxu1  ;;  %v824_v17 = vmax.f32 %v794_v4, 0.0 }
 0x133   :  { %v817_v16 = vmax.f32 %v765_v8, 0.0 }
 0x134   :  { %v825_v9 = vmax.f32 %v797_v13, 0.0 }
 0x135   :  { %v1014_v18 = vpack.c.bf16 %v817_v16, %v816_v15 }
 0x136   :  { %v1034_v19 = vpack.c.bf16 %v825_v9, %v824_v17  ;;  %v769_v20 = vpop.f32.mrb[32].mxu0 }
 0x137   :  { %1015 = vst [vmem:[%s1641_s3] sm:$0xff] %v1014_v18   ;;  %v770_v23 = vadd.f32 %v769_v20, %v1587_v39  ;;  %v801_v21 = vpop.f32.mrb[32].mxu1  ;;  %v1193_v22 = vpop.f32.mrb[33].mxu0 }
 0x138   :  { %1049 = vst [vmem:[%s1641_s3 + $0x20] sm:$0xff] %v1034_v19   ;;  %v802_v25 = vadd.f32 %v801_v21, %v713_v44  ;;  %v1209_v24 = vpop.f32.mrb[33].mxu1  ;;  %v772_v26 = vpop.f32.mrb[34].mxu0 }
 0x139   :  { %v773_v27 = vadd.f32 %v772_v26, %v1589_v41  ;;  %v804_v28 = vpop.f32.mrb[34].mxu1  ;;  %v1194_v29 = vpop.f32.mrb[35].mxu0  ;;  %v818_v32 = vmax.f32 %v770_v23, 0.0 }
 0x13a   :  { %v805_v30 = vadd.f32 %v804_v28, %v716_v46  ;;  %v1210_v31 = vpop.f32.mrb[35].mxu1  ;;  %v826_v34 = vmax.f32 %v802_v25, 0.0 }
 0x13b   :  { %v819_v33 = vmax.f32 %v773_v27, 0.0 }
 0x13c   :  { %v827_v35 = vmax.f32 %v805_v30, 0.0 }
 0x13d   :  { %v1019_v39 = vpack.c.bf16 %v819_v33, %v818_v32 }
 0x13e   :  { %v1039_v36 = vpack.c.bf16 %v827_v35, %v826_v34  ;;  %v777_v37 = vpop.f32.mrb[36].mxu0 }
 0x13f   :  { %1046 = vst [vmem:[%s1641_s3 + $0x8] sm:$0xff] %v1019_v39   ;;  %v778_v38 = vadd.f32 %v777_v37, %v1593_v55  ;;  %v809_v40 = vpop.f32.mrb[36].mxu1  ;;  %v1197_v42 = vpop.f32.mrb[37].mxu0 }
 0x140   :  { %1050 = vst [vmem:[%s1641_s3 + $0x28] sm:$0xff] %v1039_v36   ;;  %v810_v41 = vadd.f32 %v809_v40, %v721_v62  ;;  %v1213_v43 = vpop.f32.mrb[37].mxu1  ;;  %v780_v44 = vpop.f32.mrb[38].mxu0 }
 0x141   :  { %v781_v45 = vadd.f32 %v780_v44, %v1595_v57  ;;  %v812_v46 = vpop.f32.mrb[38].mxu1  ;;  %v1198_v47 = vpop.f32.mrb[39].mxu0  ;;  %v820_v50 = vmax.f32 %v778_v38, 0.0 }
 0x142   :  { %v813_v48 = vadd.f32 %v812_v46, %v724_v0  ;;  %v1214_v49 = vpop.f32.mrb[39].mxu1  ;;  %v828_v52 = vmax.f32 %v810_v41, 0.0 }
 0x143   :  { %v821_v51 = vmax.f32 %v781_v45, 0.0 }
 0x144   :  { %v829_v53 = vmax.f32 %v813_v48, 0.0 }
 0x145   :  { %v1024_v55 = vpack.c.bf16 %v821_v51, %v820_v50 }
 0x146   :  { %v1044_v54 = vpack.c.bf16 %v829_v53, %v828_v52  ;;  %v785_v56 = vpop.f32.mrb[40].mxu0 }
 0x147   :  { %1047 = vst [vmem:[%s1641_s3 + $0x10] sm:$0xff] %v1024_v55   ;;  %v786_v58 = vadd.f32 %v785_v56, %v1599_v7  ;;  %v1201_v59 = vpop.f32.mrb[41].mxu0 }
 0x148   :  { %1051 = vst [vmem:[%s1641_s3 + $0x30] sm:$0xff] %v1044_v54   ;;  %v788_v57 = vpop.f32.mrb[42].mxu0 }
 0x149   :  { %v789_v60 = vadd.f32 %v788_v57, %v1601_v10  ;;  %v1202_v61 = vpop.f32.mrb[43].mxu0  ;;  %v822_v62 = vmax.f32 %v786_v58, 0.0 }
 0x14b   :  { %v823_v63 = vmax.f32 %v789_v60, 0.0 }
 0x14d   :  { %v1029_v0 = vpack.c.bf16 %v823_v63, %v822_v62 }
 0x14f   :  { %1048 = vst [vmem:[%s1641_s3 + $0x18] sm:$0xff] %v1029_v0  }

// kernel: dqn_forward.7
= control target key start
LH: loop header
LB: loop body
LE: loop exit
PB: predicated region body
PF: predicated region fallthrough
CT: control target
= control target key end

     0   :  { %vm4898_vm0 = vcmask 523264   ;;  %s11187_s1 = inlined_call_operand.vmem [shape: bf16[3136,512], index: 1, kind: input, shape index: {}]   ;;  %s11188_s0 = inlined_call_operand.vmem [shape: bf16[16,3136], index: 0, kind: input, shape index: {}]   ;;  %s11189_s3 = inlined_call_operand.vmem [shape: bf16[512,128], index: 3, kind: input, shape index: {}]   ;;  %s11190_s2 = inlined_call_operand.vmem [shape: f32[1,512], index: 2, kind: input, shape index: {}]   ;;  %s11191_s4 = inlined_call_operand.vmem [shape: f32[1,128], index: 4, kind: input, shape index: {}]   ;;  %s11192_s5 = inlined_call_operand.vmem [shape: f32[16,128], index: 5, kind: output, shape index: {}]  }
   0x1   :  { %v7376_v0 = vld [vmem:[%s11187_s1 + $0x4] ss:$16 sps:$4 sm:$0xff]   ;;  %v7378_v1 = vld [vmem:[%s11187_s1 + $0xc] ss:$16 sps:$4 sm:$0xff]   ;;  %v7380_v2 = vld [vmem:[%s11187_s1] ss:$16 sps:$4 sm:$0xff]  }
   0x2   :  { %4902 = vmatprep.subr.bf16.mxu0 %v7376_v0  ;;  %v7381_v3 = vld [vmem:[%s11187_s1 + $0x8] ss:$16 sps:$4 sm:$0xff]   ;;  %5461 = vmatprep.subr.bf16.mxu1 %v7378_v1  ;;  %v7382_v4 = vld [vmem:[%s11187_s1 + $0x24] ss:$16 sps:$4 sm:$0xff]   ;;  %v7384_v5 = vld [vmem:[%s11187_s1 + $0x2c] ss:$16 sps:$4 sm:$0xff]  }
   0x3   :  { %4903 = vmatpush1.bf16.msra.mxu0 %v7380_v2  ;;  %5462 = vmatpush1.bf16.msra.mxu1 %v7381_v3  ;;  %v7386_v6 = vld [vmem:[%s11187_s1 + $0x20] ss:$16 sps:$4 sm:$0xff]   ;;  %v7387_v7 = vld [vmem:[%s11187_s1 + $0x28] ss:$16 sps:$4 sm:$0xff]   ;;  %v7388_v8 = vld [vmem:[%s11187_s1 + $0x44] ss:$16 sps:$4 sm:$0xff]  }
   0x4   :  { %4904 = vmatprep.subr.bf16.mxu0 %v7382_v4  ;;  %5463 = vmatprep.subr.bf16.mxu1 %v7384_v5  ;;  %v7390_v9 = vld [vmem:[%s11187_s1 + $0x4c] ss:$16 sps:$4 sm:$0xff]   ;;  %v7392_v10 = vld [vmem:[%s11187_s1 + $0x40] ss:$16 sps:$4 sm:$0xff]   ;;  %v7393_v11 = vld [vmem:[%s11187_s1 + $0x48] ss:$16 sps:$4 sm:$0xff]  }
   0x5   :  { %v7394_v12 = vld [vmem:[%s11187_s1 + $0x64] ss:$16 sps:$4 sm:$0xff]   ;;  %v7396_v13 = vld [vmem:[%s11187_s1 + $0x6c] ss:$16 sps:$4 sm:$0xff]   ;;  %v7398_v14 = vld [vmem:[%s11187_s1 + $0x60] ss:$16 sps:$4 sm:$0xff]  }
   0x6   :  { %v7399_v15 = vld [vmem:[%s11187_s1 + $0x68] ss:$16 sps:$4 sm:$0xff]   ;;  %v7400_v16 = vld [vmem:[%s11187_s1 + $0x84] ss:$16 sps:$4 sm:$0xff]   ;;  %v7402_v17 = vld [vmem:[%s11187_s1 + $0x8c] ss:$16 sps:$4 sm:$0xff]  }
   0x7   :  { %4905 = vmatpush1.bf16.msra.mxu0 %v7386_v6  ;;  %5464 = vmatpush1.bf16.msra.mxu1 %v7387_v7  ;;  %v7404_v18 = vld [vmem:[%s11187_s1 + $0x80] ss:$16 sps:$4 sm:$0xff]   ;;  %v7405_v19 = vld [vmem:[%s11187_s1 + $0x88] ss:$16 sps:$4 sm:$0xff]   ;;  %v7406_v20 = vld [vmem:[%s11187_s1 + $0xa4] ss:$16 sps:$4 sm:$0xff]  }
   0x8   :  { %4906 = vmatprep.subr.bf16.mxu0 %v7388_v8  ;;  %5465 = vmatprep.subr.bf16.mxu1 %v7390_v9  ;;  %v7408_v21 = vld [vmem:[%s11187_s1 + $0xac] ss:$16 sps:$4 sm:$0xff]   ;;  %v7410_v22 = vld [vmem:[%s11187_s1 + $0xa0] ss:$16 sps:$4 sm:$0xff]   ;;  %v7411_v23 = vld [vmem:[%s11187_s1 + $0xa8] ss:$16 sps:$4 sm:$0xff]  }
   0x9   :  { %v7412_v24 = vld [vmem:[%s11187_s1 + $0xc4] ss:$16 sps:$4 sm:$0xff]   ;;  %v7414_v25 = vld [vmem:[%s11187_s1 + $0xcc] ss:$16 sps:$4 sm:$0xff]   ;;  %v7416_v26 = vld [vmem:[%s11187_s1 + $0xc0] ss:$16 sps:$4 sm:$0xff]  }
   0xa   :  { %v7417_v27 = vld [vmem:[%s11187_s1 + $0xc8] ss:$16 sps:$4 sm:$0xff]   ;;  %v7418_v28 = vld [vmem:[%s11187_s1 + $0xe4] ss:$16 sps:$4 sm:$0xff]   ;;  %v7420_v29 = vld [vmem:[%s11187_s1 + $0xec] ss:$16 sps:$4 sm:$0xff]  }
   0xb   :  { %4907 = vmatpush1.bf16.msra.mxu0 %v7392_v10  ;;  %5466 = vmatpush1.bf16.msra.mxu1 %v7393_v11  ;;  %v7422_v30 = vld [vmem:[%s11187_s1 + $0xe0] ss:$16 sps:$4 sm:$0xff]   ;;  %v7423_v31 = vld [vmem:[%s11187_s1 + $0xe8] ss:$16 sps:$4 sm:$0xff]   ;;  %v7424_v32 = vld [vmem:[%s11187_s1 + $0x104] ss:$16 sps:$4 sm:$0xff]  }
   0xc   :  { %4908 = vmatprep.subr.bf16.mxu0 %v7394_v12  ;;  %5467 = vmatprep.subr.bf16.mxu1 %v7396_v13  ;;  %v7426_v33 = vld [vmem:[%s11187_s1 + $0x10c] ss:$16 sps:$4 sm:$0xff]   ;;  %v7428_v34 = vld [vmem:[%s11187_s1 + $0x100] ss:$16 sps:$4 sm:$0xff]   ;;  %v7429_v35 = vld [vmem:[%s11187_s1 + $0x108] ss:$16 sps:$4 sm:$0xff]  }
   0xd   :  { %v7430_v36 = vld [vmem:[%s11187_s1 + $0x124] ss:$16 sps:$4 sm:$0xff]   ;;  %v7432_v37 = vld [vmem:[%s11187_s1 + $0x12c] ss:$16 sps:$4 sm:$0xff]   ;;  %v7434_v38 = vld [vmem:[%s11187_s1 + $0x120] ss:$16 sps:$4 sm:$0xff]  }
   0xe   :  { %v7435_v39 = vld [vmem:[%s11187_s1 + $0x128] ss:$16 sps:$4 sm:$0xff]   ;;  %v7436_v40 = vld [vmem:[%s11187_s1 + $0x144] ss:$16 sps:$4 sm:$0xff]   ;;  %v7438_v41 = vld [vmem:[%s11187_s1 + $0x14c] ss:$16 sps:$4 sm:$0xff]  }
   0xf   :  { %4909 = vmatpush1.bf16.msra.mxu0 %v7398_v14  ;;  %5468 = vmatpush1.bf16.msra.mxu1 %v7399_v15  ;;  %v7440_v42 = vld [vmem:[%s11187_s1 + $0x140] ss:$16 sps:$4 sm:$0xff]   ;;  %v7441_v43 = vld [vmem:[%s11187_s1 + $0x148] ss:$16 sps:$4 sm:$0xff]   ;;  %v7442_v44 = vld [vmem:[%s11187_s1 + $0x164] ss:$16 sps:$4 sm:$0xff]  }
  0x10   :  { %4910 = vmatprep.subr.bf16.mxu0 %v7400_v16  ;;  %5469 = vmatprep.subr.bf16.mxu1 %v7402_v17  ;;  %v7444_v45 = vld [vmem:[%s11187_s1 + $0x16c] ss:$16 sps:$4 sm:$0xff]   ;;  %v7446_v46 = vld [vmem:[%s11187_s1 + $0x160] ss:$16 sps:$4 sm:$0xff]   ;;  %v7447_v47 = vld [vmem:[%s11187_s1 + $0x168] ss:$16 sps:$4 sm:$0xff]  }
  0x11   :  { %v7474_v48 = vld [vmem:[%s11188_s0 + $0x4] ss:$100 sps:$4 sm:$0xff]   ;;  %v7450_v50 = vld [vmem:[%s11187_s1 + $0x18c] ss:$16 sps:$4 sm:$0xff]   ;;  %v7452_v51 = vld [vmem:[%s11187_s1 + $0x180] ss:$16 sps:$4 sm:$0xff]  }
  0x12   :  { %v7448_v49 = vld [vmem:[%s11187_s1 + $0x184] ss:$16 sps:$4 sm:$0xff]   ;;  %4934 = vmatprep.mubr.bf16.mxu0 %v7474_v48  ;;  %5493 = vmatprep.mubr.bf16.mxu1 %v7474_v48  ;;  %v7453_v52 = vld [vmem:[%s11187_s1 + $0x188] ss:$16 sps:$4 sm:$0xff]   ;;  %v7456_v54 = vld [vmem:[%s11187_s1 + $0x1ac] ss:$16 sps:$4 sm:$0xff]  }
  0x13   :  { %4911 = vmatpush1.bf16.msra.mxu0 %v7404_v18  ;;  %5470 = vmatpush1.bf16.msra.mxu1 %v7405_v19  ;;  %v7454_v53 = vld [vmem:[%s11187_s1 + $0x1a4] ss:$16 sps:$4 sm:$0xff]   ;;  %v7458_v55 = vld [vmem:[%s11187_s1 + $0x1a0] ss:$16 sps:$4 sm:$0xff]   ;;  %v7459_v56 = vld [vmem:[%s11187_s1 + $0x1a8] ss:$16 sps:$4 sm:$0xff]  }
  0x14   :  { %4912 = vmatprep.subr.bf16.mxu0 %v7406_v20  ;;  %5471 = vmatprep.subr.bf16.mxu1 %v7408_v21  ;;  %v7460_v57 = vld [vmem:[%s11187_s1 + $0x1c4] ss:$16 sps:$4 sm:$0xff]   ;;  %v7462_v58 = vld [vmem:[%s11187_s1 + $0x1cc] ss:$16 sps:$4 sm:$0xff]   ;;  %v7464_v59 = vld [vmem:[%s11187_s1 + $0x1c0] ss:$16 sps:$4 sm:$0xff]  }
  0x15   :  { %v7465_v60 = vld [vmem:[%s11187_s1 + $0x1c8] ss:$16 sps:$4 sm:$0xff]   ;;  %v7466_v61 = vld [vmem:[%s11187_s1 + $0x1e4] ss:$16 sps:$4 sm:$0xff]   ;;  %v7468_v62 = vld [vmem:[%s11187_s1 + $0x1ec] ss:$16 sps:$4 sm:$0xff]  }
  0x16   :  { %v7470_v63 = vld [vmem:[%s11187_s1 + $0x1e0] ss:$16 sps:$4 sm:$0xff]   ;;  %v7471_v0 = vld [vmem:[%s11187_s1 + $0x1e8] ss:$16 sps:$4 sm:$0xff]   ;;  %v7477_v1 = vld [vmem:[%s11187_s1 + $0x204] ss:$16 sps:$4 sm:$0xff]  }
  0x17   :  { %4913 = vmatpush1.bf16.msra.mxu0 %v7410_v22  ;;  %5472 = vmatpush1.bf16.msra.mxu1 %v7411_v23  ;;  %v7480_v2 = vld [vmem:[%s11187_s1 + $0x20c] ss:$16 sps:$4 sm:$0xff]   ;;  %v7472_v3 = vld [vmem:[%s11188_s0] ss:$100 sps:$4 sm:$0xff]   ;;  %v7478_v5 = vld [vmem:[%s11187_s1 + $0x208] ss:$16 sps:$4 sm:$0xff]  }
  0x18   :  { %4914 = vmatprep.subr.bf16.mxu0 %v7412_v24  ;;  %5473 = vmatprep.subr.bf16.mxu1 %v7414_v25  ;;  %v7475_v4 = vld [vmem:[%s11187_s1 + $0x200] ss:$16 sps:$4 sm:$0xff]   ;;  %v7483_v6 = vld [vmem:[%s11187_s1 + $0x224] ss:$16 sps:$4 sm:$0xff]   ;;  %v7486_v7 = vld [vmem:[%s11187_s1 + $0x22c] ss:$16 sps:$4 sm:$0xff]  }
  0x19   :  { %v7481_v8 = vld [vmem:[%s11187_s1 + $0x220] ss:$16 sps:$4 sm:$0xff]   ;;  %v7484_v9 = vld [vmem:[%s11187_s1 + $0x228] ss:$16 sps:$4 sm:$0xff]   ;;  %v7489_v10 = vld [vmem:[%s11187_s1 + $0x244] ss:$16 sps:$4 sm:$0xff]  }
  0x1a   :  { %v7492_v11 = vld [vmem:[%s11187_s1 + $0x24c] ss:$16 sps:$4 sm:$0xff]   ;;  %v7487_v12 = vld [vmem:[%s11187_s1 + $0x240] ss:$16 sps:$4 sm:$0xff]   ;;  %v7490_v13 = vld [vmem:[%s11187_s1 + $0x248] ss:$16 sps:$4 sm:$0xff]  }
  0x1b   :  { %4915 = vmatpush1.bf16.msra.mxu0 %v7416_v26  ;;  %5474 = vmatpush1.bf16.msra.mxu1 %v7417_v27  ;;  %v7495_v14 = vld [vmem:[%s11187_s1 + $0x264] ss:$16 sps:$4 sm:$0xff]   ;;  %v7498_v15 = vld [vmem:[%s11187_s1 + $0x26c] ss:$16 sps:$4 sm:$0xff]   ;;  %v7493_v16 = vld [vmem:[%s11187_s1 + $0x260] ss:$16 sps:$4 sm:$0xff]  }
  0x1c   :  { %4916 = vmatprep.subr.bf16.mxu0 %v7418_v28  ;;  %5475 = vmatprep.subr.bf16.mxu1 %v7420_v29  ;;  %v7496_v17 = vld [vmem:[%s11187_s1 + $0x268] ss:$16 sps:$4 sm:$0xff]   ;;  %v7501_v18 = vld [vmem:[%s11187_s1 + $0x284] ss:$16 sps:$4 sm:$0xff]   ;;  %v7504_v19 = vld [vmem:[%s11187_s1 + $0x28c] ss:$16 sps:$4 sm:$0xff]  }
  0x1d   :  { %v7499_v20 = vld [vmem:[%s11187_s1 + $0x280] ss:$16 sps:$4 sm:$0xff]   ;;  %v7502_v21 = vld [vmem:[%s11187_s1 + $0x288] ss:$16 sps:$4 sm:$0xff]   ;;  %v7507_v22 = vld [vmem:[%s11187_s1 + $0x2a4] ss:$16 sps:$4 sm:$0xff]  }
  0x1e   :  { %v7510_v23 = vld [vmem:[%s11187_s1 + $0x2ac] ss:$16 sps:$4 sm:$0xff]   ;;  %v7505_v24 = vld [vmem:[%s11187_s1 + $0x2a0] ss:$16 sps:$4 sm:$0xff]   ;;  %v7508_v25 = vld [vmem:[%s11187_s1 + $0x2a8] ss:$16 sps:$4 sm:$0xff]  }
  0x1f   :  { %4917 = vmatpush1.bf16.msra.mxu0 %v7422_v30  ;;  %5476 = vmatpush1.bf16.msra.mxu1 %v7423_v31  ;;  %v7513_v26 = vld [vmem:[%s11187_s1 + $0x2c4] ss:$16 sps:$4 sm:$0xff]   ;;  %v7516_v27 = vld [vmem:[%s11187_s1 + $0x2cc] ss:$16 sps:$4 sm:$0xff]   ;;  %v7511_v28 = vld [vmem:[%s11187_s1 + $0x2c0] ss:$16 sps:$4 sm:$0xff]  }
  0x20   :  { %4918 = vmatprep.subr.bf16.mxu0 %v7424_v32  ;;  %5477 = vmatprep.subr.bf16.mxu1 %v7426_v33  ;;  %v7514_v29 = vld [vmem:[%s11187_s1 + $0x2c8] ss:$16 sps:$4 sm:$0xff]   ;;  %v7573_v30 = vld [vmem:[%s11188_s0 + $0xc] ss:$100 sps:$4 sm:$0xff]   ;;  %v7519_v31 = vld [vmem:[%s11187_s1 + $0x2e4] ss:$16 sps:$4 sm:$0xff]  }
  0x21   :  { %v7522_v32 = vld [vmem:[%s11187_s1 + $0x2ec] ss:$16 sps:$4 sm:$0xff]   ;;  %v7517_v33 = vld [vmem:[%s11187_s1 + $0x2e0] ss:$16 sps:$4 sm:$0xff]  }
  0x22   :  { %v7546_v48 = vld [vmem:[%s11187_s1 + $0x36c] ss:$16 sps:$4 sm:$0xff]  }
  0x23   :  { %4919 = vmatpush1.bf16.msra.mxu0 %v7428_v34  ;;  %5478 = vmatpush1.bf16.msra.mxu1 %v7429_v35  ;;  %v7520_v34 = vld [vmem:[%s11187_s1 + $0x2e8] ss:$16 sps:$4 sm:$0xff]   ;;  %v7525_v35 = vld [vmem:[%s11187_s1 + $0x304] ss:$16 sps:$4 sm:$0xff]  }
  0x24   :  { %4920 = vmatprep.subr.bf16.mxu0 %v7430_v36  ;;  %5479 = vmatprep.subr.bf16.mxu1 %v7432_v37  ;;  %v7528_v36 = vld [vmem:[%s11187_s1 + $0x30c] ss:$16 sps:$4 sm:$0xff]   ;;  %v7523_v37 = vld [vmem:[%s11187_s1 + $0x300] ss:$16 sps:$4 sm:$0xff]  }
  0x27   :  { %4921 = vmatpush1.bf16.msra.mxu0 %v7434_v38  ;;  %5480 = vmatpush1.bf16.msra.mxu1 %v7435_v39  ;;  %v7526_v38 = vld [vmem:[%s11187_s1 + $0x308] ss:$16 sps:$4 sm:$0xff]   ;;  %v7531_v39 = vld [vmem:[%s11187_s1 + $0x324] ss:$16 sps:$4 sm:$0xff]  }
  0x28   :  { %4922 = vmatprep.subr.bf16.mxu0 %v7436_v40  ;;  %5481 = vmatprep.subr.bf16.mxu1 %v7438_v41  ;;  %v7534_v40 = vld [vmem:[%s11187_s1 + $0x32c] ss:$16 sps:$4 sm:$0xff]   ;;  %v7529_v41 = vld [vmem:[%s11187_s1 + $0x320] ss:$16 sps:$4 sm:$0xff]  }
  0x2b   :  { %4923 = vmatpush1.bf16.msra.mxu0 %v7440_v42  ;;  %5482 = vmatpush1.bf16.msra.mxu1 %v7441_v43  ;;  %v7532_v42 = vld [vmem:[%s11187_s1 + $0x328] ss:$16 sps:$4 sm:$0xff]   ;;  %v7537_v43 = vld [vmem:[%s11187_s1 + $0x344] ss:$16 sps:$4 sm:$0xff]  }
  0x2c   :  { %4924 = vmatprep.subr.bf16.mxu0 %v7442_v44  ;;  %5483 = vmatprep.subr.bf16.mxu1 %v7444_v45  ;;  %v7540_v44 = vld [vmem:[%s11187_s1 + $0x34c] ss:$16 sps:$4 sm:$0xff]   ;;  %v7535_v45 = vld [vmem:[%s11187_s1 + $0x340] ss:$16 sps:$4 sm:$0xff]  }
  0x2f   :  { %4925 = vmatpush1.bf16.msra.mxu0 %v7446_v46  ;;  %5484 = vmatpush1.bf16.msra.mxu1 %v7447_v47  ;;  %v7538_v46 = vld [vmem:[%s11187_s1 + $0x348] ss:$16 sps:$4 sm:$0xff]   ;;  %v7543_v47 = vld [vmem:[%s11187_s1 + $0x364] ss:$16 sps:$4 sm:$0xff]  }
  0x30   :  { %4926 = vmatprep.subr.bf16.mxu0 %v7448_v49  ;;  %5485 = vmatprep.subr.bf16.mxu1 %v7450_v50  ;;  %v7541_v49 = vld [vmem:[%s11187_s1 + $0x360] ss:$16 sps:$4 sm:$0xff]   ;;  %v7544_v50 = vld [vmem:[%s11187_s1 + $0x368] ss:$16 sps:$4 sm:$0xff]  }
  0x33   :  { %4927 = vmatpush1.bf16.msra.mxu0 %v7452_v51  ;;  %5486 = vmatpush1.bf16.msra.mxu1 %v7453_v52  ;;  %v7549_v51 = vld [vmem:[%s11187_s1 + $0x384] ss:$16 sps:$4 sm:$0xff]   ;;  %v7552_v52 = vld [vmem:[%s11187_s1 + $0x38c] ss:$16 sps:$4 sm:$0xff]  }
  0x34   :  { %4928 = vmatprep.subr.bf16.mxu0 %v7454_v53  ;;  %5487 = vmatprep.subr.bf16.mxu1 %v7456_v54  ;;  %v7547_v53 = vld [vmem:[%s11187_s1 + $0x380] ss:$16 sps:$4 sm:$0xff]   ;;  %v7550_v54 = vld [vmem:[%s11187_s1 + $0x388] ss:$16 sps:$4 sm:$0xff]  }
  0x37   :  { %4929 = vmatpush1.bf16.msra.mxu0 %v7458_v55  ;;  %5488 = vmatpush1.bf16.msra.mxu1 %v7459_v56  ;;  %v7555_v55 = vld [vmem:[%s11187_s1 + $0x3a4] ss:$16 sps:$4 sm:$0xff]   ;;  %v7558_v56 = vld [vmem:[%s11187_s1 + $0x3ac] ss:$16 sps:$4 sm:$0xff]  }
  0x38   :  { %4930 = vmatprep.subr.bf16.mxu0 %v7460_v57  ;;  %5489 = vmatprep.subr.bf16.mxu1 %v7462_v58  ;;  %v7553_v57 = vld [vmem:[%s11187_s1 + $0x3a0] ss:$16 sps:$4 sm:$0xff]   ;;  %v7556_v58 = vld [vmem:[%s11187_s1 + $0x3a8] ss:$16 sps:$4 sm:$0xff]  }
  0x3b   :  { %4931 = vmatpush1.bf16.msra.mxu0 %v7464_v59  ;;  %5490 = vmatpush1.bf16.msra.mxu1 %v7465_v60  ;;  %v7561_v59 = vld [vmem:[%s11187_s1 + $0x3c4] ss:$16 sps:$4 sm:$0xff]   ;;  %v7564_v60 = vld [vmem:[%s11187_s1 + $0x3cc] ss:$16 sps:$4 sm:$0xff]  }
  0x3c   :  { %4932 = vmatprep.subr.bf16.mxu0 %v7466_v61  ;;  %5491 = vmatprep.subr.bf16.mxu1 %v7468_v62  ;;  %v7559_v61 = vld [vmem:[%s11187_s1 + $0x3c0] ss:$16 sps:$4 sm:$0xff]   ;;  %v7562_v62 = vld [vmem:[%s11187_s1 + $0x3c8] ss:$16 sps:$4 sm:$0xff]  }
  0x3f   :  { %4933 = vmatpush1.bf16.msra.mxu0 %v7470_v63  ;;  %5492 = vmatpush1.bf16.msra.mxu1 %v7471_v0  ;;  %v7567_v63 = vld [vmem:[%s11187_s1 + $0x3e4] ss:$16 sps:$4 sm:$0xff]   ;;  %v7570_v0 = vld [vmem:[%s11187_s1 + $0x3ec] ss:$16 sps:$4 sm:$0xff]  }
  0x40   :  { %4945 = vmatprep.subr.bf16.mxu0 %v7477_v1  ;;  %5504 = vmatprep.subr.bf16.mxu1 %v7480_v2  ;;  %v7565_v1 = vld [vmem:[%s11187_s1 + $0x3e0] ss:$16 sps:$4 sm:$0xff]   ;;  %v7568_v2 = vld [vmem:[%s11187_s1 + $0x3e8] ss:$16 sps:$4 sm:$0xff]  }
  0x42   :  { %4935 = vmatmul.mubr.bf16.vlgmr.msra.gmra.mrb[0].mxu0 %v7472_v3  ;;  %5494 = vmatmul.mubr.bf16.vlgmr.msra.gmra.mrb[0].mxu1 %v7472_v3  ;;  %v7576_v3 = vld [vmem:[%s11187_s1 + $0x404] ss:$16 sps:$4 sm:$0xff]  }
  0x43   :  { %4946 = vmatpush1.bf16.msra.mxu0 %v7475_v4  ;;  %5505 = vmatpush1.bf16.msra.mxu1 %v7478_v5  ;;  %v7579_v4 = vld [vmem:[%s11187_s1 + $0x40c] ss:$16 sps:$4 sm:$0xff]  }
  0x44   :  { %4947 = vmatprep.subr.bf16.mxu0 %v7483_v6  ;;  %5506 = vmatprep.subr.bf16.mxu1 %v7486_v7  ;;  %v7571_v5 = vld [vmem:[%s11188_s0 + $0x8] ss:$100 sps:$4 sm:$0xff]   ;;  %v7574_v6 = vld [vmem:[%s11187_s1 + $0x400] ss:$16 sps:$4 sm:$0xff]  }
  0x45   :  { %4977 = vmatprep.mubr.bf16.mxu0 %v7573_v30  ;;  %5536 = vmatprep.mubr.bf16.mxu1 %v7573_v30  ;;  %v7577_v7 = vld [vmem:[%s11187_s1 + $0x408] ss:$16 sps:$4 sm:$0xff]   ;;  %v7615_v30 = vld [vmem:[%s11187_s1 + $0x4cc] ss:$16 sps:$4 sm:$0xff]  }
  0x47   :  { %4948 = vmatpush1.bf16.msra.mxu0 %v7481_v8  ;;  %5507 = vmatpush1.bf16.msra.mxu1 %v7484_v9  ;;  %v7582_v8 = vld [vmem:[%s11187_s1 + $0x424] ss:$16 sps:$4 sm:$0xff]   ;;  %v7585_v9 = vld [vmem:[%s11187_s1 + $0x42c] ss:$16 sps:$4 sm:$0xff]  }
  0x48   :  { %4949 = vmatprep.subr.bf16.mxu0 %v7489_v10  ;;  %5508 = vmatprep.subr.bf16.mxu1 %v7492_v11  ;;  %v7580_v10 = vld [vmem:[%s11187_s1 + $0x420] ss:$16 sps:$4 sm:$0xff]   ;;  %v7583_v11 = vld [vmem:[%s11187_s1 + $0x428] ss:$16 sps:$4 sm:$0xff]  }
  0x4b   :  { %4950 = vmatpush1.bf16.msra.mxu0 %v7487_v12  ;;  %5509 = vmatpush1.bf16.msra.mxu1 %v7490_v13  ;;  %v7672_v12 = vld [vmem:[%s11188_s0 + $0x14] ss:$100 sps:$4 sm:$0xff]  }
  0x4c   :  { %4951 = vmatprep.subr.bf16.mxu0 %v7495_v14  ;;  %5510 = vmatprep.subr.bf16.mxu1 %v7498_v15  ;;  %v7588_v13 = vld [vmem:[%s11187_s1 + $0x444] ss:$16 sps:$4 sm:$0xff]   ;;  %v7591_v14 = vld [vmem:[%s11187_s1 + $0x44c] ss:$16 sps:$4 sm:$0xff]   ;;  %v7586_v15 = vld [vmem:[%s11187_s1 + $0x440] ss:$16 sps:$4 sm:$0xff]  }
  0x4f   :  { %4952 = vmatpush1.bf16.msra.mxu0 %v7493_v16  ;;  %5511 = vmatpush1.bf16.msra.mxu1 %v7496_v17  ;;  %v7589_v16 = vld [vmem:[%s11187_s1 + $0x448] ss:$16 sps:$4 sm:$0xff]   ;;  %v7594_v17 = vld [vmem:[%s11187_s1 + $0x464] ss:$16 sps:$4 sm:$0xff]  }
  0x50   :  { %4953 = vmatprep.subr.bf16.mxu0 %v7501_v18  ;;  %5512 = vmatprep.subr.bf16.mxu1 %v7504_v19  ;;  %v7597_v18 = vld [vmem:[%s11187_s1 + $0x46c] ss:$16 sps:$4 sm:$0xff]   ;;  %v7592_v19 = vld [vmem:[%s11187_s1 + $0x460] ss:$16 sps:$4 sm:$0xff]  }
  0x53   :  { %4954 = vmatpush1.bf16.msra.mxu0 %v7499_v20  ;;  %5513 = vmatpush1.bf16.msra.mxu1 %v7502_v21  ;;  %v7595_v20 = vld [vmem:[%s11187_s1 + $0x468] ss:$16 sps:$4 sm:$0xff]   ;;  %v7600_v21 = vld [vmem:[%s11187_s1 + $0x484] ss:$16 sps:$4 sm:$0xff]  }
  0x54   :  { %4955 = vmatprep.subr.bf16.mxu0 %v7507_v22  ;;  %5514 = vmatprep.subr.bf16.mxu1 %v7510_v23  ;;  %v7603_v22 = vld [vmem:[%s11187_s1 + $0x48c] ss:$16 sps:$4 sm:$0xff]   ;;  %v7598_v23 = vld [vmem:[%s11187_s1 + $0x480] ss:$16 sps:$4 sm:$0xff]  }
  0x57   :  { %4956 = vmatpush1.bf16.msra.mxu0 %v7505_v24  ;;  %5515 = vmatpush1.bf16.msra.mxu1 %v7508_v25  ;;  %v7601_v24 = vld [vmem:[%s11187_s1 + $0x488] ss:$16 sps:$4 sm:$0xff]   ;;  %v7606_v25 = vld [vmem:[%s11187_s1 + $0x4a4] ss:$16 sps:$4 sm:$0xff]  }
  0x58   :  { %4957 = vmatprep.subr.bf16.mxu0 %v7513_v26  ;;  %5516 = vmatprep.subr.bf16.mxu1 %v7516_v27  ;;  %v7609_v26 = vld [vmem:[%s11187_s1 + $0x4ac] ss:$16 sps:$4 sm:$0xff]   ;;  %v7604_v27 = vld [vmem:[%s11187_s1 + $0x4a0] ss:$16 sps:$4 sm:$0xff]  }
  0x5b   :  { %4958 = vmatpush1.bf16.msra.mxu0 %v7511_v28  ;;  %5517 = vmatpush1.bf16.msra.mxu1 %v7514_v29  ;;  %v7607_v28 = vld [vmem:[%s11187_s1 + $0x4a8] ss:$16 sps:$4 sm:$0xff]   ;;  %v7612_v29 = vld [vmem:[%s11187_s1 + $0x4c4] ss:$16 sps:$4 sm:$0xff]  }
  0x5c   :  { %4959 = vmatprep.subr.bf16.mxu0 %v7519_v31  ;;  %5518 = vmatprep.subr.bf16.mxu1 %v7522_v32  ;;  %v7610_v31 = vld [vmem:[%s11187_s1 + $0x4c0] ss:$16 sps:$4 sm:$0xff]   ;;  %v7613_v32 = vld [vmem:[%s11187_s1 + $0x4c8] ss:$16 sps:$4 sm:$0xff]  }
  0x5f   :  { %4960 = vmatpush1.bf16.msra.mxu0 %v7517_v33  ;;  %5519 = vmatpush1.bf16.msra.mxu1 %v7520_v34  ;;  %v7618_v33 = vld [vmem:[%s11187_s1 + $0x4e4] ss:$16 sps:$4 sm:$0xff]   ;;  %v7621_v34 = vld [vmem:[%s11187_s1 + $0x4ec] ss:$16 sps:$4 sm:$0xff]  }
  0x60   :  { %4961 = vmatprep.subr.bf16.mxu0 %v7525_v35  ;;  %5520 = vmatprep.subr.bf16.mxu1 %v7528_v36  ;;  %v7616_v35 = vld [vmem:[%s11187_s1 + $0x4e0] ss:$16 sps:$4 sm:$0xff]   ;;  %v7619_v36 = vld [vmem:[%s11187_s1 + $0x4e8] ss:$16 sps:$4 sm:$0xff]  }
  0x63   :  { %4962 = vmatpush1.bf16.msra.mxu0 %v7523_v37  ;;  %5521 = vmatpush1.bf16.msra.mxu1 %v7526_v38  ;;  %v7624_v37 = vld [vmem:[%s11187_s1 + $0x504] ss:$16 sps:$4 sm:$0xff]   ;;  %v7627_v38 = vld [vmem:[%s11187_s1 + $0x50c] ss:$16 sps:$4 sm:$0xff]  }
  0x64   :  { %4963 = vmatprep.subr.bf16.mxu0 %v7531_v39  ;;  %5522 = vmatprep.subr.bf16.mxu1 %v7534_v40  ;;  %v7622_v39 = vld [vmem:[%s11187_s1 + $0x500] ss:$16 sps:$4 sm:$0xff]   ;;  %v7625_v40 = vld [vmem:[%s11187_s1 + $0x508] ss:$16 sps:$4 sm:$0xff]  }
  0x67   :  { %4964 = vmatpush1.bf16.msra.mxu0 %v7529_v41  ;;  %5523 = vmatpush1.bf16.msra.mxu1 %v7532_v42  ;;  %v7630_v41 = vld [vmem:[%s11187_s1 + $0x524] ss:$16 sps:$4 sm:$0xff]   ;;  %v7633_v42 = vld [vmem:[%s11187_s1 + $0x52c] ss:$16 sps:$4 sm:$0xff]  }
  0x68   :  { %4965 = vmatprep.subr.bf16.mxu0 %v7537_v43  ;;  %5524 = vmatprep.subr.bf16.mxu1 %v7540_v44  ;;  %v7628_v43 = vld [vmem:[%s11187_s1 + $0x520] ss:$16 sps:$4 sm:$0xff]   ;;  %v7631_v44 = vld [vmem:[%s11187_s1 + $0x528] ss:$16 sps:$4 sm:$0xff]  }
  0x6b   :  { %4966 = vmatpush1.bf16.msra.mxu0 %v7535_v45  ;;  %5525 = vmatpush1.bf16.msra.mxu1 %v7538_v46  ;;  %v7636_v45 = vld [vmem:[%s11187_s1 + $0x544] ss:$16 sps:$4 sm:$0xff]   ;;  %v7639_v46 = vld [vmem:[%s11187_s1 + $0x54c] ss:$16 sps:$4 sm:$0xff]  }
  0x6c   :  { %4967 = vmatprep.subr.bf16.mxu0 %v7543_v47  ;;  %5526 = vmatprep.subr.bf16.mxu1 %v7546_v48  ;;  %v7634_v47 = vld [vmem:[%s11187_s1 + $0x540] ss:$16 sps:$4 sm:$0xff]   ;;  %v7637_v48 = vld [vmem:[%s11187_s1 + $0x548] ss:$16 sps:$4 sm:$0xff]  }
  0x6f   :  { %4968 = vmatpush1.bf16.msra.mxu0 %v7541_v49  ;;  %5527 = vmatpush1.bf16.msra.mxu1 %v7544_v50  ;;  %v7642_v49 = vld [vmem:[%s11187_s1 + $0x564] ss:$16 sps:$4 sm:$0xff]   ;;  %v7645_v50 = vld [vmem:[%s11187_s1 + $0x56c] ss:$16 sps:$4 sm:$0xff]  }
  0x70   :  { %4969 = vmatprep.subr.bf16.mxu0 %v7549_v51  ;;  %5528 = vmatprep.subr.bf16.mxu1 %v7552_v52  ;;  %v7640_v51 = vld [vmem:[%s11187_s1 + $0x560] ss:$16 sps:$4 sm:$0xff]   ;;  %v7643_v52 = vld [vmem:[%s11187_s1 + $0x568] ss:$16 sps:$4 sm:$0xff]  }
  0x73   :  { %4970 = vmatpush1.bf16.msra.mxu0 %v7547_v53  ;;  %5529 = vmatpush1.bf16.msra.mxu1 %v7550_v54  ;;  %v7648_v53 = vld [vmem:[%s11187_s1 + $0x584] ss:$16 sps:$4 sm:$0xff]   ;;  %v7651_v54 = vld [vmem:[%s11187_s1 + $0x58c] ss:$16 sps:$4 sm:$0xff]  }
  0x74   :  { %4971 = vmatprep.subr.bf16.mxu0 %v7555_v55  ;;  %5530 = vmatprep.subr.bf16.mxu1 %v7558_v56  ;;  %v7646_v55 = vld [vmem:[%s11187_s1 + $0x580] ss:$16 sps:$4 sm:$0xff]   ;;  %v7649_v56 = vld [vmem:[%s11187_s1 + $0x588] ss:$16 sps:$4 sm:$0xff]  }
  0x77   :  { %4972 = vmatpush1.bf16.msra.mxu0 %v7553_v57  ;;  %5531 = vmatpush1.bf16.msra.mxu1 %v7556_v58  ;;  %v7654_v57 = vld [vmem:[%s11187_s1 + $0x5a4] ss:$16 sps:$4 sm:$0xff]   ;;  %v7657_v58 = vld [vmem:[%s11187_s1 + $0x5ac] ss:$16 sps:$4 sm:$0xff]  }
  0x78   :  { %4973 = vmatprep.subr.bf16.mxu0 %v7561_v59  ;;  %5532 = vmatprep.subr.bf16.mxu1 %v7564_v60  ;;  %v7652_v59 = vld [vmem:[%s11187_s1 + $0x5a0] ss:$16 sps:$4 sm:$0xff]   ;;  %v7655_v60 = vld [vmem:[%s11187_s1 + $0x5a8] ss:$16 sps:$4 sm:$0xff]  }
  0x7b   :  { %4974 = vmatpush1.bf16.msra.mxu0 %v7559_v61  ;;  %5533 = vmatpush1.bf16.msra.mxu1 %v7562_v62  ;;  %v7660_v61 = vld [vmem:[%s11187_s1 + $0x5c4] ss:$16 sps:$4 sm:$0xff]   ;;  %v7663_v62 = vld [vmem:[%s11187_s1 + $0x5cc] ss:$16 sps:$4 sm:$0xff]  }
  0x7c   :  { %4975 = vmatprep.subr.bf16.mxu0 %v7567_v63  ;;  %5534 = vmatprep.subr.bf16.mxu1 %v7570_v0  ;;  %v7658_v63 = vld [vmem:[%s11187_s1 + $0x5c0] ss:$16 sps:$4 sm:$0xff]   ;;  %v7661_v0 = vld [vmem:[%s11187_s1 + $0x5c8] ss:$16 sps:$4 sm:$0xff]  }
  0x7f   :  { %4976 = vmatpush1.bf16.msra.mxu0 %v7565_v1  ;;  %5535 = vmatpush1.bf16.msra.mxu1 %v7568_v2  ;;  %v7666_v1 = vld [vmem:[%s11187_s1 + $0x5e4] ss:$16 sps:$4 sm:$0xff]   ;;  %v7669_v2 = vld [vmem:[%s11187_s1 + $0x5ec] ss:$16 sps:$4 sm:$0xff]  }
  0x80   :  { %4988 = vmatprep.subr.bf16.mxu0 %v7576_v3  ;;  %5547 = vmatprep.subr.bf16.mxu1 %v7579_v4  ;;  %v7664_v3 = vld [vmem:[%s11187_s1 + $0x5e0] ss:$16 sps:$4 sm:$0xff]   ;;  %v7667_v4 = vld [vmem:[%s11187_s1 + $0x5e8] ss:$16 sps:$4 sm:$0xff]  }
  0x82   :  { %4978 = vmatmul.mubr.bf16.vlgmr.msra.gmra.mrb[0].mxu0 %v7571_v5  ;;  %5537 = vmatmul.mubr.bf16.vlgmr.msra.gmra.mrb[0].mxu1 %v7571_v5  ;;  %v7675_v5 = vld [vmem:[%s11187_s1 + $0x604] ss:$16 sps:$4 sm:$0xff]  }
  0x83   :  { %4989 = vmatpush1.bf16.msra.mxu0 %v7574_v6  ;;  %5548 = vmatpush1.bf16.msra.mxu1 %v7577_v7  ;;  %v7678_v6 = vld [vmem:[%s11187_s1 + $0x60c] ss:$16 sps:$4 sm:$0xff]   ;;  %v7670_v7 = vld [vmem:[%s11188_s0 + $0x10] ss:$100 sps:$4 sm:$0xff]  }
  0x84   :  { %4990 = vmatprep.subr.bf16.mxu0 %v7582_v8  ;;  %5549 = vmatprep.subr.bf16.mxu1 %v7585_v9  ;;  %v7673_v8 = vld [vmem:[%s11187_s1 + $0x600] ss:$16 sps:$4 sm:$0xff]   ;;  %v7676_v9 = vld [vmem:[%s11187_s1 + $0x608] ss:$16 sps:$4 sm:$0xff]  }
  0x85   :  { %5020 = vmatprep.mubr.bf16.mxu0 %v7672_v12  ;;  %5579 = vmatprep.mubr.bf16.mxu1 %v7672_v12  ;;  %v7771_v12 = vld [vmem:[%s11188_s0 + $0x1c] ss:$100 sps:$4 sm:$0xff]  }
  0x87   :  { %4991 = vmatpush1.bf16.msra.mxu0 %v7580_v10  ;;  %5550 = vmatpush1.bf16.msra.mxu1 %v7583_v11  ;;  %v7681_v10 = vld [vmem:[%s11187_s1 + $0x624] ss:$16 sps:$4 sm:$0xff]   ;;  %v7684_v11 = vld [vmem:[%s11187_s1 + $0x62c] ss:$16 sps:$4 sm:$0xff]  }
  0x88   :  { %4992 = vmatprep.subr.bf16.mxu0 %v7588_v13  ;;  %5551 = vmatprep.subr.bf16.mxu1 %v7591_v14  ;;  %v7679_v13 = vld [vmem:[%s11187_s1 + $0x620] ss:$16 sps:$4 sm:$0xff]   ;;  %v7682_v14 = vld [vmem:[%s11187_s1 + $0x628] ss:$16 sps:$4 sm:$0xff]  }
  0x8b   :  { %4993 = vmatpush1.bf16.msra.mxu0 %v7586_v15  ;;  %5552 = vmatpush1.bf16.msra.mxu1 %v7589_v16  ;;  %v7687_v15 = vld [vmem:[%s11187_s1 + $0x644] ss:$16 sps:$4 sm:$0xff]   ;;  %v7690_v16 = vld [vmem:[%s11187_s1 + $0x64c] ss:$16 sps:$4 sm:$0xff]  }
  0x8c   :  { %4994 = vmatprep.subr.bf16.mxu0 %v7594_v17  ;;  %5553 = vmatprep.subr.bf16.mxu1 %v7597_v18  ;;  %v7685_v17 = vld [vmem:[%s11187_s1 + $0x640] ss:$16 sps:$4 sm:$0xff]   ;;  %v7688_v18 = vld [vmem:[%s11187_s1 + $0x648] ss:$16 sps:$4 sm:$0xff]  }
  0x8f   :  { %4995 = vmatpush1.bf16.msra.mxu0 %v7592_v19  ;;  %5554 = vmatpush1.bf16.msra.mxu1 %v7595_v20  ;;  %v7693_v19 = vld [vmem:[%s11187_s1 + $0x664] ss:$16 sps:$4 sm:$0xff]   ;;  %v7696_v20 = vld [vmem:[%s11187_s1 + $0x66c] ss:$16 sps:$4 sm:$0xff]  }
  0x90   :  { %4996 = vmatprep.subr.bf16.mxu0 %v7600_v21  ;;  %5555 = vmatprep.subr.bf16.mxu1 %v7603_v22  ;;  %v7691_v21 = vld [vmem:[%s11187_s1 + $0x660] ss:$16 sps:$4 sm:$0xff]   ;;  %v7694_v22 = vld [vmem:[%s11187_s1 + $0x668] ss:$16 sps:$4 sm:$0xff]  }
  0x93   :  { %4997 = vmatpush1.bf16.msra.mxu0 %v7598_v23  ;;  %5556 = vmatpush1.bf16.msra.mxu1 %v7601_v24  ;;  %v7699_v23 = vld [vmem:[%s11187_s1 + $0x684] ss:$16 sps:$4 sm:$0xff]   ;;  %v7702_v24 = vld [vmem:[%s11187_s1 + $0x68c] ss:$16 sps:$4 sm:$0xff]  }
  0x94   :  { %4998 = vmatprep.subr.bf16.mxu0 %v7606_v25  ;;  %5557 = vmatprep.subr.bf16.mxu1 %v7609_v26  ;;  %v7697_v25 = vld [vmem:[%s11187_s1 + $0x680] ss:$16 sps:$4 sm:$0xff]   ;;  %v7700_v26 = vld [vmem:[%s11187_s1 + $0x688] ss:$16 sps:$4 sm:$0xff]  }
  0x97   :  { %4999 = vmatpush1.bf16.msra.mxu0 %v7604_v27  ;;  %5558 = vmatpush1.bf16.msra.mxu1 %v7607_v28  ;;  %v7705_v27 = vld [vmem:[%s11187_s1 + $0x6a4] ss:$16 sps:$4 sm:$0xff]   ;;  %v7708_v28 = vld [vmem:[%s11187_s1 + $0x6ac] ss:$16 sps:$4 sm:$0xff]  }
  0x98   :  { %5000 = vmatprep.subr.bf16.mxu0 %v7612_v29  ;;  %5559 = vmatprep.subr.bf16.mxu1 %v7615_v30  ;;  %v7703_v29 = vld [vmem:[%s11187_s1 + $0x6a0] ss:$16 sps:$4 sm:$0xff]   ;;  %v7706_v30 = vld [vmem:[%s11187_s1 + $0x6a8] ss:$16 sps:$4 sm:$0xff]  }
  0x9b   :  { %5001 = vmatpush1.bf16.msra.mxu0 %v7610_v31  ;;  %5560 = vmatpush1.bf16.msra.mxu1 %v7613_v32  ;;  %v7711_v31 = vld [vmem:[%s11187_s1 + $0x6c4] ss:$16 sps:$4 sm:$0xff]   ;;  %v7714_v32 = vld [vmem:[%s11187_s1 + $0x6cc] ss:$16 sps:$4 sm:$0xff]  }
  0x9c   :  { %5002 = vmatprep.subr.bf16.mxu0 %v7618_v33  ;;  %5561 = vmatprep.subr.bf16.mxu1 %v7621_v34  ;;  %v7709_v33 = vld [vmem:[%s11187_s1 + $0x6c0] ss:$16 sps:$4 sm:$0xff]   ;;  %v7712_v34 = vld [vmem:[%s11187_s1 + $0x6c8] ss:$16 sps:$4 sm:$0xff]  }
  0x9f   :  { %5003 = vmatpush1.bf16.msra.mxu0 %v7616_v35  ;;  %5562 = vmatpush1.bf16.msra.mxu1 %v7619_v36  ;;  %v7717_v35 = vld [vmem:[%s11187_s1 + $0x6e4] ss:$16 sps:$4 sm:$0xff]   ;;  %v7720_v36 = vld [vmem:[%s11187_s1 + $0x6ec] ss:$16 sps:$4 sm:$0xff]  }
  0xa0   :  { %5004 = vmatprep.subr.bf16.mxu0 %v7624_v37  ;;  %5563 = vmatprep.subr.bf16.mxu1 %v7627_v38  ;;  %v7715_v37 = vld [vmem:[%s11187_s1 + $0x6e0] ss:$16 sps:$4 sm:$0xff]   ;;  %v7718_v38 = vld [vmem:[%s11187_s1 + $0x6e8] ss:$16 sps:$4 sm:$0xff]  }
  0xa3   :  { %5005 = vmatpush1.bf16.msra.mxu0 %v7622_v39  ;;  %5564 = vmatpush1.bf16.msra.mxu1 %v7625_v40  ;;  %v7723_v39 = vld [vmem:[%s11187_s1 + $0x704] ss:$16 sps:$4 sm:$0xff]   ;;  %v7726_v40 = vld [vmem:[%s11187_s1 + $0x70c] ss:$16 sps:$4 sm:$0xff]  }
  0xa4   :  { %5006 = vmatprep.subr.bf16.mxu0 %v7630_v41  ;;  %5565 = vmatprep.subr.bf16.mxu1 %v7633_v42  ;;  %v7721_v41 = vld [vmem:[%s11187_s1 + $0x700] ss:$16 sps:$4 sm:$0xff]   ;;  %v7724_v42 = vld [vmem:[%s11187_s1 + $0x708] ss:$16 sps:$4 sm:$0xff]  }
  0xa7   :  { %5007 = vmatpush1.bf16.msra.mxu0 %v7628_v43  ;;  %5566 = vmatpush1.bf16.msra.mxu1 %v7631_v44  ;;  %v7729_v43 = vld [vmem:[%s11187_s1 + $0x724] ss:$16 sps:$4 sm:$0xff]   ;;  %v7732_v44 = vld [vmem:[%s11187_s1 + $0x72c] ss:$16 sps:$4 sm:$0xff]  }
  0xa8   :  { %5008 = vmatprep.subr.bf16.mxu0 %v7636_v45  ;;  %5567 = vmatprep.subr.bf16.mxu1 %v7639_v46  ;;  %v7727_v45 = vld [vmem:[%s11187_s1 + $0x720] ss:$16 sps:$4 sm:$0xff]   ;;  %v7730_v46 = vld [vmem:[%s11187_s1 + $0x728] ss:$16 sps:$4 sm:$0xff]  }
  0xab   :  { %5009 = vmatpush1.bf16.msra.mxu0 %v7634_v47  ;;  %5568 = vmatpush1.bf16.msra.mxu1 %v7637_v48  ;;  %v7735_v47 = vld [vmem:[%s11187_s1 + $0x744] ss:$16 sps:$4 sm:$0xff]   ;;  %v7738_v48 = vld [vmem:[%s11187_s1 + $0x74c] ss:$16 sps:$4 sm:$0xff]  }
  0xac   :  { %5010 = vmatprep.subr.bf16.mxu0 %v7642_v49  ;;  %5569 = vmatprep.subr.bf16.mxu1 %v7645_v50  ;;  %v7733_v49 = vld [vmem:[%s11187_s1 + $0x740] ss:$16 sps:$4 sm:$0xff]   ;;  %v7736_v50 = vld [vmem:[%s11187_s1 + $0x748] ss:$16 sps:$4 sm:$0xff]  }
  0xaf   :  { %5011 = vmatpush1.bf16.msra.mxu0 %v7640_v51  ;;  %5570 = vmatpush1.bf16.msra.mxu1 %v7643_v52  ;;  %v7741_v51 = vld [vmem:[%s11187_s1 + $0x764] ss:$16 sps:$4 sm:$0xff]   ;;  %v7744_v52 = vld [vmem:[%s11187_s1 + $0x76c] ss:$16 sps:$4 sm:$0xff]  }
  0xb0   :  { %5012 = vmatprep.subr.bf16.mxu0 %v7648_v53  ;;  %5571 = vmatprep.subr.bf16.mxu1 %v7651_v54  ;;  %v7739_v53 = vld [vmem:[%s11187_s1 + $0x760] ss:$16 sps:$4 sm:$0xff]   ;;  %v7742_v54 = vld [vmem:[%s11187_s1 + $0x768] ss:$16 sps:$4 sm:$0xff]  }
  0xb3   :  { %5013 = vmatpush1.bf16.msra.mxu0 %v7646_v55  ;;  %5572 = vmatpush1.bf16.msra.mxu1 %v7649_v56  ;;  %v7747_v55 = vld [vmem:[%s11187_s1 + $0x784] ss:$16 sps:$4 sm:$0xff]   ;;  %v7750_v56 = vld [vmem:[%s11187_s1 + $0x78c] ss:$16 sps:$4 sm:$0xff]  }
  0xb4   :  { %5014 = vmatprep.subr.bf16.mxu0 %v7654_v57  ;;  %5573 = vmatprep.subr.bf16.mxu1 %v7657_v58  ;;  %v7745_v57 = vld [vmem:[%s11187_s1 + $0x780] ss:$16 sps:$4 sm:$0xff]   ;;  %v7748_v58 = vld [vmem:[%s11187_s1 + $0x788] ss:$16 sps:$4 sm:$0xff]  }
  0xb7   :  { %5015 = vmatpush1.bf16.msra.mxu0 %v7652_v59  ;;  %5574 = vmatpush1.bf16.msra.mxu1 %v7655_v60  ;;  %v7753_v59 = vld [vmem:[%s11187_s1 + $0x7a4] ss:$16 sps:$4 sm:$0xff]   ;;  %v7756_v60 = vld [vmem:[%s11187_s1 + $0x7ac] ss:$16 sps:$4 sm:$0xff]  }
  0xb8   :  { %5016 = vmatprep.subr.bf16.mxu0 %v7660_v61  ;;  %5575 = vmatprep.subr.bf16.mxu1 %v7663_v62  ;;  %v7751_v61 = vld [vmem:[%s11187_s1 + $0x7a0] ss:$16 sps:$4 sm:$0xff]   ;;  %v7754_v62 = vld [vmem:[%s11187_s1 + $0x7a8] ss:$16 sps:$4 sm:$0xff]  }
  0xbb   :  { %5017 = vmatpush1.bf16.msra.mxu0 %v7658_v63  ;;  %5576 = vmatpush1.bf16.msra.mxu1 %v7661_v0  ;;  %v7759_v63 = vld [vmem:[%s11187_s1 + $0x7c4] ss:$16 sps:$4 sm:$0xff]   ;;  %v7762_v0 = vld [vmem:[%s11187_s1 + $0x7cc] ss:$16 sps:$4 sm:$0xff]  }
  0xbc   :  { %5018 = vmatprep.subr.bf16.mxu0 %v7666_v1  ;;  %5577 = vmatprep.subr.bf16.mxu1 %v7669_v2  ;;  %v7757_v1 = vld [vmem:[%s11187_s1 + $0x7c0] ss:$16 sps:$4 sm:$0xff]   ;;  %v7760_v2 = vld [vmem:[%s11187_s1 + $0x7c8] ss:$16 sps:$4 sm:$0xff]  }
  0xbf   :  { %5019 = vmatpush1.bf16.msra.mxu0 %v7664_v3  ;;  %5578 = vmatpush1.bf16.msra.mxu1 %v7667_v4  ;;  %v7765_v3 = vld [vmem:[%s11187_s1 + $0x7e4] ss:$16 sps:$4 sm:$0xff]   ;;  %v7768_v4 = vld [vmem:[%s11187_s1 + $0x7ec] ss:$16 sps:$4 sm:$0xff]  }
  0xc0   :  { %5031 = vmatprep.subr.bf16.mxu0 %v7675_v5  ;;  %5590 = vmatprep.subr.bf16.mxu1 %v7678_v6  ;;  %v7763_v5 = vld [vmem:[%s11187_s1 + $0x7e0] ss:$16 sps:$4 sm:$0xff]   ;;  %v7766_v6 = vld [vmem:[%s11187_s1 + $0x7e8] ss:$16 sps:$4 sm:$0xff]  }
  0xc2   :  { %5021 = vmatmul.mubr.bf16.vlgmr.msra.gmra.mrb[0].mxu0 %v7670_v7  ;;  %5580 = vmatmul.mubr.bf16.vlgmr.msra.gmra.mrb[0].mxu1 %v7670_v7  ;;  %v7774_v7 = vld [vmem:[%s11187_s1 + $0x804] ss:$16 sps:$4 sm:$0xff]  }
  0xc3   :  { %5032 = vmatpush1.bf16.msra.mxu0 %v7673_v8  ;;  %5591 = vmatpush1.bf16.msra.mxu1 %v7676_v9  ;;  %v7777_v8 = vld [vmem:[%s11187_s1 + $0x80c] ss:$16 sps:$4 sm:$0xff]  }
  0xc4   :  { %5033 = vmatprep.subr.bf16.mxu0 %v7681_v10  ;;  %5592 = vmatprep.subr.bf16.mxu1 %v7684_v11  ;;  %v7769_v9 = vld [vmem:[%s11188_s0 + $0x18] ss:$100 sps:$4 sm:$0xff]   ;;  %v7772_v10 = vld [vmem:[%s11187_s1 + $0x800] ss:$16 sps:$4 sm:$0xff]  }
  0xc5   :  { %5063 = vmatprep.mubr.bf16.mxu0 %v7771_v12  ;;  %5622 = vmatprep.mubr.bf16.mxu1 %v7771_v12  ;;  %v7775_v11 = vld [vmem:[%s11187_s1 + $0x808] ss:$16 sps:$4 sm:$0xff]   ;;  %v7780_v12 = vld [vmem:[%s11187_s1 + $0x824] ss:$16 sps:$4 sm:$0xff]  }
  0xc7   :  { %5034 = vmatpush1.bf16.msra.mxu0 %v7679_v13  ;;  %5593 = vmatpush1.bf16.msra.mxu1 %v7682_v14  ;;  %v7783_v13 = vld [vmem:[%s11187_s1 + $0x82c] ss:$16 sps:$4 sm:$0xff]   ;;  %v7870_v14 = vld [vmem:[%s11188_s0 + $0x24] ss:$100 sps:$4 sm:$0xff]  }
  0xc8   :  { %5035 = vmatprep.subr.bf16.mxu0 %v7687_v15  ;;  %5594 = vmatprep.subr.bf16.mxu1 %v7690_v16  ;;  %v7778_v15 = vld [vmem:[%s11187_s1 + $0x820] ss:$16 sps:$4 sm:$0xff]   ;;  %v7781_v16 = vld [vmem:[%s11187_s1 + $0x828] ss:$16 sps:$4 sm:$0xff]  }
  0xcb   :  { %5036 = vmatpush1.bf16.msra.mxu0 %v7685_v17  ;;  %5595 = vmatpush1.bf16.msra.mxu1 %v7688_v18  ;;  %v7786_v17 = vld [vmem:[%s11187_s1 + $0x844] ss:$16 sps:$4 sm:$0xff]   ;;  %v7789_v18 = vld [vmem:[%s11187_s1 + $0x84c] ss:$16 sps:$4 sm:$0xff]  }
  0xcc   :  { %5037 = vmatprep.subr.bf16.mxu0 %v7693_v19  ;;  %5596 = vmatprep.subr.bf16.mxu1 %v7696_v20  ;;  %v7784_v19 = vld [vmem:[%s11187_s1 + $0x840] ss:$16 sps:$4 sm:$0xff]   ;;  %v7787_v20 = vld [vmem:[%s11187_s1 + $0x848] ss:$16 sps:$4 sm:$0xff]  }
  0xcf   :  { %5038 = vmatpush1.bf16.msra.mxu0 %v7691_v21  ;;  %5597 = vmatpush1.bf16.msra.mxu1 %v7694_v22  ;;  %v7792_v21 = vld [vmem:[%s11187_s1 + $0x864] ss:$16 sps:$4 sm:$0xff]   ;;  %v7795_v22 = vld [vmem:[%s11187_s1 + $0x86c] ss:$16 sps:$4 sm:$0xff]  }
  0xd0   :  { %5039 = vmatprep.subr.bf16.mxu0 %v7699_v23  ;;  %5598 = vmatprep.subr.bf16.mxu1 %v7702_v24  ;;  %v7790_v23 = vld [vmem:[%s11187_s1 + $0x860] ss:$16 sps:$4 sm:$0xff]   ;;  %v7793_v24 = vld [vmem:[%s11187_s1 + $0x868] ss:$16 sps:$4 sm:$0xff]  }
  0xd3   :  { %5040 = vmatpush1.bf16.msra.mxu0 %v7697_v25  ;;  %5599 = vmatpush1.bf16.msra.mxu1 %v7700_v26  ;;  %v7798_v25 = vld [vmem:[%s11187_s1 + $0x884] ss:$16 sps:$4 sm:$0xff]   ;;  %v7801_v26 = vld [vmem:[%s11187_s1 + $0x88c] ss:$16 sps:$4 sm:$0xff]  }
  0xd4   :  { %5041 = vmatprep.subr.bf16.mxu0 %v7705_v27  ;;  %5600 = vmatprep.subr.bf16.mxu1 %v7708_v28  ;;  %v7796_v27 = vld [vmem:[%s11187_s1 + $0x880] ss:$16 sps:$4 sm:$0xff]   ;;  %v7799_v28 = vld [vmem:[%s11187_s1 + $0x888] ss:$16 sps:$4 sm:$0xff]  }
  0xd7   :  { %5042 = vmatpush1.bf16.msra.mxu0 %v7703_v29  ;;  %5601 = vmatpush1.bf16.msra.mxu1 %v7706_v30  ;;  %v7804_v29 = vld [vmem:[%s11187_s1 + $0x8a4] ss:$16 sps:$4 sm:$0xff]   ;;  %v7807_v30 = vld [vmem:[%s11187_s1 + $0x8ac] ss:$16 sps:$4 sm:$0xff]  }
  0xd8   :  { %5043 = vmatprep.subr.bf16.mxu0 %v7711_v31  ;;  %5602 = vmatprep.subr.bf16.mxu1 %v7714_v32  ;;  %v7802_v31 = vld [vmem:[%s11187_s1 + $0x8a0] ss:$16 sps:$4 sm:$0xff]   ;;  %v7805_v32 = vld [vmem:[%s11187_s1 + $0x8a8] ss:$16 sps:$4 sm:$0xff]  }
  0xdb   :  { %5044 = vmatpush1.bf16.msra.mxu0 %v7709_v33  ;;  %5603 = vmatpush1.bf16.msra.mxu1 %v7712_v34  ;;  %v7810_v33 = vld [vmem:[%s11187_s1 + $0x8c4] ss:$16 sps:$4 sm:$0xff]   ;;  %v7813_v34 = vld [vmem:[%s11187_s1 + $0x8cc] ss:$16 sps:$4 sm:$0xff]  }
  0xdc   :  { %5045 = vmatprep.subr.bf16.mxu0 %v7717_v35  ;;  %5604 = vmatprep.subr.bf16.mxu1 %v7720_v36  ;;  %v7808_v35 = vld [vmem:[%s11187_s1 + $0x8c0] ss:$16 sps:$4 sm:$0xff]   ;;  %v7811_v36 = vld [vmem:[%s11187_s1 + $0x8c8] ss:$16 sps:$4 sm:$0xff]  }
  0xdf   :  { %5046 = vmatpush1.bf16.msra.mxu0 %v7715_v37  ;;  %5605 = vmatpush1.bf16.msra.mxu1 %v7718_v38  ;;  %v7816_v37 = vld [vmem:[%s11187_s1 + $0x8e4] ss:$16 sps:$4 sm:$0xff]   ;;  %v7819_v38 = vld [vmem:[%s11187_s1 + $0x8ec] ss:$16 sps:$4 sm:$0xff]  }
  0xe0   :  { %5047 = vmatprep.subr.bf16.mxu0 %v7723_v39  ;;  %5606 = vmatprep.subr.bf16.mxu1 %v7726_v40  ;;  %v7814_v39 = vld [vmem:[%s11187_s1 + $0x8e0] ss:$16 sps:$4 sm:$0xff]   ;;  %v7817_v40 = vld [vmem:[%s11187_s1 + $0x8e8] ss:$16 sps:$4 sm:$0xff]  }
  0xe3   :  { %5048 = vmatpush1.bf16.msra.mxu0 %v7721_v41  ;;  %5607 = vmatpush1.bf16.msra.mxu1 %v7724_v42  ;;  %v7822_v41 = vld [vmem:[%s11187_s1 + $0x904] ss:$16 sps:$4 sm:$0xff]   ;;  %v7825_v42 = vld [vmem:[%s11187_s1 + $0x90c] ss:$16 sps:$4 sm:$0xff]  }
  0xe4   :  { %5049 = vmatprep.subr.bf16.mxu0 %v7729_v43  ;;  %5608 = vmatprep.subr.bf16.mxu1 %v7732_v44  ;;  %v7820_v43 = vld [vmem:[%s11187_s1 + $0x900] ss:$16 sps:$4 sm:$0xff]   ;;  %v7823_v44 = vld [vmem:[%s11187_s1 + $0x908] ss:$16 sps:$4 sm:$0xff]  }
  0xe7   :  { %5050 = vmatpush1.bf16.msra.mxu0 %v7727_v45  ;;  %5609 = vmatpush1.bf16.msra.mxu1 %v7730_v46  ;;  %v7828_v45 = vld [vmem:[%s11187_s1 + $0x924] ss:$16 sps:$4 sm:$0xff]   ;;  %v7831_v46 = vld [vmem:[%s11187_s1 + $0x92c] ss:$16 sps:$4 sm:$0xff]  }
  0xe8   :  { %5051 = vmatprep.subr.bf16.mxu0 %v7735_v47  ;;  %5610 = vmatprep.subr.bf16.mxu1 %v7738_v48  ;;  %v7826_v47 = vld [vmem:[%s11187_s1 + $0x920] ss:$16 sps:$4 sm:$0xff]   ;;  %v7829_v48 = vld [vmem:[%s11187_s1 + $0x928] ss:$16 sps:$4 sm:$0xff]  }
  0xeb   :  { %5052 = vmatpush1.bf16.msra.mxu0 %v7733_v49  ;;  %5611 = vmatpush1.bf16.msra.mxu1 %v7736_v50  ;;  %v7834_v49 = vld [vmem:[%s11187_s1 + $0x944] ss:$16 sps:$4 sm:$0xff]   ;;  %v7837_v50 = vld [vmem:[%s11187_s1 + $0x94c] ss:$16 sps:$4 sm:$0xff]  }
  0xec   :  { %5053 = vmatprep.subr.bf16.mxu0 %v7741_v51  ;;  %5612 = vmatprep.subr.bf16.mxu1 %v7744_v52  ;;  %v7832_v51 = vld [vmem:[%s11187_s1 + $0x940] ss:$16 sps:$4 sm:$0xff]   ;;  %v7835_v52 = vld [vmem:[%s11187_s1 + $0x948] ss:$16 sps:$4 sm:$0xff]  }
  0xef   :  { %5054 = vmatpush1.bf16.msra.mxu0 %v7739_v53  ;;  %5613 = vmatpush1.bf16.msra.mxu1 %v7742_v54  ;;  %v7840_v53 = vld [vmem:[%s11187_s1 + $0x964] ss:$16 sps:$4 sm:$0xff]   ;;  %v7843_v54 = vld [vmem:[%s11187_s1 + $0x96c] ss:$16 sps:$4 sm:$0xff]  }
  0xf0   :  { %5055 = vmatprep.subr.bf16.mxu0 %v7747_v55  ;;  %5614 = vmatprep.subr.bf16.mxu1 %v7750_v56  ;;  %v7838_v55 = vld [vmem:[%s11187_s1 + $0x960] ss:$16 sps:$4 sm:$0xff]   ;;  %v7841_v56 = vld [vmem:[%s11187_s1 + $0x968] ss:$16 sps:$4 sm:$0xff]  }
  0xf3   :  { %5056 = vmatpush1.bf16.msra.mxu0 %v7745_v57  ;;  %5615 = vmatpush1.bf16.msra.mxu1 %v7748_v58  ;;  %v7846_v57 = vld [vmem:[%s11187_s1 + $0x984] ss:$16 sps:$4 sm:$0xff]   ;;  %v7849_v58 = vld [vmem:[%s11187_s1 + $0x98c] ss:$16 sps:$4 sm:$0xff]  }
  0xf4   :  { %5057 = vmatprep.subr.bf16.mxu0 %v7753_v59  ;;  %5616 = vmatprep.subr.bf16.mxu1 %v7756_v60  ;;  %v7844_v59 = vld [vmem:[%s11187_s1 + $0x980] ss:$16 sps:$4 sm:$0xff]   ;;  %v7847_v60 = vld [vmem:[%s11187_s1 + $0x988] ss:$16 sps:$4 sm:$0xff]  }
  0xf7   :  { %5058 = vmatpush1.bf16.msra.mxu0 %v7751_v61  ;;  %5617 = vmatpush1.bf16.msra.mxu1 %v7754_v62  ;;  %v7852_v61 = vld [vmem:[%s11187_s1 + $0x9a4] ss:$16 sps:$4 sm:$0xff]   ;;  %v7855_v62 = vld [vmem:[%s11187_s1 + $0x9ac] ss:$16 sps:$4 sm:$0xff]  }
  0xf8   :  { %5059 = vmatprep.subr.bf16.mxu0 %v7759_v63  ;;  %5618 = vmatprep.subr.bf16.mxu1 %v7762_v0  ;;  %v7850_v63 = vld [vmem:[%s11187_s1 + $0x9a0] ss:$16 sps:$4 sm:$0xff]   ;;  %v7853_v0 = vld [vmem:[%s11187_s1 + $0x9a8] ss:$16 sps:$4 sm:$0xff]  }
  0xfb   :  { %5060 = vmatpush1.bf16.msra.mxu0 %v7757_v1  ;;  %5619 = vmatpush1.bf16.msra.mxu1 %v7760_v2  ;;  %v7858_v1 = vld [vmem:[%s11187_s1 + $0x9c4] ss:$16 sps:$4 sm:$0xff]   ;;  %v7861_v2 = vld [vmem:[%s11187_s1 + $0x9cc] ss:$16 sps:$4 sm:$0xff]  }
  0xfc   :  { %5061 = vmatprep.subr.bf16.mxu0 %v7765_v3  ;;  %5620 = vmatprep.subr.bf16.mxu1 %v7768_v4  ;;  %v7856_v3 = vld [vmem:[%s11187_s1 + $0x9c0] ss:$16 sps:$4 sm:$0xff]   ;;  %v7859_v4 = vld [vmem:[%s11187_s1 + $0x9c8] ss:$16 sps:$4 sm:$0xff]  }
  0xff   :  { %5062 = vmatpush1.bf16.msra.mxu0 %v7763_v5  ;;  %5621 = vmatpush1.bf16.msra.mxu1 %v7766_v6  ;;  %v7864_v5 = vld [vmem:[%s11187_s1 + $0x9e4] ss:$16 sps:$4 sm:$0xff]   ;;  %v7867_v6 = vld [vmem:[%s11187_s1 + $0x9ec] ss:$16 sps:$4 sm:$0xff]  }
 0x100   :  { %5074 = vmatprep.subr.bf16.mxu0 %v7774_v7  ;;  %5633 = vmatprep.subr.bf16.mxu1 %v7777_v8  ;;  %v7862_v7 = vld [vmem:[%s11187_s1 + $0x9e0] ss:$16 sps:$4 sm:$0xff]   ;;  %v7865_v8 = vld [vmem:[%s11187_s1 + $0x9e8] ss:$16 sps:$4 sm:$0xff]  }
 0x102   :  { %5064 = vmatmul.mubr.bf16.vlgmr.msra.gmra.mrb[0].mxu0 %v7769_v9  ;;  %5623 = vmatmul.mubr.bf16.vlgmr.msra.gmra.mrb[0].mxu1 %v7769_v9  ;;  %v7868_v9 = vld [vmem:[%s11188_s0 + $0x20] ss:$100 sps:$4 sm:$0xff]  }
 0x103   :  { %5075 = vmatpush1.bf16.msra.mxu0 %v7772_v10  ;;  %5634 = vmatpush1.bf16.msra.mxu1 %v7775_v11  ;;  %v7873_v10 = vld [vmem:[%s11187_s1 + $0xa04] ss:$16 sps:$4 sm:$0xff]   ;;  %v7876_v11 = vld [vmem:[%s11187_s1 + $0xa0c] ss:$16 sps:$4 sm:$0xff]  }
 0x104   :  { %5076 = vmatprep.subr.bf16.mxu0 %v7780_v12  ;;  %5635 = vmatprep.subr.bf16.mxu1 %v7783_v13  ;;  %v7871_v12 = vld [vmem:[%s11187_s1 + $0xa00] ss:$16 sps:$4 sm:$0xff]   ;;  %v7874_v13 = vld [vmem:[%s11187_s1 + $0xa08] ss:$16 sps:$4 sm:$0xff]  }
 0x105   :  { %5106 = vmatprep.mubr.bf16.mxu0 %v7870_v14  ;;  %5665 = vmatprep.mubr.bf16.mxu1 %v7870_v14  ;;  %v7879_v14 = vld [vmem:[%s11187_s1 + $0xa24] ss:$16 sps:$4 sm:$0xff]  }
 0x107   :  { %5077 = vmatpush1.bf16.msra.mxu0 %v7778_v15  ;;  %5636 = vmatpush1.bf16.msra.mxu1 %v7781_v16  ;;  %v7882_v15 = vld [vmem:[%s11187_s1 + $0xa2c] ss:$16 sps:$4 sm:$0xff]  }
 0x108   :  { %5078 = vmatprep.subr.bf16.mxu0 %v7786_v17  ;;  %5637 = vmatprep.subr.bf16.mxu1 %v7789_v18  ;;  %v7969_v16 = vld [vmem:[%s11188_s0 + $0x2c] ss:$100 sps:$4 sm:$0xff]   ;;  %v7880_v18 = vld [vmem:[%s11187_s1 + $0xa28] ss:$16 sps:$4 sm:$0xff]  }
 0x109   :  { %v7877_v17 = vld [vmem:[%s11187_s1 + $0xa20] ss:$16 sps:$4 sm:$0xff]  }
 0x10b   :  { %5079 = vmatpush1.bf16.msra.mxu0 %v7784_v19  ;;  %5638 = vmatpush1.bf16.msra.mxu1 %v7787_v20  ;;  %v7885_v19 = vld [vmem:[%s11187_s1 + $0xa44] ss:$16 sps:$4 sm:$0xff]   ;;  %v7888_v20 = vld [vmem:[%s11187_s1 + $0xa4c] ss:$16 sps:$4 sm:$0xff]  }
 0x10c   :  { %5080 = vmatprep.subr.bf16.mxu0 %v7792_v21  ;;  %5639 = vmatprep.subr.bf16.mxu1 %v7795_v22  ;;  %v7883_v21 = vld [vmem:[%s11187_s1 + $0xa40] ss:$16 sps:$4 sm:$0xff]   ;;  %v7886_v22 = vld [vmem:[%s11187_s1 + $0xa48] ss:$16 sps:$4 sm:$0xff]  }
 0x10f   :  { %5081 = vmatpush1.bf16.msra.mxu0 %v7790_v23  ;;  %5640 = vmatpush1.bf16.msra.mxu1 %v7793_v24  ;;  %v7891_v23 = vld [vmem:[%s11187_s1 + $0xa64] ss:$16 sps:$4 sm:$0xff]   ;;  %v7894_v24 = vld [vmem:[%s11187_s1 + $0xa6c] ss:$16 sps:$4 sm:$0xff]  }
 0x110   :  { %5082 = vmatprep.subr.bf16.mxu0 %v7798_v25  ;;  %5641 = vmatprep.subr.bf16.mxu1 %v7801_v26  ;;  %v7889_v25 = vld [vmem:[%s11187_s1 + $0xa60] ss:$16 sps:$4 sm:$0xff]   ;;  %v7892_v26 = vld [vmem:[%s11187_s1 + $0xa68] ss:$16 sps:$4 sm:$0xff]  }
 0x113   :  { %5083 = vmatpush1.bf16.msra.mxu0 %v7796_v27  ;;  %5642 = vmatpush1.bf16.msra.mxu1 %v7799_v28  ;;  %v7897_v27 = vld [vmem:[%s11187_s1 + $0xa84] ss:$16 sps:$4 sm:$0xff]   ;;  %v7900_v28 = vld [vmem:[%s11187_s1 + $0xa8c] ss:$16 sps:$4 sm:$0xff]  }
 0x114   :  { %5084 = vmatprep.subr.bf16.mxu0 %v7804_v29  ;;  %5643 = vmatprep.subr.bf16.mxu1 %v7807_v30  ;;  %v7895_v29 = vld [vmem:[%s11187_s1 + $0xa80] ss:$16 sps:$4 sm:$0xff]   ;;  %v7898_v30 = vld [vmem:[%s11187_s1 + $0xa88] ss:$16 sps:$4 sm:$0xff]  }
 0x117   :  { %5085 = vmatpush1.bf16.msra.mxu0 %v7802_v31  ;;  %5644 = vmatpush1.bf16.msra.mxu1 %v7805_v32  ;;  %v7903_v31 = vld [vmem:[%s11187_s1 + $0xaa4] ss:$16 sps:$4 sm:$0xff]   ;;  %v7906_v32 = vld [vmem:[%s11187_s1 + $0xaac] ss:$16 sps:$4 sm:$0xff]  }
 0x118   :  { %5086 = vmatprep.subr.bf16.mxu0 %v7810_v33  ;;  %5645 = vmatprep.subr.bf16.mxu1 %v7813_v34  ;;  %v7901_v33 = vld [vmem:[%s11187_s1 + $0xaa0] ss:$16 sps:$4 sm:$0xff]   ;;  %v7904_v34 = vld [vmem:[%s11187_s1 + $0xaa8] ss:$16 sps:$4 sm:$0xff]  }
 0x11b   :  { %5087 = vmatpush1.bf16.msra.mxu0 %v7808_v35  ;;  %5646 = vmatpush1.bf16.msra.mxu1 %v7811_v36  ;;  %v7909_v35 = vld [vmem:[%s11187_s1 + $0xac4] ss:$16 sps:$4 sm:$0xff]   ;;  %v7912_v36 = vld [vmem:[%s11187_s1 + $0xacc] ss:$16 sps:$4 sm:$0xff]  }
 0x11c   :  { %5088 = vmatprep.subr.bf16.mxu0 %v7816_v37  ;;  %5647 = vmatprep.subr.bf16.mxu1 %v7819_v38  ;;  %v7907_v37 = vld [vmem:[%s11187_s1 + $0xac0] ss:$16 sps:$4 sm:$0xff]   ;;  %v7910_v38 = vld [vmem:[%s11187_s1 + $0xac8] ss:$16 sps:$4 sm:$0xff]  }
 0x11f   :  { %5089 = vmatpush1.bf16.msra.mxu0 %v7814_v39  ;;  %5648 = vmatpush1.bf16.msra.mxu1 %v7817_v40  ;;  %v7915_v39 = vld [vmem:[%s11187_s1 + $0xae4] ss:$16 sps:$4 sm:$0xff]   ;;  %v7918_v40 = vld [vmem:[%s11187_s1 + $0xaec] ss:$16 sps:$4 sm:$0xff]  }
 0x120   :  { %5090 = vmatprep.subr.bf16.mxu0 %v7822_v41  ;;  %5649 = vmatprep.subr.bf16.mxu1 %v7825_v42  ;;  %v7913_v41 = vld [vmem:[%s11187_s1 + $0xae0] ss:$16 sps:$4 sm:$0xff]   ;;  %v7916_v42 = vld [vmem:[%s11187_s1 + $0xae8] ss:$16 sps:$4 sm:$0xff]  }
 0x123   :  { %5091 = vmatpush1.bf16.msra.mxu0 %v7820_v43  ;;  %5650 = vmatpush1.bf16.msra.mxu1 %v7823_v44  ;;  %v7921_v43 = vld [vmem:[%s11187_s1 + $0xb04] ss:$16 sps:$4 sm:$0xff]   ;;  %v7924_v44 = vld [vmem:[%s11187_s1 + $0xb0c] ss:$16 sps:$4 sm:$0xff]  }
 0x124   :  { %5092 = vmatprep.subr.bf16.mxu0 %v7828_v45  ;;  %5651 = vmatprep.subr.bf16.mxu1 %v7831_v46  ;;  %v7919_v45 = vld [vmem:[%s11187_s1 + $0xb00] ss:$16 sps:$4 sm:$0xff]   ;;  %v7922_v46 = vld [vmem:[%s11187_s1 + $0xb08] ss:$16 sps:$4 sm:$0xff]  }
 0x127   :  { %5093 = vmatpush1.bf16.msra.mxu0 %v7826_v47  ;;  %5652 = vmatpush1.bf16.msra.mxu1 %v7829_v48  ;;  %v7927_v47 = vld [vmem:[%s11187_s1 + $0xb24] ss:$16 sps:$4 sm:$0xff]   ;;  %v7930_v48 = vld [vmem:[%s11187_s1 + $0xb2c] ss:$16 sps:$4 sm:$0xff]  }
 0x128   :  { %5094 = vmatprep.subr.bf16.mxu0 %v7834_v49  ;;  %5653 = vmatprep.subr.bf16.mxu1 %v7837_v50  ;;  %v7925_v49 = vld [vmem:[%s11187_s1 + $0xb20] ss:$16 sps:$4 sm:$0xff]   ;;  %v7928_v50 = vld [vmem:[%s11187_s1 + $0xb28] ss:$16 sps:$4 sm:$0xff]  }
 0x12b   :  { %5095 = vmatpush1.bf16.msra.mxu0 %v7832_v51  ;;  %5654 = vmatpush1.bf16.msra.mxu1 %v7835_v52  ;;  %v7933_v51 = vld [vmem:[%s11187_s1 + $0xb44] ss:$16 sps:$4 sm:$0xff]   ;;  %v7936_v52 = vld [vmem:[%s11187_s1 + $0xb4c] ss:$16 sps:$4 sm:$0xff]  }
 0x12c   :  { %5096 = vmatprep.subr.bf16.mxu0 %v7840_v53  ;;  %5655 = vmatprep.subr.bf16.mxu1 %v7843_v54  ;;  %v7931_v53 = vld [vmem:[%s11187_s1 + $0xb40] ss:$16 sps:$4 sm:$0xff]   ;;  %v7934_v54 = vld [vmem:[%s11187_s1 + $0xb48] ss:$16 sps:$4 sm:$0xff]  }
 0x12f   :  { %5097 = vmatpush1.bf16.msra.mxu0 %v7838_v55  ;;  %5656 = vmatpush1.bf16.msra.mxu1 %v7841_v56  ;;  %v7939_v55 = vld [vmem:[%s11187_s1 + $0xb64] ss:$16 sps:$4 sm:$0xff]   ;;  %v7942_v56 = vld [vmem:[%s11187_s1 + $0xb6c] ss:$16 sps:$4 sm:$0xff]  }
 0x130   :  { %5098 = vmatprep.subr.bf16.mxu0 %v7846_v57  ;;  %5657 = vmatprep.subr.bf16.mxu1 %v7849_v58  ;;  %v7937_v57 = vld [vmem:[%s11187_s1 + $0xb60] ss:$16 sps:$4 sm:$0xff]   ;;  %v7940_v58 = vld [vmem:[%s11187_s1 + $0xb68] ss:$16 sps:$4 sm:$0xff]  }
 0x133   :  { %5099 = vmatpush1.bf16.msra.mxu0 %v7844_v59  ;;  %5658 = vmatpush1.bf16.msra.mxu1 %v7847_v60  ;;  %v7945_v59 = vld [vmem:[%s11187_s1 + $0xb84] ss:$16 sps:$4 sm:$0xff]   ;;  %v7948_v60 = vld [vmem:[%s11187_s1 + $0xb8c] ss:$16 sps:$4 sm:$0xff]  }
 0x134   :  { %5100 = vmatprep.subr.bf16.mxu0 %v7852_v61  ;;  %5659 = vmatprep.subr.bf16.mxu1 %v7855_v62  ;;  %v7943_v61 = vld [vmem:[%s11187_s1 + $0xb80] ss:$16 sps:$4 sm:$0xff]   ;;  %v7946_v62 = vld [vmem:[%s11187_s1 + $0xb88] ss:$16 sps:$4 sm:$0xff]  }
 0x137   :  { %5101 = vmatpush1.bf16.msra.mxu0 %v7850_v63  ;;  %5660 = vmatpush1.bf16.msra.mxu1 %v7853_v0  ;;  %v7951_v63 = vld [vmem:[%s11187_s1 + $0xba4] ss:$16 sps:$4 sm:$0xff]   ;;  %v7954_v0 = vld [vmem:[%s11187_s1 + $0xbac] ss:$16 sps:$4 sm:$0xff]  }
 0x138   :  { %5102 = vmatprep.subr.bf16.mxu0 %v7858_v1  ;;  %5661 = vmatprep.subr.bf16.mxu1 %v7861_v2  ;;  %v7949_v1 = vld [vmem:[%s11187_s1 + $0xba0] ss:$16 sps:$4 sm:$0xff]   ;;  %v7952_v2 = vld [vmem:[%s11187_s1 + $0xba8] ss:$16 sps:$4 sm:$0xff]  }
 0x13b   :  { %5103 = vmatpush1.bf16.msra.mxu0 %v7856_v3  ;;  %5662 = vmatpush1.bf16.msra.mxu1 %v7859_v4  ;;  %v7957_v3 = vld [vmem:[%s11187_s1 + $0xbc4] ss:$16 sps:$4 sm:$0xff]   ;;  %v7960_v4 = vld [vmem:[%s11187_s1 + $0xbcc] ss:$16 sps:$4 sm:$0xff]  }
 0x13c   :  { %5104 = vmatprep.subr.bf16.mxu0 %v7864_v5  ;;  %5663 = vmatprep.subr.bf16.mxu1 %v7867_v6  ;;  %v7955_v5 = vld [vmem:[%s11187_s1 + $0xbc0] ss:$16 sps:$4 sm:$0xff]   ;;  %v7958_v6 = vld [vmem:[%s11187_s1 + $0xbc8] ss:$16 sps:$4 sm:$0xff]  }
 0x13f   :  { %5105 = vmatpush1.bf16.msra.mxu0 %v7862_v7  ;;  %5664 = vmatpush1.bf16.msra.mxu1 %v7865_v8  ;;  %v7963_v7 = vld [vmem:[%s11187_s1 + $0xbe4] ss:$16 sps:$4 sm:$0xff]   ;;  %v7966_v8 = vld [vmem:[%s11187_s1 + $0xbec] ss:$16 sps:$4 sm:$0xff]  }
 0x140   :  { %5117 = vmatprep.subr.bf16.mxu0 %v7873_v10  ;;  %5676 = vmatprep.subr.bf16.mxu1 %v7876_v11  ;;  %v7964_v10 = vld [vmem:[%s11187_s1 + $0xbe8] ss:$16 sps:$4 sm:$0xff]  }
 0x141   :  { %v7967_v11 = vld [vmem:[%s11188_s0 + $0x28] ss:$100 sps:$4 sm:$0xff]  }
 0x142   :  { %5107 = vmatmul.mubr.bf16.vlgmr.msra.gmra.mrb[0].mxu0 %v7868_v9  ;;  %5666 = vmatmul.mubr.bf16.vlgmr.msra.gmra.mrb[0].mxu1 %v7868_v9  ;;  %v7961_v9 = vld [vmem:[%s11187_s1 + $0xbe0] ss:$16 sps:$4 sm:$0xff]  }
 0x143   :  { %5118 = vmatpush1.bf16.msra.mxu0 %v7871_v12  ;;  %5677 = vmatpush1.bf16.msra.mxu1 %v7874_v13  ;;  %v7972_v12 = vld [vmem:[%s11187_s1 + $0xc04] ss:$16 sps:$4 sm:$0xff]   ;;  %v7975_v13 = vld [vmem:[%s11187_s1 + $0xc0c] ss:$16 sps:$4 sm:$0xff]  }
 0x144   :  { %5119 = vmatprep.subr.bf16.mxu0 %v7879_v14  ;;  %5678 = vmatprep.subr.bf16.mxu1 %v7882_v15  ;;  %v7970_v14 = vld [vmem:[%s11187_s1 + $0xc00] ss:$16 sps:$4 sm:$0xff]   ;;  %v7973_v15 = vld [vmem:[%s11187_s1 + $0xc08] ss:$16 sps:$4 sm:$0xff]  }
 0x145   :  { %5149 = vmatprep.mubr.bf16.mxu0 %v7969_v16  ;;  %5708 = vmatprep.mubr.bf16.mxu1 %v7969_v16  ;;  %v7978_v16 = vld [vmem:[%s11187_s1 + $0xc24] ss:$16 sps:$4 sm:$0xff]  }
 0x147   :  { %5120 = vmatpush1.bf16.msra.mxu0 %v7877_v17  ;;  %5679 = vmatpush1.bf16.msra.mxu1 %v7880_v18  ;;  %v7981_v17 = vld [vmem:[%s11187_s1 + $0xc2c] ss:$16 sps:$4 sm:$0xff]   ;;  %v8068_v18 = vld [vmem:[%s11188_s0 + $0x34] ss:$100 sps:$4 sm:$0xff]  }
 0x148   :  { %5121 = vmatprep.subr.bf16.mxu0 %v7885_v19  ;;  %5680 = vmatprep.subr.bf16.mxu1 %v7888_v20  ;;  %v7976_v19 = vld [vmem:[%s11187_s1 + $0xc20] ss:$16 sps:$4 sm:$0xff]   ;;  %v7979_v20 = vld [vmem:[%s11187_s1 + $0xc28] ss:$16 sps:$4 sm:$0xff]  }
 0x14b   :  { %5122 = vmatpush1.bf16.msra.mxu0 %v7883_v21  ;;  %5681 = vmatpush1.bf16.msra.mxu1 %v7886_v22  ;;  %v7984_v21 = vld [vmem:[%s11187_s1 + $0xc44] ss:$16 sps:$4 sm:$0xff]   ;;  %v7987_v22 = vld [vmem:[%s11187_s1 + $0xc4c] ss:$16 sps:$4 sm:$0xff]  }
 0x14c   :  { %5123 = vmatprep.subr.bf16.mxu0 %v7891_v23  ;;  %5682 = vmatprep.subr.bf16.mxu1 %v7894_v24  ;;  %v7982_v23 = vld [vmem:[%s11187_s1 + $0xc40] ss:$16 sps:$4 sm:$0xff]   ;;  %v7985_v24 = vld [vmem:[%s11187_s1 + $0xc48] ss:$16 sps:$4 sm:$0xff]  }
 0x14f   :  { %5124 = vmatpush1.bf16.msra.mxu0 %v7889_v25  ;;  %5683 = vmatpush1.bf16.msra.mxu1 %v7892_v26  ;;  %v7990_v25 = vld [vmem:[%s11187_s1 + $0xc64] ss:$16 sps:$4 sm:$0xff]   ;;  %v7993_v26 = vld [vmem:[%s11187_s1 + $0xc6c] ss:$16 sps:$4 sm:$0xff]  }
 0x150   :  { %5125 = vmatprep.subr.bf16.mxu0 %v7897_v27  ;;  %5684 = vmatprep.subr.bf16.mxu1 %v7900_v28  ;;  %v7988_v27 = vld [vmem:[%s11187_s1 + $0xc60] ss:$16 sps:$4 sm:$0xff]   ;;  %v7991_v28 = vld [vmem:[%s11187_s1 + $0xc68] ss:$16 sps:$4 sm:$0xff]  }
 0x153   :  { %5126 = vmatpush1.bf16.msra.mxu0 %v7895_v29  ;;  %5685 = vmatpush1.bf16.msra.mxu1 %v7898_v30  ;;  %v7996_v29 = vld [vmem:[%s11187_s1 + $0xc84] ss:$16 sps:$4 sm:$0xff]   ;;  %v7999_v30 = vld [vmem:[%s11187_s1 + $0xc8c] ss:$16 sps:$4 sm:$0xff]  }
 0x154   :  { %5127 = vmatprep.subr.bf16.mxu0 %v7903_v31  ;;  %5686 = vmatprep.subr.bf16.mxu1 %v7906_v32  ;;  %v7994_v31 = vld [vmem:[%s11187_s1 + $0xc80] ss:$16 sps:$4 sm:$0xff]   ;;  %v7997_v32 = vld [vmem:[%s11187_s1 + $0xc88] ss:$16 sps:$4 sm:$0xff]  }
 0x157   :  { %5128 = vmatpush1.bf16.msra.mxu0 %v7901_v33  ;;  %5687 = vmatpush1.bf16.msra.mxu1 %v7904_v34  ;;  %v8002_v33 = vld [vmem:[%s11187_s1 + $0xca4] ss:$16 sps:$4 sm:$0xff]   ;;  %v8005_v34 = vld [vmem:[%s11187_s1 + $0xcac] ss:$16 sps:$4 sm:$0xff]  }
 0x158   :  { %5129 = vmatprep.subr.bf16.mxu0 %v7909_v35  ;;  %5688 = vmatprep.subr.bf16.mxu1 %v7912_v36  ;;  %v8000_v35 = vld [vmem:[%s11187_s1 + $0xca0] ss:$16 sps:$4 sm:$0xff]   ;;  %v8003_v36 = vld [vmem:[%s11187_s1 + $0xca8] ss:$16 sps:$4 sm:$0xff]  }
 0x15b   :  { %5130 = vmatpush1.bf16.msra.mxu0 %v7907_v37  ;;  %5689 = vmatpush1.bf16.msra.mxu1 %v7910_v38  ;;  %v8008_v37 = vld [vmem:[%s11187_s1 + $0xcc4] ss:$16 sps:$4 sm:$0xff]   ;;  %v8011_v38 = vld [vmem:[%s11187_s1 + $0xccc] ss:$16 sps:$4 sm:$0xff]  }
 0x15c   :  { %5131 = vmatprep.subr.bf16.mxu0 %v7915_v39  ;;  %5690 = vmatprep.subr.bf16.mxu1 %v7918_v40  ;;  %v8006_v39 = vld [vmem:[%s11187_s1 + $0xcc0] ss:$16 sps:$4 sm:$0xff]   ;;  %v8009_v40 = vld [vmem:[%s11187_s1 + $0xcc8] ss:$16 sps:$4 sm:$0xff]  }
 0x15f   :  { %5132 = vmatpush1.bf16.msra.mxu0 %v7913_v41  ;;  %5691 = vmatpush1.bf16.msra.mxu1 %v7916_v42  ;;  %v8014_v41 = vld [vmem:[%s11187_s1 + $0xce4] ss:$16 sps:$4 sm:$0xff]   ;;  %v8017_v42 = vld [vmem:[%s11187_s1 + $0xcec] ss:$16 sps:$4 sm:$0xff]  }
 0x160   :  { %5133 = vmatprep.subr.bf16.mxu0 %v7921_v43  ;;  %5692 = vmatprep.subr.bf16.mxu1 %v7924_v44  ;;  %v8012_v43 = vld [vmem:[%s11187_s1 + $0xce0] ss:$16 sps:$4 sm:$0xff]   ;;  %v8015_v44 = vld [vmem:[%s11187_s1 + $0xce8] ss:$16 sps:$4 sm:$0xff]  }
 0x163   :  { %5134 = vmatpush1.bf16.msra.mxu0 %v7919_v45  ;;  %5693 = vmatpush1.bf16.msra.mxu1 %v7922_v46  ;;  %v8020_v45 = vld [vmem:[%s11187_s1 + $0xd04] ss:$16 sps:$4 sm:$0xff]   ;;  %v8023_v46 = vld [vmem:[%s11187_s1 + $0xd0c] ss:$16 sps:$4 sm:$0xff]  }
 0x164   :  { %5135 = vmatprep.subr.bf16.mxu0 %v7927_v47  ;;  %5694 = vmatprep.subr.bf16.mxu1 %v7930_v48  ;;  %v8018_v47 = vld [vmem:[%s11187_s1 + $0xd00] ss:$16 sps:$4 sm:$0xff]   ;;  %v8021_v48 = vld [vmem:[%s11187_s1 + $0xd08] ss:$16 sps:$4 sm:$0xff]  }
 0x167   :  { %5136 = vmatpush1.bf16.msra.mxu0 %v7925_v49  ;;  %5695 = vmatpush1.bf16.msra.mxu1 %v7928_v50  ;;  %v8026_v49 = vld [vmem:[%s11187_s1 + $0xd24] ss:$16 sps:$4 sm:$0xff]   ;;  %v8029_v50 = vld [vmem:[%s11187_s1 + $0xd2c] ss:$16 sps:$4 sm:$0xff]  }
 0x168   :  { %5137 = vmatprep.subr.bf16.mxu0 %v7933_v51  ;;  %5696 = vmatprep.subr.bf16.mxu1 %v7936_v52  ;;  %v8024_v51 = vld [vmem:[%s11187_s1 + $0xd20] ss:$16 sps:$4 sm:$0xff]   ;;  %v8027_v52 = vld [vmem:[%s11187_s1 + $0xd28] ss:$16 sps:$4 sm:$0xff]  }
 0x16b   :  { %5138 = vmatpush1.bf16.msra.mxu0 %v7931_v53  ;;  %5697 = vmatpush1.bf16.msra.mxu1 %v7934_v54  ;;  %v8032_v53 = vld [vmem:[%s11187_s1 + $0xd44] ss:$16 sps:$4 sm:$0xff]   ;;  %v8035_v54 = vld [vmem:[%s11187_s1 + $0xd4c] ss:$16 sps:$4 sm:$0xff]  }
 0x16c   :  { %5139 = vmatprep.subr.bf16.mxu0 %v7939_v55  ;;  %5698 = vmatprep.subr.bf16.mxu1 %v7942_v56  ;;  %v8030_v55 = vld [vmem:[%s11187_s1 + $0xd40] ss:$16 sps:$4 sm:$0xff]   ;;  %v8033_v56 = vld [vmem:[%s11187_s1 + $0xd48] ss:$16 sps:$4 sm:$0xff]  }
 0x16f   :  { %5140 = vmatpush1.bf16.msra.mxu0 %v7937_v57  ;;  %5699 = vmatpush1.bf16.msra.mxu1 %v7940_v58  ;;  %v8038_v57 = vld [vmem:[%s11187_s1 + $0xd64] ss:$16 sps:$4 sm:$0xff]   ;;  %v8041_v58 = vld [vmem:[%s11187_s1 + $0xd6c] ss:$16 sps:$4 sm:$0xff]  }
 0x170   :  { %5141 = vmatprep.subr.bf16.mxu0 %v7945_v59  ;;  %5700 = vmatprep.subr.bf16.mxu1 %v7948_v60  ;;  %v8036_v59 = vld [vmem:[%s11187_s1 + $0xd60] ss:$16 sps:$4 sm:$0xff]   ;;  %v8039_v60 = vld [vmem:[%s11187_s1 + $0xd68] ss:$16 sps:$4 sm:$0xff]  }
 0x173   :  { %5142 = vmatpush1.bf16.msra.mxu0 %v7943_v61  ;;  %5701 = vmatpush1.bf16.msra.mxu1 %v7946_v62  ;;  %v8044_v61 = vld [vmem:[%s11187_s1 + $0xd84] ss:$16 sps:$4 sm:$0xff]   ;;  %v8047_v62 = vld [vmem:[%s11187_s1 + $0xd8c] ss:$16 sps:$4 sm:$0xff]  }
 0x174   :  { %5143 = vmatprep.subr.bf16.mxu0 %v7951_v63  ;;  %5702 = vmatprep.subr.bf16.mxu1 %v7954_v0  ;;  %v8042_v63 = vld [vmem:[%s11187_s1 + $0xd80] ss:$16 sps:$4 sm:$0xff]   ;;  %v8045_v0 = vld [vmem:[%s11187_s1 + $0xd88] ss:$16 sps:$4 sm:$0xff]  }
 0x177   :  { %5144 = vmatpush1.bf16.msra.mxu0 %v7949_v1  ;;  %5703 = vmatpush1.bf16.msra.mxu1 %v7952_v2  ;;  %v8050_v1 = vld [vmem:[%s11187_s1 + $0xda4] ss:$16 sps:$4 sm:$0xff]   ;;  %v8053_v2 = vld [vmem:[%s11187_s1 + $0xdac] ss:$16 sps:$4 sm:$0xff]  }
 0x178   :  { %5145 = vmatprep.subr.bf16.mxu0 %v7957_v3  ;;  %5704 = vmatprep.subr.bf16.mxu1 %v7960_v4  ;;  %v8048_v3 = vld [vmem:[%s11187_s1 + $0xda0] ss:$16 sps:$4 sm:$0xff]   ;;  %v8051_v4 = vld [vmem:[%s11187_s1 + $0xda8] ss:$16 sps:$4 sm:$0xff]  }
 0x17b   :  { %5146 = vmatpush1.bf16.msra.mxu0 %v7955_v5  ;;  %5705 = vmatpush1.bf16.msra.mxu1 %v7958_v6  ;;  %v8056_v5 = vld [vmem:[%s11187_s1 + $0xdc4] ss:$16 sps:$4 sm:$0xff]   ;;  %v8059_v6 = vld [vmem:[%s11187_s1 + $0xdcc] ss:$16 sps:$4 sm:$0xff]  }
 0x17c   :  { %5147 = vmatprep.subr.bf16.mxu0 %v7963_v7  ;;  %5706 = vmatprep.subr.bf16.mxu1 %v7966_v8  ;;  %v8054_v7 = vld [vmem:[%s11187_s1 + $0xdc0] ss:$16 sps:$4 sm:$0xff]   ;;  %v8057_v8 = vld [vmem:[%s11187_s1 + $0xdc8] ss:$16 sps:$4 sm:$0xff]  }
 0x17f   :  { %5148 = vmatpush1.bf16.msra.mxu0 %v7961_v9  ;;  %5707 = vmatpush1.bf16.msra.mxu1 %v7964_v10  ;;  %v8062_v9 = vld [vmem:[%s11187_s1 + $0xde4] ss:$16 sps:$4 sm:$0xff]   ;;  %v8065_v10 = vld [vmem:[%s11187_s1 + $0xdec] ss:$16 sps:$4 sm:$0xff]  }
 0x180   :  { %5160 = vmatprep.subr.bf16.mxu0 %v7972_v12  ;;  %5719 = vmatprep.subr.bf16.mxu1 %v7975_v13  ;;  %v8063_v12 = vld [vmem:[%s11187_s1 + $0xde8] ss:$16 sps:$4 sm:$0xff]   ;;  %v8066_v13 = vld [vmem:[%s11188_s0 + $0x30] ss:$100 sps:$4 sm:$0xff]  }
 0x182   :  { %5150 = vmatmul.mubr.bf16.vlgmr.msra.gmra.mrb[0].mxu0 %v7967_v11  ;;  %5709 = vmatmul.mubr.bf16.vlgmr.msra.gmra.mrb[0].mxu1 %v7967_v11  ;;  %v8060_v11 = vld [vmem:[%s11187_s1 + $0xde0] ss:$16 sps:$4 sm:$0xff]  }
 0x183   :  { %5161 = vmatpush1.bf16.msra.mxu0 %v7970_v14  ;;  %5720 = vmatpush1.bf16.msra.mxu1 %v7973_v15  ;;  %v8071_v14 = vld [vmem:[%s11187_s1 + $0xe04] ss:$16 sps:$4 sm:$0xff]   ;;  %v8074_v15 = vld [vmem:[%s11187_s1 + $0xe0c] ss:$16 sps:$4 sm:$0xff]  }
 0x184   :  { %5162 = vmatprep.subr.bf16.mxu0 %v7978_v16  ;;  %5721 = vmatprep.subr.bf16.mxu1 %v7981_v17  ;;  %v8069_v16 = vld [vmem:[%s11187_s1 + $0xe00] ss:$16 sps:$4 sm:$0xff]   ;;  %v8072_v17 = vld [vmem:[%s11187_s1 + $0xe08] ss:$16 sps:$4 sm:$0xff]  }
 0x185   :  { %5192 = vmatprep.mubr.bf16.mxu0 %v8068_v18  ;;  %5751 = vmatprep.mubr.bf16.mxu1 %v8068_v18  ;;  %v8077_v18 = vld [vmem:[%s11187_s1 + $0xe24] ss:$16 sps:$4 sm:$0xff]  }
 0x187   :  { %5163 = vmatpush1.bf16.msra.mxu0 %v7976_v19  ;;  %5722 = vmatpush1.bf16.msra.mxu1 %v7979_v20  ;;  %v8080_v19 = vld [vmem:[%s11187_s1 + $0xe2c] ss:$16 sps:$4 sm:$0xff]  }
 0x188   :  { %5164 = vmatprep.subr.bf16.mxu0 %v7984_v21  ;;  %5723 = vmatprep.subr.bf16.mxu1 %v7987_v22  ;;  %v8167_v20 = vld [vmem:[%s11188_s0 + $0x3c] ss:$100 sps:$4 sm:$0xff]   ;;  %v8078_v22 = vld [vmem:[%s11187_s1 + $0xe28] ss:$16 sps:$4 sm:$0xff]  }
 0x189   :  { %v8075_v21 = vld [vmem:[%s11187_s1 + $0xe20] ss:$16 sps:$4 sm:$0xff]  }
 0x18b   :  { %5165 = vmatpush1.bf16.msra.mxu0 %v7982_v23  ;;  %5724 = vmatpush1.bf16.msra.mxu1 %v7985_v24  ;;  %v8083_v23 = vld [vmem:[%s11187_s1 + $0xe44] ss:$16 sps:$4 sm:$0xff]   ;;  %v8086_v24 = vld [vmem:[%s11187_s1 + $0xe4c] ss:$16 sps:$4 sm:$0xff]  }
 0x18c   :  { %5166 = vmatprep.subr.bf16.mxu0 %v7990_v25  ;;  %5725 = vmatprep.subr.bf16.mxu1 %v7993_v26  ;;  %v8081_v25 = vld [vmem:[%s11187_s1 + $0xe40] ss:$16 sps:$4 sm:$0xff]   ;;  %v8084_v26 = vld [vmem:[%s11187_s1 + $0xe48] ss:$16 sps:$4 sm:$0xff]  }
 0x18f   :  { %5167 = vmatpush1.bf16.msra.mxu0 %v7988_v27  ;;  %5726 = vmatpush1.bf16.msra.mxu1 %v7991_v28  ;;  %v8089_v27 = vld [vmem:[%s11187_s1 + $0xe64] ss:$16 sps:$4 sm:$0xff]   ;;  %v8092_v28 = vld [vmem:[%s11187_s1 + $0xe6c] ss:$16 sps:$4 sm:$0xff]  }
 0x190   :  { %5168 = vmatprep.subr.bf16.mxu0 %v7996_v29  ;;  %5727 = vmatprep.subr.bf16.mxu1 %v7999_v30  ;;  %v8087_v29 = vld [vmem:[%s11187_s1 + $0xe60] ss:$16 sps:$4 sm:$0xff]   ;;  %v8090_v30 = vld [vmem:[%s11187_s1 + $0xe68] ss:$16 sps:$4 sm:$0xff]  }
 0x193   :  { %5169 = vmatpush1.bf16.msra.mxu0 %v7994_v31  ;;  %5728 = vmatpush1.bf16.msra.mxu1 %v7997_v32  ;;  %v8095_v31 = vld [vmem:[%s11187_s1 + $0xe84] ss:$16 sps:$4 sm:$0xff]   ;;  %v8098_v32 = vld [vmem:[%s11187_s1 + $0xe8c] ss:$16 sps:$4 sm:$0xff]  }
 0x194   :  { %5170 = vmatprep.subr.bf16.mxu0 %v8002_v33  ;;  %5729 = vmatprep.subr.bf16.mxu1 %v8005_v34  ;;  %v8093_v33 = vld [vmem:[%s11187_s1 + $0xe80] ss:$16 sps:$4 sm:$0xff]   ;;  %v8096_v34 = vld [vmem:[%s11187_s1 + $0xe88] ss:$16 sps:$4 sm:$0xff]  }
 0x197   :  { %5171 = vmatpush1.bf16.msra.mxu0 %v8000_v35  ;;  %5730 = vmatpush1.bf16.msra.mxu1 %v8003_v36  ;;  %v8101_v35 = vld [vmem:[%s11187_s1 + $0xea4] ss:$16 sps:$4 sm:$0xff]   ;;  %v8104_v36 = vld [vmem:[%s11187_s1 + $0xeac] ss:$16 sps:$4 sm:$0xff]  }
 0x198   :  { %5172 = vmatprep.subr.bf16.mxu0 %v8008_v37  ;;  %5731 = vmatprep.subr.bf16.mxu1 %v8011_v38  ;;  %v8099_v37 = vld [vmem:[%s11187_s1 + $0xea0] ss:$16 sps:$4 sm:$0xff]   ;;  %v8102_v38 = vld [vmem:[%s11187_s1 + $0xea8] ss:$16 sps:$4 sm:$0xff]  }
 0x19b   :  { %5173 = vmatpush1.bf16.msra.mxu0 %v8006_v39  ;;  %5732 = vmatpush1.bf16.msra.mxu1 %v8009_v40  ;;  %v8107_v39 = vld [vmem:[%s11187_s1 + $0xec4] ss:$16 sps:$4 sm:$0xff]   ;;  %v8110_v40 = vld [vmem:[%s11187_s1 + $0xecc] ss:$16 sps:$4 sm:$0xff]  }
 0x19c   :  { %5174 = vmatprep.subr.bf16.mxu0 %v8014_v41  ;;  %5733 = vmatprep.subr.bf16.mxu1 %v8017_v42  ;;  %v8105_v41 = vld [vmem:[%s11187_s1 + $0xec0] ss:$16 sps:$4 sm:$0xff]   ;;  %v8108_v42 = vld [vmem:[%s11187_s1 + $0xec8] ss:$16 sps:$4 sm:$0xff]  }
 0x19f   :  { %5175 = vmatpush1.bf16.msra.mxu0 %v8012_v43  ;;  %5734 = vmatpush1.bf16.msra.mxu1 %v8015_v44  ;;  %v8113_v43 = vld [vmem:[%s11187_s1 + $0xee4] ss:$16 sps:$4 sm:$0xff]   ;;  %v8116_v44 = vld [vmem:[%s11187_s1 + $0xeec] ss:$16 sps:$4 sm:$0xff]  }
 0x1a0   :  { %5176 = vmatprep.subr.bf16.mxu0 %v8020_v45  ;;  %5735 = vmatprep.subr.bf16.mxu1 %v8023_v46  ;;  %v8111_v45 = vld [vmem:[%s11187_s1 + $0xee0] ss:$16 sps:$4 sm:$0xff]   ;;  %v8114_v46 = vld [vmem:[%s11187_s1 + $0xee8] ss:$16 sps:$4 sm:$0xff]  }
 0x1a3   :  { %5177 = vmatpush1.bf16.msra.mxu0 %v8018_v47  ;;  %5736 = vmatpush1.bf16.msra.mxu1 %v8021_v48  ;;  %v8119_v47 = vld [vmem:[%s11187_s1 + $0xf04] ss:$16 sps:$4 sm:$0xff]   ;;  %v8122_v48 = vld [vmem:[%s11187_s1 + $0xf0c] ss:$16 sps:$4 sm:$0xff]  }
 0x1a4   :  { %5178 = vmatprep.subr.bf16.mxu0 %v8026_v49  ;;  %5737 = vmatprep.subr.bf16.mxu1 %v8029_v50  ;;  %v8117_v49 = vld [vmem:[%s11187_s1 + $0xf00] ss:$16 sps:$4 sm:$0xff]   ;;  %v8120_v50 = vld [vmem:[%s11187_s1 + $0xf08] ss:$16 sps:$4 sm:$0xff]  }
 0x1a7   :  { %5179 = vmatpush1.bf16.msra.mxu0 %v8024_v51  ;;  %5738 = vmatpush1.bf16.msra.mxu1 %v8027_v52  ;;  %v8125_v51 = vld [vmem:[%s11187_s1 + $0xf24] ss:$16 sps:$4 sm:$0xff]   ;;  %v8128_v52 = vld [vmem:[%s11187_s1 + $0xf2c] ss:$16 sps:$4 sm:$0xff]  }
 0x1a8   :  { %5180 = vmatprep.subr.bf16.mxu0 %v8032_v53  ;;  %5739 = vmatprep.subr.bf16.mxu1 %v8035_v54  ;;  %v8123_v53 = vld [vmem:[%s11187_s1 + $0xf20] ss:$16 sps:$4 sm:$0xff]   ;;  %v8126_v54 = vld [vmem:[%s11187_s1 + $0xf28] ss:$16 sps:$4 sm:$0xff]  }
 0x1ab   :  { %5181 = vmatpush1.bf16.msra.mxu0 %v8030_v55  ;;  %5740 = vmatpush1.bf16.msra.mxu1 %v8033_v56  ;;  %v8131_v55 = vld [vmem:[%s11187_s1 + $0xf44] ss:$16 sps:$4 sm:$0xff]   ;;  %v8134_v56 = vld [vmem:[%s11187_s1 + $0xf4c] ss:$16 sps:$4 sm:$0xff]  }
 0x1ac   :  { %5182 = vmatprep.subr.bf16.mxu0 %v8038_v57  ;;  %5741 = vmatprep.subr.bf16.mxu1 %v8041_v58  ;;  %v8129_v57 = vld [vmem:[%s11187_s1 + $0xf40] ss:$16 sps:$4 sm:$0xff]   ;;  %v8132_v58 = vld [vmem:[%s11187_s1 + $0xf48] ss:$16 sps:$4 sm:$0xff]  }
 0x1af   :  { %5183 = vmatpush1.bf16.msra.mxu0 %v8036_v59  ;;  %5742 = vmatpush1.bf16.msra.mxu1 %v8039_v60  ;;  %v8137_v59 = vld [vmem:[%s11187_s1 + $0xf64] ss:$16 sps:$4 sm:$0xff]   ;;  %v8140_v60 = vld [vmem:[%s11187_s1 + $0xf6c] ss:$16 sps:$4 sm:$0xff]  }
 0x1b0   :  { %5184 = vmatprep.subr.bf16.mxu0 %v8044_v61  ;;  %5743 = vmatprep.subr.bf16.mxu1 %v8047_v62  ;;  %v8135_v61 = vld [vmem:[%s11187_s1 + $0xf60] ss:$16 sps:$4 sm:$0xff]   ;;  %v8138_v62 = vld [vmem:[%s11187_s1 + $0xf68] ss:$16 sps:$4 sm:$0xff]  }
 0x1b3   :  { %5185 = vmatpush1.bf16.msra.mxu0 %v8042_v63  ;;  %5744 = vmatpush1.bf16.msra.mxu1 %v8045_v0  ;;  %v8143_v63 = vld [vmem:[%s11187_s1 + $0xf84] ss:$16 sps:$4 sm:$0xff]   ;;  %v8146_v0 = vld [vmem:[%s11187_s1 + $0xf8c] ss:$16 sps:$4 sm:$0xff]  }
 0x1b4   :  { %5186 = vmatprep.subr.bf16.mxu0 %v8050_v1  ;;  %5745 = vmatprep.subr.bf16.mxu1 %v8053_v2  ;;  %v8141_v1 = vld [vmem:[%s11187_s1 + $0xf80] ss:$16 sps:$4 sm:$0xff]   ;;  %v8144_v2 = vld [vmem:[%s11187_s1 + $0xf88] ss:$16 sps:$4 sm:$0xff]  }
 0x1b7   :  { %5187 = vmatpush1.bf16.msra.mxu0 %v8048_v3  ;;  %5746 = vmatpush1.bf16.msra.mxu1 %v8051_v4  ;;  %v8149_v3 = vld [vmem:[%s11187_s1 + $0xfa4] ss:$16 sps:$4 sm:$0xff]   ;;  %v8152_v4 = vld [vmem:[%s11187_s1 + $0xfac] ss:$16 sps:$4 sm:$0xff]  }
 0x1b8   :  { %5188 = vmatprep.subr.bf16.mxu0 %v8056_v5  ;;  %5747 = vmatprep.subr.bf16.mxu1 %v8059_v6  ;;  %v8147_v5 = vld [vmem:[%s11187_s1 + $0xfa0] ss:$16 sps:$4 sm:$0xff]   ;;  %v8150_v6 = vld [vmem:[%s11187_s1 + $0xfa8] ss:$16 sps:$4 sm:$0xff]  }
 0x1bb   :  { %5189 = vmatpush1.bf16.msra.mxu0 %v8054_v7  ;;  %5748 = vmatpush1.bf16.msra.mxu1 %v8057_v8  ;;  %v8155_v7 = vld [vmem:[%s11187_s1 + $0xfc4] ss:$16 sps:$4 sm:$0xff]   ;;  %v8158_v8 = vld [vmem:[%s11187_s1 + $0xfcc] ss:$16 sps:$4 sm:$0xff]  }
 0x1bc   :  { %5190 = vmatprep.subr.bf16.mxu0 %v8062_v9  ;;  %5749 = vmatprep.subr.bf16.mxu1 %v8065_v10  ;;  %v8153_v9 = vld [vmem:[%s11187_s1 + $0xfc0] ss:$16 sps:$4 sm:$0xff]   ;;  %v8156_v10 = vld [vmem:[%s11187_s1 + $0xfc8] ss:$16 sps:$4 sm:$0xff]  }
 0x1bf   :  { %5191 = vmatpush1.bf16.msra.mxu0 %v8060_v11  ;;  %5750 = vmatpush1.bf16.msra.mxu1 %v8063_v12  ;;  %v8161_v11 = vld [vmem:[%s11187_s1 + $0xfe4] ss:$16 sps:$4 sm:$0xff]   ;;  %v8164_v12 = vld [vmem:[%s11187_s1 + $0xfec] ss:$16 sps:$4 sm:$0xff]  }
 0x1c0   :  { %5203 = vmatprep.subr.bf16.mxu0 %v8071_v14  ;;  %5762 = vmatprep.subr.bf16.mxu1 %v8074_v15  ;;  %v8162_v14 = vld [vmem:[%s11187_s1 + $0xfe8] ss:$16 sps:$4 sm:$0xff]   ;;  %v8170_v15 = vld [vmem:[%s11187_s1 + $0x1004] ss:$16 sps:$4 sm:$0xff]  }
 0x1c2   :  { %5193 = vmatmul.mubr.bf16.vlgmr.msra.gmra.mrb[0].mxu0 %v8066_v13  ;;  %5752 = vmatmul.mubr.bf16.vlgmr.msra.gmra.mrb[0].mxu1 %v8066_v13  ;;  %v8159_v13 = vld [vmem:[%s11187_s1 + $0xfe0] ss:$16 sps:$4 sm:$0xff]  }
 0x1c3   :  { %5204 = vmatpush1.bf16.msra.mxu0 %v8069_v16  ;;  %5763 = vmatpush1.bf16.msra.mxu1 %v8072_v17  ;;  %v8173_v16 = vld [vmem:[%s11187_s1 + $0x100c] ss:$16 sps:$4 sm:$0xff]  }
 0x1c4   :  { %5205 = vmatprep.subr.bf16.mxu0 %v8077_v18  ;;  %5764 = vmatprep.subr.bf16.mxu1 %v8080_v19  ;;  %v8165_v17 = vld [vmem:[%s11188_s0 + $0x38] ss:$100 sps:$4 sm:$0xff]   ;;  %v8168_v18 = vld [vmem:[%s11187_s1 + $0x1000] ss:$16 sps:$4 sm:$0xff]  }
 0x1c5   :  { %5235 = vmatprep.mubr.bf16.mxu0 %v8167_v20  ;;  %5794 = vmatprep.mubr.bf16.mxu1 %v8167_v20  ;;  %v8171_v19 = vld [vmem:[%s11187_s1 + $0x1008] ss:$16 sps:$4 sm:$0xff]   ;;  %v8176_v20 = vld [vmem:[%s11187_s1 + $0x1024] ss:$16 sps:$4 sm:$0xff]  }
 0x1c7   :  { %5206 = vmatpush1.bf16.msra.mxu0 %v8075_v21  ;;  %5765 = vmatpush1.bf16.msra.mxu1 %v8078_v22  ;;  %v8179_v21 = vld [vmem:[%s11187_s1 + $0x102c] ss:$16 sps:$4 sm:$0xff]   ;;  %v8266_v22 = vld [vmem:[%s11188_s0 + $0x44] ss:$100 sps:$4 sm:$0xff]  }
 0x1c8   :  { %5207 = vmatprep.subr.bf16.mxu0 %v8083_v23  ;;  %5766 = vmatprep.subr.bf16.mxu1 %v8086_v24  ;;  %v8174_v23 = vld [vmem:[%s11187_s1 + $0x1020] ss:$16 sps:$4 sm:$0xff]   ;;  %v8177_v24 = vld [vmem:[%s11187_s1 + $0x1028] ss:$16 sps:$4 sm:$0xff]  }
 0x1cb   :  { %5208 = vmatpush1.bf16.msra.mxu0 %v8081_v25  ;;  %5767 = vmatpush1.bf16.msra.mxu1 %v8084_v26  ;;  %v8182_v25 = vld [vmem:[%s11187_s1 + $0x1044] ss:$16 sps:$4 sm:$0xff]   ;;  %v8185_v26 = vld [vmem:[%s11187_s1 + $0x104c] ss:$16 sps:$4 sm:$0xff]  }
 0x1cc   :  { %5209 = vmatprep.subr.bf16.mxu0 %v8089_v27  ;;  %5768 = vmatprep.subr.bf16.mxu1 %v8092_v28  ;;  %v8180_v27 = vld [vmem:[%s11187_s1 + $0x1040] ss:$16 sps:$4 sm:$0xff]   ;;  %v8183_v28 = vld [vmem:[%s11187_s1 + $0x1048] ss:$16 sps:$4 sm:$0xff]  }
 0x1cf   :  { %5210 = vmatpush1.bf16.msra.mxu0 %v8087_v29  ;;  %5769 = vmatpush1.bf16.msra.mxu1 %v8090_v30  ;;  %v8188_v29 = vld [vmem:[%s11187_s1 + $0x1064] ss:$16 sps:$4 sm:$0xff]   ;;  %v8191_v30 = vld [vmem:[%s11187_s1 + $0x106c] ss:$16 sps:$4 sm:$0xff]  }
 0x1d0   :  { %5211 = vmatprep.subr.bf16.mxu0 %v8095_v31  ;;  %5770 = vmatprep.subr.bf16.mxu1 %v8098_v32  ;;  %v8186_v31 = vld [vmem:[%s11187_s1 + $0x1060] ss:$16 sps:$4 sm:$0xff]   ;;  %v8189_v32 = vld [vmem:[%s11187_s1 + $0x1068] ss:$16 sps:$4 sm:$0xff]  }
 0x1d3   :  { %5212 = vmatpush1.bf16.msra.mxu0 %v8093_v33  ;;  %5771 = vmatpush1.bf16.msra.mxu1 %v8096_v34  ;;  %v8194_v33 = vld [vmem:[%s11187_s1 + $0x1084] ss:$16 sps:$4 sm:$0xff]   ;;  %v8197_v34 = vld [vmem:[%s11187_s1 + $0x108c] ss:$16 sps:$4 sm:$0xff]  }
 0x1d4   :  { %5213 = vmatprep.subr.bf16.mxu0 %v8101_v35  ;;  %5772 = vmatprep.subr.bf16.mxu1 %v8104_v36  ;;  %v8192_v35 = vld [vmem:[%s11187_s1 + $0x1080] ss:$16 sps:$4 sm:$0xff]   ;;  %v8195_v36 = vld [vmem:[%s11187_s1 + $0x1088] ss:$16 sps:$4 sm:$0xff]  }
 0x1d7   :  { %5214 = vmatpush1.bf16.msra.mxu0 %v8099_v37  ;;  %5773 = vmatpush1.bf16.msra.mxu1 %v8102_v38  ;;  %v8200_v37 = vld [vmem:[%s11187_s1 + $0x10a4] ss:$16 sps:$4 sm:$0xff]   ;;  %v8203_v38 = vld [vmem:[%s11187_s1 + $0x10ac] ss:$16 sps:$4 sm:$0xff]  }
 0x1d8   :  { %5215 = vmatprep.subr.bf16.mxu0 %v8107_v39  ;;  %5774 = vmatprep.subr.bf16.mxu1 %v8110_v40  ;;  %v8198_v39 = vld [vmem:[%s11187_s1 + $0x10a0] ss:$16 sps:$4 sm:$0xff]   ;;  %v8201_v40 = vld [vmem:[%s11187_s1 + $0x10a8] ss:$16 sps:$4 sm:$0xff]  }
 0x1db   :  { %5216 = vmatpush1.bf16.msra.mxu0 %v8105_v41  ;;  %5775 = vmatpush1.bf16.msra.mxu1 %v8108_v42  ;;  %v8206_v41 = vld [vmem:[%s11187_s1 + $0x10c4] ss:$16 sps:$4 sm:$0xff]   ;;  %v8209_v42 = vld [vmem:[%s11187_s1 + $0x10cc] ss:$16 sps:$4 sm:$0xff]  }
 0x1dc   :  { %5217 = vmatprep.subr.bf16.mxu0 %v8113_v43  ;;  %5776 = vmatprep.subr.bf16.mxu1 %v8116_v44  ;;  %v8204_v43 = vld [vmem:[%s11187_s1 + $0x10c0] ss:$16 sps:$4 sm:$0xff]   ;;  %v8207_v44 = vld [vmem:[%s11187_s1 + $0x10c8] ss:$16 sps:$4 sm:$0xff]  }
 0x1df   :  { %5218 = vmatpush1.bf16.msra.mxu0 %v8111_v45  ;;  %5777 = vmatpush1.bf16.msra.mxu1 %v8114_v46  ;;  %v8212_v45 = vld [vmem:[%s11187_s1 + $0x10e4] ss:$16 sps:$4 sm:$0xff]   ;;  %v8215_v46 = vld [vmem:[%s11187_s1 + $0x10ec] ss:$16 sps:$4 sm:$0xff]  }
 0x1e0   :  { %5219 = vmatprep.subr.bf16.mxu0 %v8119_v47  ;;  %5778 = vmatprep.subr.bf16.mxu1 %v8122_v48  ;;  %v8210_v47 = vld [vmem:[%s11187_s1 + $0x10e0] ss:$16 sps:$4 sm:$0xff]   ;;  %v8213_v48 = vld [vmem:[%s11187_s1 + $0x10e8] ss:$16 sps:$4 sm:$0xff]  }
 0x1e3   :  { %5220 = vmatpush1.bf16.msra.mxu0 %v8117_v49  ;;  %5779 = vmatpush1.bf16.msra.mxu1 %v8120_v50  ;;  %v8218_v49 = vld [vmem:[%s11187_s1 + $0x1104] ss:$16 sps:$4 sm:$0xff]   ;;  %v8221_v50 = vld [vmem:[%s11187_s1 + $0x110c] ss:$16 sps:$4 sm:$0xff]  }
 0x1e4   :  { %5221 = vmatprep.subr.bf16.mxu0 %v8125_v51  ;;  %5780 = vmatprep.subr.bf16.mxu1 %v8128_v52  ;;  %v8216_v51 = vld [vmem:[%s11187_s1 + $0x1100] ss:$16 sps:$4 sm:$0xff]   ;;  %v8219_v52 = vld [vmem:[%s11187_s1 + $0x1108] ss:$16 sps:$4 sm:$0xff]  }
 0x1e7   :  { %5222 = vmatpush1.bf16.msra.mxu0 %v8123_v53  ;;  %5781 = vmatpush1.bf16.msra.mxu1 %v8126_v54  ;;  %v8224_v53 = vld [vmem:[%s11187_s1 + $0x1124] ss:$16 sps:$4 sm:$0xff]   ;;  %v8227_v54 = vld [vmem:[%s11187_s1 + $0x112c] ss:$16 sps:$4 sm:$0xff]  }
 0x1e8   :  { %5223 = vmatprep.subr.bf16.mxu0 %v8131_v55  ;;  %5782 = vmatprep.subr.bf16.mxu1 %v8134_v56  ;;  %v8222_v55 = vld [vmem:[%s11187_s1 + $0x1120] ss:$16 sps:$4 sm:$0xff]   ;;  %v8225_v56 = vld [vmem:[%s11187_s1 + $0x1128] ss:$16 sps:$4 sm:$0xff]  }
 0x1eb   :  { %5224 = vmatpush1.bf16.msra.mxu0 %v8129_v57  ;;  %5783 = vmatpush1.bf16.msra.mxu1 %v8132_v58  ;;  %v8230_v57 = vld [vmem:[%s11187_s1 + $0x1144] ss:$16 sps:$4 sm:$0xff]   ;;  %v8233_v58 = vld [vmem:[%s11187_s1 + $0x114c] ss:$16 sps:$4 sm:$0xff]  }
 0x1ec   :  { %5225 = vmatprep.subr.bf16.mxu0 %v8137_v59  ;;  %5784 = vmatprep.subr.bf16.mxu1 %v8140_v60  ;;  %v8228_v59 = vld [vmem:[%s11187_s1 + $0x1140] ss:$16 sps:$4 sm:$0xff]   ;;  %v8231_v60 = vld [vmem:[%s11187_s1 + $0x1148] ss:$16 sps:$4 sm:$0xff]  }
 0x1ef   :  { %5226 = vmatpush1.bf16.msra.mxu0 %v8135_v61  ;;  %5785 = vmatpush1.bf16.msra.mxu1 %v8138_v62  ;;  %v8236_v61 = vld [vmem:[%s11187_s1 + $0x1164] ss:$16 sps:$4 sm:$0xff]   ;;  %v8239_v62 = vld [vmem:[%s11187_s1 + $0x116c] ss:$16 sps:$4 sm:$0xff]  }
 0x1f0   :  { %5227 = vmatprep.subr.bf16.mxu0 %v8143_v63  ;;  %5786 = vmatprep.subr.bf16.mxu1 %v8146_v0  ;;  %v8234_v63 = vld [vmem:[%s11187_s1 + $0x1160] ss:$16 sps:$4 sm:$0xff]   ;;  %v8237_v0 = vld [vmem:[%s11187_s1 + $0x1168] ss:$16 sps:$4 sm:$0xff]  }
 0x1f3   :  { %5228 = vmatpush1.bf16.msra.mxu0 %v8141_v1  ;;  %5787 = vmatpush1.bf16.msra.mxu1 %v8144_v2  ;;  %v8242_v1 = vld [vmem:[%s11187_s1 + $0x1184] ss:$16 sps:$4 sm:$0xff]   ;;  %v8245_v2 = vld [vmem:[%s11187_s1 + $0x118c] ss:$16 sps:$4 sm:$0xff]  }
 0x1f4   :  { %5229 = vmatprep.subr.bf16.mxu0 %v8149_v3  ;;  %5788 = vmatprep.subr.bf16.mxu1 %v8152_v4  ;;  %v8240_v3 = vld [vmem:[%s11187_s1 + $0x1180] ss:$16 sps:$4 sm:$0xff]   ;;  %v8243_v4 = vld [vmem:[%s11187_s1 + $0x1188] ss:$16 sps:$4 sm:$0xff]  }
 0x1f7   :  { %5230 = vmatpush1.bf16.msra.mxu0 %v8147_v5  ;;  %5789 = vmatpush1.bf16.msra.mxu1 %v8150_v6  ;;  %v8248_v5 = vld [vmem:[%s11187_s1 + $0x11a4] ss:$16 sps:$4 sm:$0xff]   ;;  %v8251_v6 = vld [vmem:[%s11187_s1 + $0x11ac] ss:$16 sps:$4 sm:$0xff]  }
 0x1f8   :  { %5231 = vmatprep.subr.bf16.mxu0 %v8155_v7  ;;  %5790 = vmatprep.subr.bf16.mxu1 %v8158_v8  ;;  %v8246_v7 = vld [vmem:[%s11187_s1 + $0x11a0] ss:$16 sps:$4 sm:$0xff]   ;;  %v8249_v8 = vld [vmem:[%s11187_s1 + $0x11a8] ss:$16 sps:$4 sm:$0xff]  }
 0x1fb   :  { %5232 = vmatpush1.bf16.msra.mxu0 %v8153_v9  ;;  %5791 = vmatpush1.bf16.msra.mxu1 %v8156_v10  ;;  %v8254_v9 = vld [vmem:[%s11187_s1 + $0x11c4] ss:$16 sps:$4 sm:$0xff]   ;;  %v8257_v10 = vld [vmem:[%s11187_s1 + $0x11cc] ss:$16 sps:$4 sm:$0xff]  }
 0x1fc   :  { %5233 = vmatprep.subr.bf16.mxu0 %v8161_v11  ;;  %5792 = vmatprep.subr.bf16.mxu1 %v8164_v12  ;;  %v8252_v11 = vld [vmem:[%s11187_s1 + $0x11c0] ss:$16 sps:$4 sm:$0xff]   ;;  %v8255_v12 = vld [vmem:[%s11187_s1 + $0x11c8] ss:$16 sps:$4 sm:$0xff]  }
 0x1ff   :  { %5234 = vmatpush1.bf16.msra.mxu0 %v8159_v13  ;;  %5793 = vmatpush1.bf16.msra.mxu1 %v8162_v14  ;;  %v8260_v13 = vld [vmem:[%s11187_s1 + $0x11e4] ss:$16 sps:$4 sm:$0xff]   ;;  %v8263_v14 = vld [vmem:[%s11187_s1 + $0x11ec] ss:$16 sps:$4 sm:$0xff]  }
 0x200   :  { %5246 = vmatprep.subr.bf16.mxu0 %v8170_v15  ;;  %5805 = vmatprep.subr.bf16.mxu1 %v8173_v16  ;;  %v8258_v15 = vld [vmem:[%s11187_s1 + $0x11e0] ss:$16 sps:$4 sm:$0xff]   ;;  %v8261_v16 = vld [vmem:[%s11187_s1 + $0x11e8] ss:$16 sps:$4 sm:$0xff]  }
 0x202   :  { %5236 = vmatmul.mubr.bf16.vlgmr.msra.gmra.mrb[0].mxu0 %v8165_v17  ;;  %5795 = vmatmul.mubr.bf16.vlgmr.msra.gmra.mrb[0].mxu1 %v8165_v17  ;;  %v8269_v17 = vld [vmem:[%s11187_s1 + $0x1204] ss:$16 sps:$4 sm:$0xff]  }
 0x203   :  { %5247 = vmatpush1.bf16.msra.mxu0 %v8168_v18  ;;  %5806 = vmatpush1.bf16.msra.mxu1 %v8171_v19  ;;  %v8272_v18 = vld [vmem:[%s11187_s1 + $0x120c] ss:$16 sps:$4 sm:$0xff]   ;;  %v8264_v19 = vld [vmem:[%s11188_s0 + $0x40] ss:$100 sps:$4 sm:$0xff]  }
 0x204   :  { %5248 = vmatprep.subr.bf16.mxu0 %v8176_v20  ;;  %5807 = vmatprep.subr.bf16.mxu1 %v8179_v21  ;;  %v8267_v20 = vld [vmem:[%s11187_s1 + $0x1200] ss:$16 sps:$4 sm:$0xff]   ;;  %v8270_v21 = vld [vmem:[%s11187_s1 + $0x1208] ss:$16 sps:$4 sm:$0xff]  }
 0x205   :  { %5278 = vmatprep.mubr.bf16.mxu0 %v8266_v22  ;;  %5837 = vmatprep.mubr.bf16.mxu1 %v8266_v22  ;;  %v8275_v22 = vld [vmem:[%s11187_s1 + $0x1224] ss:$16 sps:$4 sm:$0xff]  }
 0x207   :  { %5249 = vmatpush1.bf16.msra.mxu0 %v8174_v23  ;;  %5808 = vmatpush1.bf16.msra.mxu1 %v8177_v24  ;;  %v8278_v23 = vld [vmem:[%s11187_s1 + $0x122c] ss:$16 sps:$4 sm:$0xff]  }
 0x208   :  { %5250 = vmatprep.subr.bf16.mxu0 %v8182_v25  ;;  %5809 = vmatprep.subr.bf16.mxu1 %v8185_v26  ;;  %v8365_v24 = vld [vmem:[%s11188_s0 + $0x4c] ss:$100 sps:$4 sm:$0xff]   ;;  %v8276_v26 = vld [vmem:[%s11187_s1 + $0x1228] ss:$16 sps:$4 sm:$0xff]  }
 0x209   :  { %v8273_v25 = vld [vmem:[%s11187_s1 + $0x1220] ss:$16 sps:$4 sm:$0xff]  }
 0x20b   :  { %5251 = vmatpush1.bf16.msra.mxu0 %v8180_v27  ;;  %5810 = vmatpush1.bf16.msra.mxu1 %v8183_v28  ;;  %v8281_v27 = vld [vmem:[%s11187_s1 + $0x1244] ss:$16 sps:$4 sm:$0xff]   ;;  %v8284_v28 = vld [vmem:[%s11187_s1 + $0x124c] ss:$16 sps:$4 sm:$0xff]  }
 0x20c   :  { %5252 = vmatprep.subr.bf16.mxu0 %v8188_v29  ;;  %5811 = vmatprep.subr.bf16.mxu1 %v8191_v30  ;;  %v8279_v29 = vld [vmem:[%s11187_s1 + $0x1240] ss:$16 sps:$4 sm:$0xff]   ;;  %v8282_v30 = vld [vmem:[%s11187_s1 + $0x1248] ss:$16 sps:$4 sm:$0xff]  }
 0x20f   :  { %5253 = vmatpush1.bf16.msra.mxu0 %v8186_v31  ;;  %5812 = vmatpush1.bf16.msra.mxu1 %v8189_v32  ;;  %v8287_v31 = vld [vmem:[%s11187_s1 + $0x1264] ss:$16 sps:$4 sm:$0xff]   ;;  %v8290_v32 = vld [vmem:[%s11187_s1 + $0x126c] ss:$16 sps:$4 sm:$0xff]  }
 0x210   :  { %5254 = vmatprep.subr.bf16.mxu0 %v8194_v33  ;;  %5813 = vmatprep.subr.bf16.mxu1 %v8197_v34  ;;  %v8285_v33 = vld [vmem:[%s11187_s1 + $0x1260] ss:$16 sps:$4 sm:$0xff]   ;;  %v8288_v34 = vld [vmem:[%s11187_s1 + $0x1268] ss:$16 sps:$4 sm:$0xff]  }
 0x213   :  { %5255 = vmatpush1.bf16.msra.mxu0 %v8192_v35  ;;  %5814 = vmatpush1.bf16.msra.mxu1 %v8195_v36  ;;  %v8293_v35 = vld [vmem:[%s11187_s1 + $0x1284] ss:$16 sps:$4 sm:$0xff]   ;;  %v8296_v36 = vld [vmem:[%s11187_s1 + $0x128c] ss:$16 sps:$4 sm:$0xff]  }
 0x214   :  { %5256 = vmatprep.subr.bf16.mxu0 %v8200_v37  ;;  %5815 = vmatprep.subr.bf16.mxu1 %v8203_v38  ;;  %v8291_v37 = vld [vmem:[%s11187_s1 + $0x1280] ss:$16 sps:$4 sm:$0xff]   ;;  %v8294_v38 = vld [vmem:[%s11187_s1 + $0x1288] ss:$16 sps:$4 sm:$0xff]  }
 0x217   :  { %5257 = vmatpush1.bf16.msra.mxu0 %v8198_v39  ;;  %5816 = vmatpush1.bf16.msra.mxu1 %v8201_v40  ;;  %v8299_v39 = vld [vmem:[%s11187_s1 + $0x12a4] ss:$16 sps:$4 sm:$0xff]   ;;  %v8302_v40 = vld [vmem:[%s11187_s1 + $0x12ac] ss:$16 sps:$4 sm:$0xff]  }
 0x218   :  { %5258 = vmatprep.subr.bf16.mxu0 %v8206_v41  ;;  %5817 = vmatprep.subr.bf16.mxu1 %v8209_v42  ;;  %v8297_v41 = vld [vmem:[%s11187_s1 + $0x12a0] ss:$16 sps:$4 sm:$0xff]   ;;  %v8300_v42 = vld [vmem:[%s11187_s1 + $0x12a8] ss:$16 sps:$4 sm:$0xff]  }
 0x21b   :  { %5259 = vmatpush1.bf16.msra.mxu0 %v8204_v43  ;;  %5818 = vmatpush1.bf16.msra.mxu1 %v8207_v44  ;;  %v8305_v43 = vld [vmem:[%s11187_s1 + $0x12c4] ss:$16 sps:$4 sm:$0xff]   ;;  %v8308_v44 = vld [vmem:[%s11187_s1 + $0x12cc] ss:$16 sps:$4 sm:$0xff]  }
 0x21c   :  { %5260 = vmatprep.subr.bf16.mxu0 %v8212_v45  ;;  %5819 = vmatprep.subr.bf16.mxu1 %v8215_v46  ;;  %v8303_v45 = vld [vmem:[%s11187_s1 + $0x12c0] ss:$16 sps:$4 sm:$0xff]   ;;  %v8306_v46 = vld [vmem:[%s11187_s1 + $0x12c8] ss:$16 sps:$4 sm:$0xff]  }
 0x21f   :  { %5261 = vmatpush1.bf16.msra.mxu0 %v8210_v47  ;;  %5820 = vmatpush1.bf16.msra.mxu1 %v8213_v48  ;;  %v8311_v47 = vld [vmem:[%s11187_s1 + $0x12e4] ss:$16 sps:$4 sm:$0xff]   ;;  %v8314_v48 = vld [vmem:[%s11187_s1 + $0x12ec] ss:$16 sps:$4 sm:$0xff]  }
 0x220   :  { %5262 = vmatprep.subr.bf16.mxu0 %v8218_v49  ;;  %5821 = vmatprep.subr.bf16.mxu1 %v8221_v50  ;;  %v8309_v49 = vld [vmem:[%s11187_s1 + $0x12e0] ss:$16 sps:$4 sm:$0xff]   ;;  %v8312_v50 = vld [vmem:[%s11187_s1 + $0x12e8] ss:$16 sps:$4 sm:$0xff]  }
 0x223   :  { %5263 = vmatpush1.bf16.msra.mxu0 %v8216_v51  ;;  %5822 = vmatpush1.bf16.msra.mxu1 %v8219_v52  ;;  %v8317_v51 = vld [vmem:[%s11187_s1 + $0x1304] ss:$16 sps:$4 sm:$0xff]   ;;  %v8320_v52 = vld [vmem:[%s11187_s1 + $0x130c] ss:$16 sps:$4 sm:$0xff]  }
 0x224   :  { %5264 = vmatprep.subr.bf16.mxu0 %v8224_v53  ;;  %5823 = vmatprep.subr.bf16.mxu1 %v8227_v54  ;;  %v8315_v53 = vld [vmem:[%s11187_s1 + $0x1300] ss:$16 sps:$4 sm:$0xff]   ;;  %v8318_v54 = vld [vmem:[%s11187_s1 + $0x1308] ss:$16 sps:$4 sm:$0xff]  }
 0x227   :  { %5265 = vmatpush1.bf16.msra.mxu0 %v8222_v55  ;;  %5824 = vmatpush1.bf16.msra.mxu1 %v8225_v56  ;;  %v8323_v55 = vld [vmem:[%s11187_s1 + $0x1324] ss:$16 sps:$4 sm:$0xff]   ;;  %v8326_v56 = vld [vmem:[%s11187_s1 + $0x132c] ss:$16 sps:$4 sm:$0xff]  }
 0x228   :  { %5266 = vmatprep.subr.bf16.mxu0 %v8230_v57  ;;  %5825 = vmatprep.subr.bf16.mxu1 %v8233_v58  ;;  %v8321_v57 = vld [vmem:[%s11187_s1 + $0x1320] ss:$16 sps:$4 sm:$0xff]   ;;  %v8324_v58 = vld [vmem:[%s11187_s1 + $0x1328] ss:$16 sps:$4 sm:$0xff]  }
 0x22b   :  { %5267 = vmatpush1.bf16.msra.mxu0 %v8228_v59  ;;  %5826 = vmatpush1.bf16.msra.mxu1 %v8231_v60  ;;  %v8329_v59 = vld [vmem:[%s11187_s1 + $0x1344] ss:$16 sps:$4 sm:$0xff]   ;;  %v8332_v60 = vld [vmem:[%s11187_s1 + $0x134c] ss:$16 sps:$4 sm:$0xff]  }
 0x22c   :  { %5268 = vmatprep.subr.bf16.mxu0 %v8236_v61  ;;  %5827 = vmatprep.subr.bf16.mxu1 %v8239_v62  ;;  %v8327_v61 = vld [vmem:[%s11187_s1 + $0x1340] ss:$16 sps:$4 sm:$0xff]   ;;  %v8330_v62 = vld [vmem:[%s11187_s1 + $0x1348] ss:$16 sps:$4 sm:$0xff]  }
 0x22f   :  { %5269 = vmatpush1.bf16.msra.mxu0 %v8234_v63  ;;  %5828 = vmatpush1.bf16.msra.mxu1 %v8237_v0  ;;  %v8335_v63 = vld [vmem:[%s11187_s1 + $0x1364] ss:$16 sps:$4 sm:$0xff]   ;;  %v8338_v0 = vld [vmem:[%s11187_s1 + $0x136c] ss:$16 sps:$4 sm:$0xff]  }
 0x230   :  { %5270 = vmatprep.subr.bf16.mxu0 %v8242_v1  ;;  %5829 = vmatprep.subr.bf16.mxu1 %v8245_v2  ;;  %v8333_v1 = vld [vmem:[%s11187_s1 + $0x1360] ss:$16 sps:$4 sm:$0xff]   ;;  %v8336_v2 = vld [vmem:[%s11187_s1 + $0x1368] ss:$16 sps:$4 sm:$0xff]  }
 0x233   :  { %5271 = vmatpush1.bf16.msra.mxu0 %v8240_v3  ;;  %5830 = vmatpush1.bf16.msra.mxu1 %v8243_v4  ;;  %v8341_v3 = vld [vmem:[%s11187_s1 + $0x1384] ss:$16 sps:$4 sm:$0xff]   ;;  %v8344_v4 = vld [vmem:[%s11187_s1 + $0x138c] ss:$16 sps:$4 sm:$0xff]  }
 0x234   :  { %5272 = vmatprep.subr.bf16.mxu0 %v8248_v5  ;;  %5831 = vmatprep.subr.bf16.mxu1 %v8251_v6  ;;  %v8339_v5 = vld [vmem:[%s11187_s1 + $0x1380] ss:$16 sps:$4 sm:$0xff]   ;;  %v8342_v6 = vld [vmem:[%s11187_s1 + $0x1388] ss:$16 sps:$4 sm:$0xff]  }
 0x237   :  { %5273 = vmatpush1.bf16.msra.mxu0 %v8246_v7  ;;  %5832 = vmatpush1.bf16.msra.mxu1 %v8249_v8  ;;  %v8347_v7 = vld [vmem:[%s11187_s1 + $0x13a4] ss:$16 sps:$4 sm:$0xff]   ;;  %v8350_v8 = vld [vmem:[%s11187_s1 + $0x13ac] ss:$16 sps:$4 sm:$0xff]  }
 0x238   :  { %5274 = vmatprep.subr.bf16.mxu0 %v8254_v9  ;;  %5833 = vmatprep.subr.bf16.mxu1 %v8257_v10  ;;  %v8345_v9 = vld [vmem:[%s11187_s1 + $0x13a0] ss:$16 sps:$4 sm:$0xff]   ;;  %v8348_v10 = vld [vmem:[%s11187_s1 + $0x13a8] ss:$16 sps:$4 sm:$0xff]  }
 0x23b   :  { %5275 = vmatpush1.bf16.msra.mxu0 %v8252_v11  ;;  %5834 = vmatpush1.bf16.msra.mxu1 %v8255_v12  ;;  %v8353_v11 = vld [vmem:[%s11187_s1 + $0x13c4] ss:$16 sps:$4 sm:$0xff]   ;;  %v8356_v12 = vld [vmem:[%s11187_s1 + $0x13cc] ss:$16 sps:$4 sm:$0xff]  }
 0x23c   :  { %5276 = vmatprep.subr.bf16.mxu0 %v8260_v13  ;;  %5835 = vmatprep.subr.bf16.mxu1 %v8263_v14  ;;  %v8351_v13 = vld [vmem:[%s11187_s1 + $0x13c0] ss:$16 sps:$4 sm:$0xff]   ;;  %v8354_v14 = vld [vmem:[%s11187_s1 + $0x13c8] ss:$16 sps:$4 sm:$0xff]  }
 0x23f   :  { %5277 = vmatpush1.bf16.msra.mxu0 %v8258_v15  ;;  %5836 = vmatpush1.bf16.msra.mxu1 %v8261_v16  ;;  %v8359_v15 = vld [vmem:[%s11187_s1 + $0x13e4] ss:$16 sps:$4 sm:$0xff]   ;;  %v8362_v16 = vld [vmem:[%s11187_s1 + $0x13ec] ss:$16 sps:$4 sm:$0xff]  }
 0x240   :  { %5289 = vmatprep.subr.bf16.mxu0 %v8269_v17  ;;  %5848 = vmatprep.subr.bf16.mxu1 %v8272_v18  ;;  %v8357_v17 = vld [vmem:[%s11187_s1 + $0x13e0] ss:$16 sps:$4 sm:$0xff]   ;;  %v8360_v18 = vld [vmem:[%s11187_s1 + $0x13e8] ss:$16 sps:$4 sm:$0xff]  }
 0x242   :  { %5279 = vmatmul.mubr.bf16.vlgmr.msra.gmra.mrb[0].mxu0 %v8264_v19  ;;  %5838 = vmatmul.mubr.bf16.vlgmr.msra.gmra.mrb[0].mxu1 %v8264_v19  ;;  %v8368_v19 = vld [vmem:[%s11187_s1 + $0x1404] ss:$16 sps:$4 sm:$0xff]  }
 0x243   :  { %5290 = vmatpush1.bf16.msra.mxu0 %v8267_v20  ;;  %5849 = vmatpush1.bf16.msra.mxu1 %v8270_v21  ;;  %v8371_v20 = vld [vmem:[%s11187_s1 + $0x140c] ss:$16 sps:$4 sm:$0xff]  }
 0x244   :  { %5291 = vmatprep.subr.bf16.mxu0 %v8275_v22  ;;  %5850 = vmatprep.subr.bf16.mxu1 %v8278_v23  ;;  %v8363_v21 = vld [vmem:[%s11188_s0 + $0x48] ss:$100 sps:$4 sm:$0xff]   ;;  %v8366_v22 = vld [vmem:[%s11187_s1 + $0x1400] ss:$16 sps:$4 sm:$0xff]  }
 0x245   :  { %5321 = vmatprep.mubr.bf16.mxu0 %v8365_v24  ;;  %5880 = vmatprep.mubr.bf16.mxu1 %v8365_v24  ;;  %v8369_v23 = vld [vmem:[%s11187_s1 + $0x1408] ss:$16 sps:$4 sm:$0xff]   ;;  %v8374_v24 = vld [vmem:[%s11187_s1 + $0x1424] ss:$16 sps:$4 sm:$0xff]  }
 0x247   :  { %5292 = vmatpush1.bf16.msra.mxu0 %v8273_v25  ;;  %5851 = vmatpush1.bf16.msra.mxu1 %v8276_v26  ;;  %v8377_v25 = vld [vmem:[%s11187_s1 + $0x142c] ss:$16 sps:$4 sm:$0xff]   ;;  %v8464_v26 = vld [vmem:[%s11188_s0 + $0x54] ss:$100 sps:$4 sm:$0xff]  }
 0x248   :  { %5293 = vmatprep.subr.bf16.mxu0 %v8281_v27  ;;  %5852 = vmatprep.subr.bf16.mxu1 %v8284_v28  ;;  %v8372_v27 = vld [vmem:[%s11187_s1 + $0x1420] ss:$16 sps:$4 sm:$0xff]   ;;  %v8375_v28 = vld [vmem:[%s11187_s1 + $0x1428] ss:$16 sps:$4 sm:$0xff]  }
 0x24b   :  { %5294 = vmatpush1.bf16.msra.mxu0 %v8279_v29  ;;  %5853 = vmatpush1.bf16.msra.mxu1 %v8282_v30  ;;  %v8380_v29 = vld [vmem:[%s11187_s1 + $0x1444] ss:$16 sps:$4 sm:$0xff]   ;;  %v8383_v30 = vld [vmem:[%s11187_s1 + $0x144c] ss:$16 sps:$4 sm:$0xff]  }
 0x24c   :  { %5295 = vmatprep.subr.bf16.mxu0 %v8287_v31  ;;  %5854 = vmatprep.subr.bf16.mxu1 %v8290_v32  ;;  %v8378_v31 = vld [vmem:[%s11187_s1 + $0x1440] ss:$16 sps:$4 sm:$0xff]   ;;  %v8381_v32 = vld [vmem:[%s11187_s1 + $0x1448] ss:$16 sps:$4 sm:$0xff]  }
 0x24f   :  { %5296 = vmatpush1.bf16.msra.mxu0 %v8285_v33  ;;  %5855 = vmatpush1.bf16.msra.mxu1 %v8288_v34  ;;  %v8386_v33 = vld [vmem:[%s11187_s1 + $0x1464] ss:$16 sps:$4 sm:$0xff]   ;;  %v8389_v34 = vld [vmem:[%s11187_s1 + $0x146c] ss:$16 sps:$4 sm:$0xff]  }
 0x250   :  { %5297 = vmatprep.subr.bf16.mxu0 %v8293_v35  ;;  %5856 = vmatprep.subr.bf16.mxu1 %v8296_v36  ;;  %v8384_v35 = vld [vmem:[%s11187_s1 + $0x1460] ss:$16 sps:$4 sm:$0xff]   ;;  %v8387_v36 = vld [vmem:[%s11187_s1 + $0x1468] ss:$16 sps:$4 sm:$0xff]  }
 0x253   :  { %5298 = vmatpush1.bf16.msra.mxu0 %v8291_v37  ;;  %5857 = vmatpush1.bf16.msra.mxu1 %v8294_v38  ;;  %v8392_v37 = vld [vmem:[%s11187_s1 + $0x1484] ss:$16 sps:$4 sm:$0xff]   ;;  %v8395_v38 = vld [vmem:[%s11187_s1 + $0x148c] ss:$16 sps:$4 sm:$0xff]  }
 0x254   :  { %5299 = vmatprep.subr.bf16.mxu0 %v8299_v39  ;;  %5858 = vmatprep.subr.bf16.mxu1 %v8302_v40  ;;  %v8390_v39 = vld [vmem:[%s11187_s1 + $0x1480] ss:$16 sps:$4 sm:$0xff]   ;;  %v8393_v40 = vld [vmem:[%s11187_s1 + $0x1488] ss:$16 sps:$4 sm:$0xff]  }
 0x257   :  { %5300 = vmatpush1.bf16.msra.mxu0 %v8297_v41  ;;  %5859 = vmatpush1.bf16.msra.mxu1 %v8300_v42  ;;  %v8398_v41 = vld [vmem:[%s11187_s1 + $0x14a4] ss:$16 sps:$4 sm:$0xff]   ;;  %v8401_v42 = vld [vmem:[%s11187_s1 + $0x14ac] ss:$16 sps:$4 sm:$0xff]  }
 0x258   :  { %5301 = vmatprep.subr.bf16.mxu0 %v8305_v43  ;;  %5860 = vmatprep.subr.bf16.mxu1 %v8308_v44  ;;  %v8396_v43 = vld [vmem:[%s11187_s1 + $0x14a0] ss:$16 sps:$4 sm:$0xff]   ;;  %v8399_v44 = vld [vmem:[%s11187_s1 + $0x14a8] ss:$16 sps:$4 sm:$0xff]  }
 0x25b   :  { %5302 = vmatpush1.bf16.msra.mxu0 %v8303_v45  ;;  %5861 = vmatpush1.bf16.msra.mxu1 %v8306_v46  ;;  %v8404_v45 = vld [vmem:[%s11187_s1 + $0x14c4] ss:$16 sps:$4 sm:$0xff]   ;;  %v8407_v46 = vld [vmem:[%s11187_s1 + $0x14cc] ss:$16 sps:$4 sm:$0xff]  }
 0x25c   :  { %5303 = vmatprep.subr.bf16.mxu0 %v8311_v47  ;;  %5862 = vmatprep.subr.bf16.mxu1 %v8314_v48  ;;  %v8402_v47 = vld [vmem:[%s11187_s1 + $0x14c0] ss:$16 sps:$4 sm:$0xff]   ;;  %v8405_v48 = vld [vmem:[%s11187_s1 + $0x14c8] ss:$16 sps:$4 sm:$0xff]  }
 0x25f   :  { %5304 = vmatpush1.bf16.msra.mxu0 %v8309_v49  ;;  %5863 = vmatpush1.bf16.msra.mxu1 %v8312_v50  ;;  %v8410_v49 = vld [vmem:[%s11187_s1 + $0x14e4] ss:$16 sps:$4 sm:$0xff]   ;;  %v8413_v50 = vld [vmem:[%s11187_s1 + $0x14ec] ss:$16 sps:$4 sm:$0xff]  }
 0x260   :  { %5305 = vmatprep.subr.bf16.mxu0 %v8317_v51  ;;  %5864 = vmatprep.subr.bf16.mxu1 %v8320_v52  ;;  %v8408_v51 = vld [vmem:[%s11187_s1 + $0x14e0] ss:$16 sps:$4 sm:$0xff]   ;;  %v8411_v52 = vld [vmem:[%s11187_s1 + $0x14e8] ss:$16 sps:$4 sm:$0xff]  }
 0x263   :  { %5306 = vmatpush1.bf16.msra.mxu0 %v8315_v53  ;;  %5865 = vmatpush1.bf16.msra.mxu1 %v8318_v54  ;;  %v8416_v53 = vld [vmem:[%s11187_s1 + $0x1504] ss:$16 sps:$4 sm:$0xff]   ;;  %v8419_v54 = vld [vmem:[%s11187_s1 + $0x150c] ss:$16 sps:$4 sm:$0xff]  }
 0x264   :  { %5307 = vmatprep.subr.bf16.mxu0 %v8323_v55  ;;  %5866 = vmatprep.subr.bf16.mxu1 %v8326_v56  ;;  %v8414_v55 = vld [vmem:[%s11187_s1 + $0x1500] ss:$16 sps:$4 sm:$0xff]   ;;  %v8417_v56 = vld [vmem:[%s11187_s1 + $0x1508] ss:$16 sps:$4 sm:$0xff]  }
 0x267   :  { %5308 = vmatpush1.bf16.msra.mxu0 %v8321_v57  ;;  %5867 = vmatpush1.bf16.msra.mxu1 %v8324_v58  ;;  %v8422_v57 = vld [vmem:[%s11187_s1 + $0x1524] ss:$16 sps:$4 sm:$0xff]   ;;  %v8425_v58 = vld [vmem:[%s11187_s1 + $0x152c] ss:$16 sps:$4 sm:$0xff]  }
 0x268   :  { %5309 = vmatprep.subr.bf16.mxu0 %v8329_v59  ;;  %5868 = vmatprep.subr.bf16.mxu1 %v8332_v60  ;;  %v8420_v59 = vld [vmem:[%s11187_s1 + $0x1520] ss:$16 sps:$4 sm:$0xff]   ;;  %v8423_v60 = vld [vmem:[%s11187_s1 + $0x1528] ss:$16 sps:$4 sm:$0xff]  }
 0x26b   :  { %5310 = vmatpush1.bf16.msra.mxu0 %v8327_v61  ;;  %5869 = vmatpush1.bf16.msra.mxu1 %v8330_v62  ;;  %v8428_v61 = vld [vmem:[%s11187_s1 + $0x1544] ss:$16 sps:$4 sm:$0xff]   ;;  %v8431_v62 = vld [vmem:[%s11187_s1 + $0x154c] ss:$16 sps:$4 sm:$0xff]  }
 0x26c   :  { %5311 = vmatprep.subr.bf16.mxu0 %v8335_v63  ;;  %5870 = vmatprep.subr.bf16.mxu1 %v8338_v0  ;;  %v8426_v63 = vld [vmem:[%s11187_s1 + $0x1540] ss:$16 sps:$4 sm:$0xff]   ;;  %v8429_v0 = vld [vmem:[%s11187_s1 + $0x1548] ss:$16 sps:$4 sm:$0xff]  }
 0x26f   :  { %5312 = vmatpush1.bf16.msra.mxu0 %v8333_v1  ;;  %5871 = vmatpush1.bf16.msra.mxu1 %v8336_v2  ;;  %v8434_v1 = vld [vmem:[%s11187_s1 + $0x1564] ss:$16 sps:$4 sm:$0xff]   ;;  %v8437_v2 = vld [vmem:[%s11187_s1 + $0x156c] ss:$16 sps:$4 sm:$0xff]  }
 0x270   :  { %5313 = vmatprep.subr.bf16.mxu0 %v8341_v3  ;;  %5872 = vmatprep.subr.bf16.mxu1 %v8344_v4  ;;  %v8432_v3 = vld [vmem:[%s11187_s1 + $0x1560] ss:$16 sps:$4 sm:$0xff]   ;;  %v8435_v4 = vld [vmem:[%s11187_s1 + $0x1568] ss:$16 sps:$4 sm:$0xff]  }
 0x273   :  { %5314 = vmatpush1.bf16.msra.mxu0 %v8339_v5  ;;  %5873 = vmatpush1.bf16.msra.mxu1 %v8342_v6  ;;  %v8440_v5 = vld [vmem:[%s11187_s1 + $0x1584] ss:$16 sps:$4 sm:$0xff]   ;;  %v8443_v6 = vld [vmem:[%s11187_s1 + $0x158c] ss:$16 sps:$4 sm:$0xff]  }
 0x274   :  { %5315 = vmatprep.subr.bf16.mxu0 %v8347_v7  ;;  %5874 = vmatprep.subr.bf16.mxu1 %v8350_v8  ;;  %v8438_v7 = vld [vmem:[%s11187_s1 + $0x1580] ss:$16 sps:$4 sm:$0xff]   ;;  %v8441_v8 = vld [vmem:[%s11187_s1 + $0x1588] ss:$16 sps:$4 sm:$0xff]  }
 0x277   :  { %5316 = vmatpush1.bf16.msra.mxu0 %v8345_v9  ;;  %5875 = vmatpush1.bf16.msra.mxu1 %v8348_v10  ;;  %v8446_v9 = vld [vmem:[%s11187_s1 + $0x15a4] ss:$16 sps:$4 sm:$0xff]   ;;  %v8449_v10 = vld [vmem:[%s11187_s1 + $0x15ac] ss:$16 sps:$4 sm:$0xff]  }
 0x278   :  { %5317 = vmatprep.subr.bf16.mxu0 %v8353_v11  ;;  %5876 = vmatprep.subr.bf16.mxu1 %v8356_v12  ;;  %v8444_v11 = vld [vmem:[%s11187_s1 + $0x15a0] ss:$16 sps:$4 sm:$0xff]   ;;  %v8447_v12 = vld [vmem:[%s11187_s1 + $0x15a8] ss:$16 sps:$4 sm:$0xff]  }
 0x27b   :  { %5318 = vmatpush1.bf16.msra.mxu0 %v8351_v13  ;;  %5877 = vmatpush1.bf16.msra.mxu1 %v8354_v14  ;;  %v8452_v13 = vld [vmem:[%s11187_s1 + $0x15c4] ss:$16 sps:$4 sm:$0xff]   ;;  %v8455_v14 = vld [vmem:[%s11187_s1 + $0x15cc] ss:$16 sps:$4 sm:$0xff]  }
 0x27c   :  { %5319 = vmatprep.subr.bf16.mxu0 %v8359_v15  ;;  %5878 = vmatprep.subr.bf16.mxu1 %v8362_v16  ;;  %v8450_v15 = vld [vmem:[%s11187_s1 + $0x15c0] ss:$16 sps:$4 sm:$0xff]   ;;  %v8453_v16 = vld [vmem:[%s11187_s1 + $0x15c8] ss:$16 sps:$4 sm:$0xff]  }
 0x27f   :  { %5320 = vmatpush1.bf16.msra.mxu0 %v8357_v17  ;;  %5879 = vmatpush1.bf16.msra.mxu1 %v8360_v18  ;;  %v8458_v17 = vld [vmem:[%s11187_s1 + $0x15e4] ss:$16 sps:$4 sm:$0xff]   ;;  %v8461_v18 = vld [vmem:[%s11187_s1 + $0x15ec] ss:$16 sps:$4 sm:$0xff]  }
 0x280   :  { %5332 = vmatprep.subr.bf16.mxu0 %v8368_v19  ;;  %5891 = vmatprep.subr.bf16.mxu1 %v8371_v20  ;;  %v8456_v19 = vld [vmem:[%s11187_s1 + $0x15e0] ss:$16 sps:$4 sm:$0xff]   ;;  %v8459_v20 = vld [vmem:[%s11187_s1 + $0x15e8] ss:$16 sps:$4 sm:$0xff]  }
 0x282   :  { %5322 = vmatmul.mubr.bf16.vlgmr.msra.gmra.mrb[0].mxu0 %v8363_v21  ;;  %5881 = vmatmul.mubr.bf16.vlgmr.msra.gmra.mrb[0].mxu1 %v8363_v21  ;;  %v8467_v21 = vld [vmem:[%s11187_s1 + $0x1604] ss:$16 sps:$4 sm:$0xff]  }
 0x283   :  { %5333 = vmatpush1.bf16.msra.mxu0 %v8366_v22  ;;  %5892 = vmatpush1.bf16.msra.mxu1 %v8369_v23  ;;  %v8470_v22 = vld [vmem:[%s11187_s1 + $0x160c] ss:$16 sps:$4 sm:$0xff]   ;;  %v8462_v23 = vld [vmem:[%s11188_s0 + $0x50] ss:$100 sps:$4 sm:$0xff]  }
 0x284   :  { %5334 = vmatprep.subr.bf16.mxu0 %v8374_v24  ;;  %5893 = vmatprep.subr.bf16.mxu1 %v8377_v25  ;;  %v8465_v24 = vld [vmem:[%s11187_s1 + $0x1600] ss:$16 sps:$4 sm:$0xff]   ;;  %v8468_v25 = vld [vmem:[%s11187_s1 + $0x1608] ss:$16 sps:$4 sm:$0xff]  }
 0x285   :  { %5364 = vmatprep.mubr.bf16.mxu0 %v8464_v26  ;;  %5923 = vmatprep.mubr.bf16.mxu1 %v8464_v26  ;;  %v8473_v26 = vld [vmem:[%s11187_s1 + $0x1624] ss:$16 sps:$4 sm:$0xff]  }
 0x287   :  { %5335 = vmatpush1.bf16.msra.mxu0 %v8372_v27  ;;  %5894 = vmatpush1.bf16.msra.mxu1 %v8375_v28  ;;  %v8476_v27 = vld [vmem:[%s11187_s1 + $0x162c] ss:$16 sps:$4 sm:$0xff]  }
 0x288   :  { %5336 = vmatprep.subr.bf16.mxu0 %v8380_v29  ;;  %5895 = vmatprep.subr.bf16.mxu1 %v8383_v30  ;;  %v8563_v28 = vld [vmem:[%s11188_s0 + $0x5c] ss:$100 sps:$4 sm:$0xff]   ;;  %v8474_v30 = vld [vmem:[%s11187_s1 + $0x1628] ss:$16 sps:$4 sm:$0xff]  }
 0x289   :  { %v8471_v29 = vld [vmem:[%s11187_s1 + $0x1620] ss:$16 sps:$4 sm:$0xff]  }
 0x28b   :  { %5337 = vmatpush1.bf16.msra.mxu0 %v8378_v31  ;;  %5896 = vmatpush1.bf16.msra.mxu1 %v8381_v32  ;;  %v8479_v31 = vld [vmem:[%s11187_s1 + $0x1644] ss:$16 sps:$4 sm:$0xff]   ;;  %v8482_v32 = vld [vmem:[%s11187_s1 + $0x164c] ss:$16 sps:$4 sm:$0xff]  }
 0x28c   :  { %5338 = vmatprep.subr.bf16.mxu0 %v8386_v33  ;;  %5897 = vmatprep.subr.bf16.mxu1 %v8389_v34  ;;  %v8477_v33 = vld [vmem:[%s11187_s1 + $0x1640] ss:$16 sps:$4 sm:$0xff]   ;;  %v8480_v34 = vld [vmem:[%s11187_s1 + $0x1648] ss:$16 sps:$4 sm:$0xff]  }
 0x28f   :  { %5339 = vmatpush1.bf16.msra.mxu0 %v8384_v35  ;;  %5898 = vmatpush1.bf16.msra.mxu1 %v8387_v36  ;;  %v8485_v35 = vld [vmem:[%s11187_s1 + $0x1664] ss:$16 sps:$4 sm:$0xff]   ;;  %v8488_v36 = vld [vmem:[%s11187_s1 + $0x166c] ss:$16 sps:$4 sm:$0xff]  }
 0x290   :  { %5340 = vmatprep.subr.bf16.mxu0 %v8392_v37  ;;  %5899 = vmatprep.subr.bf16.mxu1 %v8395_v38  ;;  %v8483_v37 = vld [vmem:[%s11187_s1 + $0x1660] ss:$16 sps:$4 sm:$0xff]   ;;  %v8486_v38 = vld [vmem:[%s11187_s1 + $0x1668] ss:$16 sps:$4 sm:$0xff]  }
 0x293   :  { %5341 = vmatpush1.bf16.msra.mxu0 %v8390_v39  ;;  %5900 = vmatpush1.bf16.msra.mxu1 %v8393_v40  ;;  %v8491_v39 = vld [vmem:[%s11187_s1 + $0x1684] ss:$16 sps:$4 sm:$0xff]   ;;  %v8494_v40 = vld [vmem:[%s11187_s1 + $0x168c] ss:$16 sps:$4 sm:$0xff]  }
 0x294   :  { %5342 = vmatprep.subr.bf16.mxu0 %v8398_v41  ;;  %5901 = vmatprep.subr.bf16.mxu1 %v8401_v42  ;;  %v8489_v41 = vld [vmem:[%s11187_s1 + $0x1680] ss:$16 sps:$4 sm:$0xff]   ;;  %v8492_v42 = vld [vmem:[%s11187_s1 + $0x1688] ss:$16 sps:$4 sm:$0xff]  }
 0x297   :  { %5343 = vmatpush1.bf16.msra.mxu0 %v8396_v43  ;;  %5902 = vmatpush1.bf16.msra.mxu1 %v8399_v44  ;;  %v8497_v43 = vld [vmem:[%s11187_s1 + $0x16a4] ss:$16 sps:$4 sm:$0xff]   ;;  %v8500_v44 = vld [vmem:[%s11187_s1 + $0x16ac] ss:$16 sps:$4 sm:$0xff]  }
 0x298   :  { %5344 = vmatprep.subr.bf16.mxu0 %v8404_v45  ;;  %5903 = vmatprep.subr.bf16.mxu1 %v8407_v46  ;;  %v8495_v45 = vld [vmem:[%s11187_s1 + $0x16a0] ss:$16 sps:$4 sm:$0xff]   ;;  %v8498_v46 = vld [vmem:[%s11187_s1 + $0x16a8] ss:$16 sps:$4 sm:$0xff]  }
 0x29b   :  { %5345 = vmatpush1.bf16.msra.mxu0 %v8402_v47  ;;  %5904 = vmatpush1.bf16.msra.mxu1 %v8405_v48  ;;  %v8503_v47 = vld [vmem:[%s11187_s1 + $0x16c4] ss:$16 sps:$4 sm:$0xff]   ;;  %v8506_v48 = vld [vmem:[%s11187_s1 + $0x16cc] ss:$16 sps:$4 sm:$0xff]  }
 0x29c   :  { %5346 = vmatprep.subr.bf16.mxu0 %v8410_v49  ;;  %5905 = vmatprep.subr.bf16.mxu1 %v8413_v50  ;;  %v8501_v49 = vld [vmem:[%s11187_s1 + $0x16c0] ss:$16 sps:$4 sm:$0xff]   ;;  %v8504_v50 = vld [vmem:[%s11187_s1 + $0x16c8] ss:$16 sps:$4 sm:$0xff]  }
 0x29f   :  { %5347 = vmatpush1.bf16.msra.mxu0 %v8408_v51  ;;  %5906 = vmatpush1.bf16.msra.mxu1 %v8411_v52  ;;  %v8509_v51 = vld [vmem:[%s11187_s1 + $0x16e4] ss:$16 sps:$4 sm:$0xff]   ;;  %v8512_v52 = vld [vmem:[%s11187_s1 + $0x16ec] ss:$16 sps:$4 sm:$0xff]  }
 0x2a0   :  { %5348 = vmatprep.subr.bf16.mxu0 %v8416_v53  ;;  %5907 = vmatprep.subr.bf16.mxu1 %v8419_v54  ;;  %v8507_v53 = vld [vmem:[%s11187_s1 + $0x16e0] ss:$16 sps:$4 sm:$0xff]   ;;  %v8510_v54 = vld [vmem:[%s11187_s1 + $0x16e8] ss:$16 sps:$4 sm:$0xff]  }
 0x2a3   :  { %5349 = vmatpush1.bf16.msra.mxu0 %v8414_v55  ;;  %5908 = vmatpush1.bf16.msra.mxu1 %v8417_v56  ;;  %v8515_v55 = vld [vmem:[%s11187_s1 + $0x1704] ss:$16 sps:$4 sm:$0xff]   ;;  %v8518_v56 = vld [vmem:[%s11187_s1 + $0x170c] ss:$16 sps:$4 sm:$0xff]  }
 0x2a4   :  { %5350 = vmatprep.subr.bf16.mxu0 %v8422_v57  ;;  %5909 = vmatprep.subr.bf16.mxu1 %v8425_v58  ;;  %v8513_v57 = vld [vmem:[%s11187_s1 + $0x1700] ss:$16 sps:$4 sm:$0xff]   ;;  %v8516_v58 = vld [vmem:[%s11187_s1 + $0x1708] ss:$16 sps:$4 sm:$0xff]  }
 0x2a7   :  { %5351 = vmatpush1.bf16.msra.mxu0 %v8420_v59  ;;  %5910 = vmatpush1.bf16.msra.mxu1 %v8423_v60  ;;  %v8521_v59 = vld [vmem:[%s11187_s1 + $0x1724] ss:$16 sps:$4 sm:$0xff]   ;;  %v8524_v60 = vld [vmem:[%s11187_s1 + $0x172c] ss:$16 sps:$4 sm:$0xff]  }
 0x2a8   :  { %5352 = vmatprep.subr.bf16.mxu0 %v8428_v61  ;;  %5911 = vmatprep.subr.bf16.mxu1 %v8431_v62  ;;  %v8519_v61 = vld [vmem:[%s11187_s1 + $0x1720] ss:$16 sps:$4 sm:$0xff]   ;;  %v8522_v62 = vld [vmem:[%s11187_s1 + $0x1728] ss:$16 sps:$4 sm:$0xff]  }
 0x2ab   :  { %5353 = vmatpush1.bf16.msra.mxu0 %v8426_v63  ;;  %5912 = vmatpush1.bf16.msra.mxu1 %v8429_v0  ;;  %v8527_v63 = vld [vmem:[%s11187_s1 + $0x1744] ss:$16 sps:$4 sm:$0xff]   ;;  %v8530_v0 = vld [vmem:[%s11187_s1 + $0x174c] ss:$16 sps:$4 sm:$0xff]  }
 0x2ac   :  { %5354 = vmatprep.subr.bf16.mxu0 %v8434_v1  ;;  %5913 = vmatprep.subr.bf16.mxu1 %v8437_v2  ;;  %v8525_v1 = vld [vmem:[%s11187_s1 + $0x1740] ss:$16 sps:$4 sm:$0xff]   ;;  %v8528_v2 = vld [vmem:[%s11187_s1 + $0x1748] ss:$16 sps:$4 sm:$0xff]  }
 0x2af   :  { %5355 = vmatpush1.bf16.msra.mxu0 %v8432_v3  ;;  %5914 = vmatpush1.bf16.msra.mxu1 %v8435_v4  ;;  %v8533_v3 = vld [vmem:[%s11187_s1 + $0x1764] ss:$16 sps:$4 sm:$0xff]   ;;  %v8536_v4 = vld [vmem:[%s11187_s1 + $0x176c] ss:$16 sps:$4 sm:$0xff]  }
 0x2b0   :  { %5356 = vmatprep.subr.bf16.mxu0 %v8440_v5  ;;  %5915 = vmatprep.subr.bf16.mxu1 %v8443_v6  ;;  %v8531_v5 = vld [vmem:[%s11187_s1 + $0x1760] ss:$16 sps:$4 sm:$0xff]   ;;  %v8534_v6 = vld [vmem:[%s11187_s1 + $0x1768] ss:$16 sps:$4 sm:$0xff]  }
 0x2b3   :  { %5357 = vmatpush1.bf16.msra.mxu0 %v8438_v7  ;;  %5916 = vmatpush1.bf16.msra.mxu1 %v8441_v8  ;;  %v8539_v7 = vld [vmem:[%s11187_s1 + $0x1784] ss:$16 sps:$4 sm:$0xff]   ;;  %v8542_v8 = vld [vmem:[%s11187_s1 + $0x178c] ss:$16 sps:$4 sm:$0xff]  }
 0x2b4   :  { %5358 = vmatprep.subr.bf16.mxu0 %v8446_v9  ;;  %5917 = vmatprep.subr.bf16.mxu1 %v8449_v10  ;;  %v8537_v9 = vld [vmem:[%s11187_s1 + $0x1780] ss:$16 sps:$4 sm:$0xff]   ;;  %v8540_v10 = vld [vmem:[%s11187_s1 + $0x1788] ss:$16 sps:$4 sm:$0xff]  }
 0x2b7   :  { %5359 = vmatpush1.bf16.msra.mxu0 %v8444_v11  ;;  %5918 = vmatpush1.bf16.msra.mxu1 %v8447_v12  ;;  %v8545_v11 = vld [vmem:[%s11187_s1 + $0x17a4] ss:$16 sps:$4 sm:$0xff]   ;;  %v8548_v12 = vld [vmem:[%s11187_s1 + $0x17ac] ss:$16 sps:$4 sm:$0xff]  }
 0x2b8   :  { %5360 = vmatprep.subr.bf16.mxu0 %v8452_v13  ;;  %5919 = vmatprep.subr.bf16.mxu1 %v8455_v14  ;;  %v8543_v13 = vld [vmem:[%s11187_s1 + $0x17a0] ss:$16 sps:$4 sm:$0xff]   ;;  %v8546_v14 = vld [vmem:[%s11187_s1 + $0x17a8] ss:$16 sps:$4 sm:$0xff]  }
 0x2bb   :  { %5361 = vmatpush1.bf16.msra.mxu0 %v8450_v15  ;;  %5920 = vmatpush1.bf16.msra.mxu1 %v8453_v16  ;;  %v8551_v15 = vld [vmem:[%s11187_s1 + $0x17c4] ss:$16 sps:$4 sm:$0xff]   ;;  %v8554_v16 = vld [vmem:[%s11187_s1 + $0x17cc] ss:$16 sps:$4 sm:$0xff]  }
 0x2bc   :  { %5362 = vmatprep.subr.bf16.mxu0 %v8458_v17  ;;  %5921 = vmatprep.subr.bf16.mxu1 %v8461_v18  ;;  %v8549_v17 = vld [vmem:[%s11187_s1 + $0x17c0] ss:$16 sps:$4 sm:$0xff]   ;;  %v8552_v18 = vld [vmem:[%s11187_s1 + $0x17c8] ss:$16 sps:$4 sm:$0xff]  }
 0x2bf   :  { %5363 = vmatpush1.bf16.msra.mxu0 %v8456_v19  ;;  %5922 = vmatpush1.bf16.msra.mxu1 %v8459_v20  ;;  %v8557_v19 = vld [vmem:[%s11187_s1 + $0x17e4] ss:$16 sps:$4 sm:$0xff]   ;;  %v8560_v20 = vld [vmem:[%s11187_s1 + $0x17ec] ss:$16 sps:$4 sm:$0xff]  }
 0x2c0   :  { %5375 = vmatprep.subr.bf16.mxu0 %v8467_v21  ;;  %5934 = vmatprep.subr.bf16.mxu1 %v8470_v22  ;;  %v8555_v21 = vld [vmem:[%s11187_s1 + $0x17e0] ss:$16 sps:$4 sm:$0xff]   ;;  %v8558_v22 = vld [vmem:[%s11187_s1 + $0x17e8] ss:$16 sps:$4 sm:$0xff]  }
 0x2c2   :  { %5365 = vmatmul.mubr.bf16.vlgmr.msra.gmra.mrb[0].mxu0 %v8462_v23  ;;  %5924 = vmatmul.mubr.bf16.vlgmr.msra.gmra.mrb[0].mxu1 %v8462_v23  ;;  %v8566_v23 = vld [vmem:[%s11187_s1 + $0x1804] ss:$16 sps:$4 sm:$0xff]  }
 0x2c3   :  { %5376 = vmatpush1.bf16.msra.mxu0 %v8465_v24  ;;  %5935 = vmatpush1.bf16.msra.mxu1 %v8468_v25  ;;  %v8569_v24 = vld [vmem:[%s11187_s1 + $0x180c] ss:$16 sps:$4 sm:$0xff]  }
 0x2c4   :  { %5377 = vmatprep.subr.bf16.mxu0 %v8473_v26  ;;  %5936 = vmatprep.subr.bf16.mxu1 %v8476_v27  ;;  %v8561_v25 = vld [vmem:[%s11188_s0 + $0x58] ss:$100 sps:$4 sm:$0xff]   ;;  %v8564_v26 = vld [vmem:[%s11187_s1 + $0x1800] ss:$16 sps:$4 sm:$0xff]  }
 0x2c5   :  { %5407 = vmatprep.mubr.bf16.mxu0 %v8563_v28  ;;  %5966 = vmatprep.mubr.bf16.mxu1 %v8563_v28  ;;  %v8567_v27 = vld [vmem:[%s11187_s1 + $0x1808] ss:$16 sps:$4 sm:$0xff]   ;;  %v8572_v28 = vld [vmem:[%s11187_s1 + $0x1824] ss:$16 sps:$4 sm:$0xff]  }
 0x2c7   :  { %5378 = vmatpush1.bf16.msra.mxu0 %v8471_v29  ;;  %5937 = vmatpush1.bf16.msra.mxu1 %v8474_v30  ;;  %v8575_v29 = vld [vmem:[%s11187_s1 + $0x182c] ss:$16 sps:$4 sm:$0xff]   ;;  %v8570_v30 = vld [vmem:[%s11187_s1 + $0x1820] ss:$16 sps:$4 sm:$0xff]  }
 0x2c8   :  { %5379 = vmatprep.subr.bf16.mxu0 %v8479_v31  ;;  %5938 = vmatprep.subr.bf16.mxu1 %v8482_v32  ;;  %v8573_v31 = vld [vmem:[%s11187_s1 + $0x1828] ss:$16 sps:$4 sm:$0xff]   ;;  %v8578_v32 = vld [vmem:[%s11187_s1 + $0x1844] ss:$16 sps:$4 sm:$0xff]  }
 0x2cb   :  { %5380 = vmatpush1.bf16.msra.mxu0 %v8477_v33  ;;  %5939 = vmatpush1.bf16.msra.mxu1 %v8480_v34  ;;  %v8581_v33 = vld [vmem:[%s11187_s1 + $0x184c] ss:$16 sps:$4 sm:$0xff]   ;;  %v8621_v34 = vmov 0  }
 0x2cc   :  { %5381 = vmatprep.subr.bf16.mxu0 %v8485_v35  ;;  %5940 = vmatprep.subr.bf16.mxu1 %v8488_v36  ;;  %v8576_v35 = vld [vmem:[%s11187_s1 + $0x1840] ss:$16 sps:$4 sm:$0xff]   ;;  %v8579_v36 = vld [vmem:[%s11187_s1 + $0x1848] ss:$16 sps:$4 sm:$0xff]  }
 0x2cf   :  { %5382 = vmatpush1.bf16.msra.mxu0 %v8483_v37  ;;  %5941 = vmatpush1.bf16.msra.mxu1 %v8486_v38  ;;  %v8584_v37 = vld [vmem:[%s11187_s1 + $0x1864] ss:$16 sps:$4 sm:$0xff]   ;;  %v8587_v38 = vld [vmem:[%s11187_s1 + $0x186c] ss:$16 sps:$4 sm:$0xff]  }
 0x2d0   :  { %5383 = vmatprep.subr.bf16.mxu0 %v8491_v39  ;;  %5942 = vmatprep.subr.bf16.mxu1 %v8494_v40  ;;  %v8582_v39 = vld [vmem:[%s11187_s1 + $0x1860] ss:$16 sps:$4 sm:$0xff]   ;;  %v8585_v40 = vld [vmem:[%s11187_s1 + $0x1868] ss:$16 sps:$4 sm:$0xff]  }
 0x2d3   :  { %5384 = vmatpush1.bf16.msra.mxu0 %v8489_v41  ;;  %5943 = vmatpush1.bf16.msra.mxu1 %v8492_v42  ;;  %v8589_v41 = vld [vmem:[%s11189_s3 + $0x40] sm:$0xff]  }
 0x2d4   :  { %5385 = vmatprep.subr.bf16.mxu0 %v8497_v43  ;;  %5944 = vmatprep.subr.bf16.mxu1 %v8500_v44  ;;  %v8590_v42 = vld [vmem:[%s11189_s3 + $0xc0] sm:$0xff]  }
 0x2d5   :  { %v8588_v43 = vld [vmem:[%s11188_s0 + $0x60] ss:$100 sps:$4 sm:$0xff]  }
 0x2d6   :  { %v8591_v44 = vld [vmem:[%s11189_s3] sm:$0xff]  }
 0x2d7   :  { %5386 = vmatpush1.bf16.msra.mxu0 %v8495_v45  ;;  %5945 = vmatpush1.bf16.msra.mxu1 %v8498_v46  ;;  %v8592_v45 = vld [vmem:[%s11189_s3 + $0x80] sm:$0xff]   ;;  %v8593_v46 = vld [vmem:[%s11189_s3 + $0x48] sm:$0xff]  }
 0x2d8   :  { %5387 = vmatprep.subr.bf16.mxu0 %v8503_v47  ;;  %5946 = vmatprep.subr.bf16.mxu1 %v8506_v48  ;;  %v8594_v47 = vld [vmem:[%s11189_s3 + $0xc8] sm:$0xff]  }
 0x2d9   :  { %v8595_v48 = vld [vmem:[%s11189_s3 + $0x8] sm:$0xff]  }
 0x2db   :  { %5388 = vmatpush1.bf16.msra.mxu0 %v8501_v49  ;;  %5947 = vmatpush1.bf16.msra.mxu1 %v8504_v50  ;;  %v8596_v49 = vld [vmem:[%s11189_s3 + $0x88] sm:$0xff]   ;;  %v8597_v50 = vld [vmem:[%s11189_s3 + $0x50] sm:$0xff]  }
 0x2dc   :  { %5389 = vmatprep.subr.bf16.mxu0 %v8509_v51  ;;  %5948 = vmatprep.subr.bf16.mxu1 %v8512_v52  ;;  %v8598_v51 = vld [vmem:[%s11189_s3 + $0xd0] sm:$0xff]  }
 0x2dd   :  { %v8599_v52 = vld [vmem:[%s11189_s3 + $0x10] sm:$0xff]  }
 0x2df   :  { %5390 = vmatpush1.bf16.msra.mxu0 %v8507_v53  ;;  %5949 = vmatpush1.bf16.msra.mxu1 %v8510_v54  ;;  %v8600_v53 = vld [vmem:[%s11189_s3 + $0x90] sm:$0xff]   ;;  %v8601_v54 = vld [vmem:[%s11189_s3 + $0x58] sm:$0xff]  }
 0x2e0   :  { %5391 = vmatprep.subr.bf16.mxu0 %v8515_v55  ;;  %5950 = vmatprep.subr.bf16.mxu1 %v8518_v56  ;;  %v8602_v55 = vld [vmem:[%s11189_s3 + $0xd8] sm:$0xff]  }
 0x2e1   :  { %v8603_v56 = vld [vmem:[%s11189_s3 + $0x18] sm:$0xff]  }
 0x2e3   :  { %5392 = vmatpush1.bf16.msra.mxu0 %v8513_v57  ;;  %5951 = vmatpush1.bf16.msra.mxu1 %v8516_v58  ;;  %v8604_v57 = vld [vmem:[%s11189_s3 + $0x98] sm:$0xff]   ;;  %v8605_v58 = vld [vmem:[%s11189_s3 + $0x60] sm:$0xff]  }
 0x2e4   :  { %5393 = vmatprep.subr.bf16.mxu0 %v8521_v59  ;;  %5952 = vmatprep.subr.bf16.mxu1 %v8524_v60  ;;  %v8606_v59 = vld [vmem:[%s11189_s3 + $0xe0] sm:$0xff]  }
 0x2e5   :  { %v8607_v60 = vld [vmem:[%s11189_s3 + $0x20] sm:$0xff]  }
 0x2e7   :  { %5394 = vmatpush1.bf16.msra.mxu0 %v8519_v61  ;;  %5953 = vmatpush1.bf16.msra.mxu1 %v8522_v62  ;;  %v8608_v61 = vld [vmem:[%s11189_s3 + $0xa0] sm:$0xff]   ;;  %v8609_v62 = vld [vmem:[%s11189_s3 + $0x68] sm:$0xff]  }
 0x2e8   :  { %5395 = vmatprep.subr.bf16.mxu0 %v8527_v63  ;;  %5954 = vmatprep.subr.bf16.mxu1 %v8530_v0  ;;  %v8610_v63 = vld [vmem:[%s11189_s3 + $0xe8] sm:$0xff]  }
 0x2e9   :  { %v8611_v0 = vld [vmem:[%s11189_s3 + $0x28] sm:$0xff]  }
 0x2eb   :  { %5396 = vmatpush1.bf16.msra.mxu0 %v8525_v1  ;;  %5955 = vmatpush1.bf16.msra.mxu1 %v8528_v2  ;;  %v8612_v1 = vld [vmem:[%s11189_s3 + $0xa8] sm:$0xff]   ;;  %v8613_v2 = vld [vmem:[%s11189_s3 + $0x70] sm:$0xff]  }
 0x2ec   :  { %5397 = vmatprep.subr.bf16.mxu0 %v8533_v3  ;;  %5956 = vmatprep.subr.bf16.mxu1 %v8536_v4  ;;  %v8614_v3 = vld [vmem:[%s11189_s3 + $0xf0] sm:$0xff]  }
 0x2ed   :  { %v8615_v4 = vld [vmem:[%s11189_s3 + $0x30] sm:$0xff]  }
 0x2ef   :  { %5398 = vmatpush1.bf16.msra.mxu0 %v8531_v5  ;;  %5957 = vmatpush1.bf16.msra.mxu1 %v8534_v6  ;;  %v8616_v5 = vld [vmem:[%s11189_s3 + $0xb0] sm:$0xff]   ;;  %v8617_v6 = vld [vmem:[%s11189_s3 + $0x78] sm:$0xff]  }
 0x2f0   :  { %5399 = vmatprep.subr.bf16.mxu0 %v8539_v7  ;;  %5958 = vmatprep.subr.bf16.mxu1 %v8542_v8  ;;  %v8618_v7 = vld [vmem:[%s11189_s3 + $0xf8] sm:$0xff]  }
 0x2f1   :  { %v8619_v8 = vld [vmem:[%s11189_s3 + $0x38] sm:$0xff]  }
 0x2f3   :  { %5400 = vmatpush1.bf16.msra.mxu0 %v8537_v9  ;;  %5959 = vmatpush1.bf16.msra.mxu1 %v8540_v10  ;;  %v8620_v9 = vld [vmem:[%s11189_s3 + $0xb8] sm:$0xff]   ;;  %v833_v10 = vlaneseq }
 0x2f4   :  { %5401 = vmatprep.subr.bf16.mxu0 %v8545_v11  ;;  %5960 = vmatprep.subr.bf16.mxu1 %v8548_v12 }
 0x2f5   :  { %v834_v11 = vshrl.u32 %v833_v10, 7 }
 0x2f7   :  { %5402 = vmatpush1.bf16.msra.mxu0 %v8543_v13  ;;  %5961 = vmatpush1.bf16.msra.mxu1 %v8546_v14  ;;  %v835_v12 = vsub.s32 0, %v834_v11  ;;  %v843_v13 = vsub.s32 2, %v834_v11  ;;  %v831_v14 = vld [vmem:[%s11190_s2] sm:$0xf] }
 0x2f8   :  { %5403 = vmatprep.subr.bf16.mxu0 %v8551_v15  ;;  %5962 = vmatprep.subr.bf16.mxu1 %v8554_v16  ;;  %v839_v15 = vsub.s32 1, %v834_v11  ;;  %v847_v16 = vsub.s32 3, %v834_v11 }
 0x2fb   :  { %5404 = vmatpush1.bf16.msra.mxu0 %v8549_v17  ;;  %5963 = vmatpush1.bf16.msra.mxu1 %v8552_v18  ;;  %v836_v17 = vrot.slane %v831_v14, %v835_v12  ;;  %v844_v18 = vrot.slane %v831_v14, %v843_v13 }
 0x2fc   :  { %5405 = vmatprep.subr.bf16.mxu0 %v8557_v19  ;;  %5964 = vmatprep.subr.bf16.mxu1 %v8560_v20  ;;  %v840_v19 = vrot.slane %v831_v14, %v839_v15  ;;  %v848_v20 = vrot.slane %v831_v14, %v847_v16 }
 0x2ff   :  { %5406 = vmatpush1.bf16.msra.mxu0 %v8555_v21  ;;  %5965 = vmatpush1.bf16.msra.mxu1 %v8558_v22 }
 0x300   :  { %5418 = vmatprep.subr.bf16.mxu0 %v8566_v23  ;;  %5977 = vmatprep.subr.bf16.mxu1 %v8569_v24 }
 0x302   :  { %5408 = vmatmul.mubr.bf16.vlgmr.msra.gmra.mrb[0].mxu0 %v8561_v25  ;;  %5967 = vmatmul.mubr.bf16.vlgmr.msra.gmra.mrb[0].mxu1 %v8561_v25 }
 0x303   :  { %5419 = vmatpush1.bf16.msra.mxu0 %v8564_v26  ;;  %5978 = vmatpush1.bf16.msra.mxu1 %v8567_v27 }
 0x304   :  { %5420 = vmatprep.subr.bf16.mxu0 %v8572_v28  ;;  %5979 = vmatprep.subr.bf16.mxu1 %v8575_v29 }
 0x305   :  { %5450 = vmatprep.mubr.bf16.mxu0 %v8621_v34  ;;  %6009 = vmatprep.mubr.bf16.mxu1 %v8621_v34 }
 0x307   :  { %5421 = vmatpush1.bf16.msra.mxu0 %v8570_v30  ;;  %5980 = vmatpush1.bf16.msra.mxu1 %v8573_v31 }
 0x308   :  { %5422 = vmatprep.subr.bf16.mxu0 %v8578_v32  ;;  %5981 = vmatprep.subr.bf16.mxu1 %v8581_v33 }
 0x30b   :  { %5423 = vmatpush1.bf16.msra.mxu0 %v8576_v35  ;;  %5982 = vmatpush1.bf16.msra.mxu1 %v8579_v36 }
 0x30c   :  { %5424 = vmatprep.subr.bf16.mxu0 %v8584_v37  ;;  %5983 = vmatprep.subr.bf16.mxu1 %v8587_v38 }
 0x30f   :  { %5425 = vmatpush1.bf16.msra.mxu0 %v8582_v39  ;;  %5984 = vmatpush1.bf16.msra.mxu1 %v8585_v40 }
 0x310   :  { %7227 = vmatprep.subr.bf16.mxu0 %v8589_v41  ;;  %7249 = vmatprep.subr.bf16.mxu1 %v8590_v42 }
 0x312   :  { %7192 = vmatmul.mubr.msk.bf16.vlgmr.msra.gmra.mrb[0].mxu0 %vm4898_vm0, %v8588_v43  ;;  %7193 = vmatmul.mubr.msk.bf16.vlgmr.msra.gmra.mrb[0].mxu1 %vm4898_vm0, %v8588_v43 }
 0x313   :  { %7228 = vmatpush3.bf16.msra.mxu0 %v8591_v44  ;;  %7250 = vmatpush3.bf16.msra.mxu1 %v8592_v45 }
 0x314   :  { %7229 = vmatprep.subr.bf16.mxu0 %v8593_v46  ;;  %7251 = vmatprep.subr.bf16.mxu1 %v8594_v47 }
 0x317   :  { %7230 = vmatpush3.bf16.msra.mxu0 %v8595_v48  ;;  %7252 = vmatpush3.bf16.msra.mxu1 %v8596_v49 }
 0x318   :  { %7231 = vmatprep.subr.bf16.mxu0 %v8597_v50  ;;  %7253 = vmatprep.subr.bf16.mxu1 %v8598_v51  ;;  %v7194_v51 = vld [vmem:[%s11191_s4] ss:$0 sm:$0xff] }
 0x31b   :  { %7232 = vmatpush3.bf16.msra.mxu0 %v8599_v52  ;;  %7254 = vmatpush3.bf16.msra.mxu1 %v8600_v53 }
 0x31c   :  { %7233 = vmatprep.subr.bf16.mxu0 %v8601_v54  ;;  %7255 = vmatprep.subr.bf16.mxu1 %v8602_v55 }
 0x31f   :  { %7234 = vmatpush3.bf16.msra.mxu0 %v8603_v56  ;;  %7256 = vmatpush3.bf16.msra.mxu1 %v8604_v57 }
 0x320   :  { %7235 = vmatprep.subr.bf16.mxu0 %v8605_v58  ;;  %7257 = vmatprep.subr.bf16.mxu1 %v8606_v59 }
 0x323   :  { %7236 = vmatpush3.bf16.msra.mxu0 %v8607_v60  ;;  %7258 = vmatpush3.bf16.msra.mxu1 %v8608_v61 }
 0x324   :  { %7237 = vmatprep.subr.bf16.mxu0 %v8609_v62  ;;  %7259 = vmatprep.subr.bf16.mxu1 %v8610_v63 }
 0x327   :  { %7238 = vmatpush3.bf16.msra.mxu0 %v8611_v0  ;;  %7260 = vmatpush3.bf16.msra.mxu1 %v8612_v1 }
 0x328   :  { %7239 = vmatprep.subr.bf16.mxu0 %v8613_v2  ;;  %7261 = vmatprep.subr.bf16.mxu1 %v8614_v3 }
 0x32b   :  { %7240 = vmatpush3.bf16.msra.mxu0 %v8615_v4  ;;  %7262 = vmatpush3.bf16.msra.mxu1 %v8616_v5 }
 0x32c   :  { %7241 = vmatprep.subr.bf16.mxu0 %v8617_v6  ;;  %7263 = vmatprep.subr.bf16.mxu1 %v8618_v7 }
 0x32f   :  { %7242 = vmatpush3.bf16.msra.mxu0 %v8619_v8  ;;  %7264 = vmatpush3.bf16.msra.mxu1 %v8620_v9 }
 0x3e5   :  { %v5452_v21 = vpop.f32.mrb[0].mxu0  ;;  %v6011_v22 = vpop.f32.mrb[0].mxu1 }
 0x3e6   :  { %v7271_v23 = vadd.f32 %v5452_v21, %v836_v17  ;;  %v7275_v24 = vadd.f32 %v6011_v22, %v844_v18  ;;  %v5454_v25 = vpop.f32.mrb[1].mxu0  ;;  %v6013_v26 = vpop.f32.mrb[1].mxu1 }
 0x3e7   :  { %v7272_v27 = vadd.f32 %v5454_v25, %v840_v19  ;;  %v7276_v28 = vadd.f32 %v6013_v26, %v848_v20  ;;  %v5456_v29 = vpop.f32.mrb[2].mxu0  ;;  %v6015_v30 = vpop.f32.mrb[2].mxu1 }
 0x3e8   :  { %v7273_v31 = vadd.f32 %v5456_v29, %v836_v17  ;;  %v7277_v32 = vadd.f32 %v6015_v30, %v844_v18  ;;  %v5458_v33 = vpop.f32.mrb[3].mxu0  ;;  %v6017_v34 = vpop.f32.mrb[3].mxu1  ;;  %v6020_v37 = vmax.f32 %v7271_v23, 0.0  ;;  %v6022_v38 = vmax.f32 %v7275_v24, 0.0 }
 0x3e9   :  { %v7274_v35 = vadd.f32 %v5458_v33, %v840_v19  ;;  %v7278_v36 = vadd.f32 %v6017_v34, %v848_v20  ;;  %v6021_v41 = vmax.f32 %v7272_v27, 0.0  ;;  %v6023_v42 = vmax.f32 %v7276_v28, 0.0 }
 0x3ea   :  { %v6024_v39 = vmax.f32 %v7273_v31, 0.0  ;;  %v6026_v40 = vmax.f32 %v7277_v32, 0.0 }
 0x3eb   :  { %v6025_v43 = vmax.f32 %v7274_v35, 0.0  ;;  %v6027_v44 = vmax.f32 %v7278_v36, 0.0 }
 0x3ec   :  { %v6028_v45 = vpack.c.bf16 %v6024_v39, %v6020_v37  ;;  %v6030_v46 = vpack.c.bf16 %v6026_v40, %v6022_v38 }
 0x3ed   :  { %v6029_v47 = vpack.c.bf16 %v6025_v43, %v6021_v41  ;;  %v6031_v48 = vpack.c.bf16 %v6027_v44, %v6023_v42 }
 0x3ef   :  { %6327 = vmatprep.mubr.bf16.mxu0 %v6029_v47  ;;  %6368 = vmatprep.mubr.bf16.mxu1 %v6031_v48 }
 0x3f0   :  { %6328 = vmatmul.mubr.bf16.vlgmr.msra.gmra.mrb[4].mxu0 %v6028_v45  ;;  %6369 = vmatmul.mubr.bf16.vlgmr.msra.gmra.mrb[4].mxu1 %v6030_v46 }
 0x4c3   :  { %v7243_v49 = vpop.f32.mrb[4].mxu0  ;;  %v7265_v50 = vpop.f32.mrb[4].mxu1 }
 0x4c4   :  { %v7244_v52 = vpop.f32.mrb[5].mxu0  ;;  %v7266_v53 = vpop.f32.mrb[5].mxu1 }
 0x4c5   :  { %v7245_v54 = vadd.f32 %v7244_v52, %v7243_v49  ;;  %v7267_v55 = vadd.f32 %v7266_v53, %v7265_v50  ;;  %v7246_v56 = vpop.f32.mrb[6].mxu0  ;;  %v7268_v57 = vpop.f32.mrb[6].mxu1 }
 0x4c6   :  { %v7247_v58 = vpop.f32.mrb[7].mxu0  ;;  %v7269_v59 = vpop.f32.mrb[7].mxu1 }
 0x4c7   :  { %v6330_v60 = vadd.f32 %v7245_v54, %v7194_v51  ;;  %v7248_v61 = vadd.f32 %v7247_v58, %v7246_v56  ;;  %v7270_v62 = vadd.f32 %v7269_v59, %v7268_v57 }
 0x4c9   :  { %v6371_v63 = vadd.f32 %v7267_v55, %v6330_v60  ;;  %v6333_v0 = vadd.f32 %v7248_v61, %v7194_v51 }
 0x4cb   :  { %6377 = vst [vmem:[%s11192_s5] sm:$0xff] %v6371_v63  ;;  %v6374_v1 = vadd.f32 %v7270_v62, %v6333_v0 }
 0x4cd   :  { %6378 = vst [vmem:[%s11192_s5 + $0x8] sm:$0xff] %v6374_v1 }

</bundles_post_ra>
